<compile_context>
chip_gen: v6e
topology: v6e:2x2x1
jax: 0.10.0
libtpu: 0.0.40
codegen_flags: <defaults>
</compile_context>

<pallas_src>
import functools
import math

import numpy as np
import jax
import jax.numpy as jnp
from jax.experimental import pallas as pl
from jax.experimental.pallas import tpu as pltpu

_ROW_ALIGN = 16  # bf16 sublane tile -> every blob slice starts tile-aligned


def _rup(x, m):
    return -(-x // m) * m


# ---------------------------------------------------------------------------
# Static blob layouts (shared by prepare_params() and the kernel factory)
# ---------------------------------------------------------------------------
def _weight_shapes(latent, c_in, hidden, l2, n_blocks):
    cs = 3 * _rup(hidden, 8)                      # tap-stacked conv rows
    s = [("enc_conv0", cs, c_in)]
    for i in range(n_blocks):
        s += [(f"enc{i}_c1", cs, hidden), (f"enc{i}_c2", cs, hidden)]
    for t in range(l2):
        s += [(f"enc_fc{t}", 2 * latent, hidden)]
    s += [("dec_fc", l2 * hidden, latent)]
    for i in range(n_blocks):
        s += [(f"dec{i}_c1", cs, hidden), (f"dec{i}_c2", cs, hidden),
              (f"dec{i}_up", 2 * hidden, hidden)]
    s += [("out_conv", 3 * _rup(c_in, 8), hidden)]
    return s


def _bias_shapes(latent, c_in, hidden, l2, n_blocks):
    s = [("enc_conv0", hidden)]
    for i in range(n_blocks):
        s += [(f"enc{i}_c1", hidden), (f"enc{i}_c2", hidden)]
    s += [("enc_fc", 2 * latent), ("dec_fc", l2 * hidden)]
    for i in range(n_blocks):
        s += [(f"dec{i}_c1", hidden), (f"dec{i}_c2", hidden),
              (f"dec{i}_up", 2 * hidden)]
    s += [("out_conv", c_in)]
    return s


def _row_offsets(shapes):
    offs, off = {}, 0
    for name, r, c in shapes:
        offs[name] = (off, r, c)
        off += _rup(r, _ROW_ALIGN)
    return offs, off


def _pack_rows(values, shapes):
    """Pack named 2-D arrays row-wise into one (rows, max_cols) f32 blob."""
    offs, total = _row_offsets(shapes)
    maxc = max(c for _, _, c in shapes)
    blob = np.zeros((total, maxc), np.float32)
    for name, r, c in shapes:
        a = np.asarray(values[name], np.float32)
        assert a.shape == (r, c), (name, a.shape, (r, c))
        blob[offs[name][0]:offs[name][0] + r, :c] = a
    return blob, offs


def _pack_bias(values, shapes):
    """Pack named 1-D biases as columns of one (max_len, n_bias) f32 blob."""
    maxlen = max(ln for _, ln in shapes)
    blob = np.zeros((maxlen, len(shapes)), np.float32)
    offs = {}
    for k, (name, ln) in enumerate(shapes):
        a = np.asarray(values[name], np.float32).reshape(-1)
        assert a.shape[0] == ln, (name, a.shape, ln)
        blob[:ln, k] = a
        offs[name] = (k, ln)
    return blob, offs


# ---------------------------------------------------------------------------
# Geometry constants (batch dependent) -- built with numpy at trace time
# ---------------------------------------------------------------------------
def _const_shapes(n, l_in, l2, n_blocks):
    ls = [l_in // (2 ** k) for k in range(n_blocks + 1)]
    s = [(f"xplace{b}", l_in, n * l_in) for b in range(n)]
    for l in ls:
        m = n * l
        s += [(f"dprev{l}", m, m), (f"dnext{l}", m, m)]
    for l in ls[:-1]:
        m = n * l
        s += [(f"peven{l}", m, m // 2), (f"podd{l}", m, m // 2)]
    for l in ls[1:]:
        m = n * l
        s += [(f"eeven{l}", m, 2 * m), (f"eodd{l}", m, 2 * m)]
    for t in range(l2):
        s += [(f"fcpick{t}", n * l2, n), (f"fcexp{t}", n, n * l2)]
    return s


def _const_values(n, l_in, l2, n_blocks):
    def ij(r, c):
        return np.arange(r)[:, None], np.arange(c)[None, :]

    v = {}
    for b in range(n):
        i, j = ij(l_in, n * l_in)
        v[f"xplace{b}"] = j == b * l_in + i
    ls = [l_in // (2 ** k) for k in range(n_blocks + 1)]
    for l in ls:
        m = n * l
        i, j = ij(m, m)
        v[f"dprev{l}"] = (j == i + 1) & (j % l != 0)        # shift +1 lane
        v[f"dnext{l}"] = (i == j + 1) & (j % l != l - 1)    # shift -1 lane
    for l in ls[:-1]:
        m = n * l
        i, j = ij(m, m // 2)
        v[f"peven{l}"] = i == 2 * j
        v[f"podd{l}"] = i == 2 * j + 1
    for l in ls[1:]:
        m = n * l
        i, j = ij(m, 2 * m)
        v[f"eeven{l}"] = j == 2 * i
        v[f"eodd{l}"] = j == 2 * i + 1
    for t in range(l2):
        i, j = ij(n * l2, n)
        v[f"fcpick{t}"] = i == j * l2 + t
        i, j = ij(n, n * l2)
        v[f"fcexp{t}"] = j == i * l2 + t
    return {k: a.astype(np.float32) for k, a in v.items()}


# ---------------------------------------------------------------------------
# Fused whole-network kernel
# ---------------------------------------------------------------------------
def _make_vae_kernel(*, n, c_in, l_in, hidden, latent, l2, n_blocks,
                     sigmoid_out, w_offs, b_offs, c_offs):
    bf16, f32 = jnp.bfloat16, jnp.float32

    def kernel(x_ref, eps_ref, w_ref, b_ref, c_ref, muvar_ref, xrec_ref):
        def W(name):
            o, r, c = w_offs[name]
            return w_ref[o:o + r, 0:c]

        def Cm(name):
            o, r, c = c_offs[name]
            return c_ref[o:o + r, 0:c]

        def Bv(name):
            k, ln = b_offs[name]
            return b_ref[0:ln, k:k + 1]

        def dot(a, b):
            return jnp.dot(a, b, preferred_element_type=f32)

        def conv3(x, l, name, c_out, residual=None, leaky=False):
            # 'same'-padded Conv1d(k=3) in lane-dense (C, n*l) layout: one
            # fused tap matmul -> 3 row bands; the +/-1 lane shifts with
            # batch-segment boundary zeroing are two small 0/1 matmuls.
            s = _rup(c_out, 8)
            y3 = dot(W(name), x.astype(bf16))                 # (3*s, m) f32
            y = (y3[s:s + c_out]
                 + dot(y3[0:c_out].astype(bf16), Cm(f"dprev{l}"))
                 + dot(y3[2 * s:2 * s + c_out].astype(bf16), Cm(f"dnext{l}"))
                 + Bv(name))
            if residual is not None:
                y = y + residual
            if leaky:
                y = jnp.maximum(y, 0.01 * y)                  # leaky_relu
            return y

        # ---- input relayout (n, C, L) -> (C, n*L) via placement matmuls ----
        x_cm = dot(x_ref[0].astype(bf16), Cm("xplace0"))
        for b in range(1, n):
            x_cm = x_cm + dot(x_ref[b].astype(bf16), Cm(f"xplace{b}"))

        # ------------------------------ encoder -----------------------------
        l = l_in
        a = conv3(x_cm, l, "enc_conv0", hidden)
        for i in range(n_blocks):
            h = conv3(a, l, f"enc{i}_c1", hidden, leaky=True)
            h = conv3(h, l, f"enc{i}_c2", hidden, residual=a, leaky=True)
            hb = h.astype(bf16)                               # MaxPool1d(2)
            a = jnp.maximum(dot(hb, Cm(f"peven{l}")), dot(hb, Cm(f"podd{l}")))
            l //= 2

        # encoder FC (channel-major flatten: index = c*l2 + t)
        ab = a.astype(bf16)
        enc = None
        for t in range(l2):
            cols = dot(ab, Cm(f"fcpick{t}")).astype(bf16)     # (hidden, n)
            term = dot(W(f"enc_fc{t}"), cols)
            enc = term if enc is None else enc + term
        enc = enc + Bv("enc_fc")                              # (2*latent, n)
        muvar_ref[...] = enc                                  # merged mu|logvar

        # --------------------------- reparameterize -------------------------
        mu_t = enc[0:latent]
        logvar_t = enc[latent:2 * latent]
        z = eps_ref[...] * jnp.exp(0.5 * logvar_t) + mu_t     # (latent, n)

        # ------------------------------ decoder -----------------------------
        hcat = dot(W("dec_fc"), z.astype(bf16)) + Bv("dec_fc")  # (l2*H, n)
        a = None
        for t in range(l2):
            band = hcat[t * hidden:(t + 1) * hidden].astype(bf16)
            term = dot(band, Cm(f"fcexp{t}"))
            a = term if a is None else a + term
        l = l2
        for i in range(n_blocks):
            h = conv3(a, l, f"dec{i}_c1", hidden, leaky=True)
            h = conv3(h, l, f"dec{i}_c2", hidden, residual=a, leaky=True)
            # ConvTranspose1d(k=2, s=2): stacked tap matmul + even/odd scatter
            y = dot(W(f"dec{i}_up"), h.astype(bf16)) + Bv(f"dec{i}_up")
            a = (dot(y[0:hidden].astype(bf16), Cm(f"eeven{l}"))
                 + dot(y[hidden:2 * hidden].astype(bf16), Cm(f"eodd{l}")))
            l *= 2

        y = conv3(a, l, "out_conv", c_in)                     # (c_in, n*l_in)
        if sigmoid_out:
            y = 1.0 / (1.0 + jnp.exp(-y))                     # exact sigmoid
            y = jnp.clip(y, 0.0, 1.0)                         # guard rounding
        for b in range(n):                                    # final (n, C, L)
            xrec_ref[b] = y[:, b * l_in:(b + 1) * l_in]

    return kernel


# ---------------------------------------------------------------------------
# One-time weight preparation (BN fold, tap stacking, blob packing)
# ---------------------------------------------------------------------------
def _fold_conv(w, b, bnp=None):
    w = np.asarray(w, np.float32)
    b = np.asarray(b, np.float32)
    if bnp is not None:
        scale = (np.asarray(bnp["gamma"], np.float32)
                 / np.sqrt(np.asarray(bnp["var"], np.float32) + 1e-5))
        w = w * scale[:, None, None]
        b = (b - np.asarray(bnp["mean"], np.float32)) * scale \
            + np.asarray(bnp["beta"], np.float32)
    c_out, c_in, _ = w.shape
    s = _rup(c_out, 8)
    stacked = np.zeros((3 * s, c_in), np.float32)
    for k in range(3):
        stacked[k * s:k * s + c_out] = w[:, :, k]
    return stacked, b


def prepare_params(params, *, latent_dim, in_channels, freq_dim,
                   hidden_channels, n_blocks=5):
    """Fold eval-mode BN, stack conv taps, re-block the FCs and pack everything
    into one bf16 weight blob and one f32 bias blob (2 DMAs instead of ~60)."""
    l2 = freq_dim // (2 ** n_blocks)
    H, L = hidden_channels, latent_dim
    wn, bn = {}, {}

    wn["enc_conv0"], bn["enc_conv0"] = _fold_conv(params["enc_conv0_w"],
                                                  params["enc_conv0_b"])
    for i, p in enumerate(params["enc_blocks"]):
        wn[f"enc{i}_c1"], bn[f"enc{i}_c1"] = _fold_conv(p["conv1_w"], p["conv1_b"], p["bn1"])
        wn[f"enc{i}_c2"], bn[f"enc{i}_c2"] = _fold_conv(p["conv2_w"], p["conv2_b"], p["bn2"])

    wfc = np.asarray(params["enc_fc_w"], np.float32)        # (H*l2, 2L), row = c*l2+t
    for t in range(l2):
        wn[f"enc_fc{t}"] = wfc[t::l2, :].T                  # (2L, H)
    bn["enc_fc"] = np.asarray(params["enc_fc_b"], np.float32)

    wd = np.asarray(params["dec_fc_w"], np.float32)         # (L, H*l2), col = c*l2+t
    bd = np.asarray(params["dec_fc_b"], np.float32)
    wn["dec_fc"] = np.concatenate([wd[:, t::l2].T for t in range(l2)], 0)  # (l2*H, L)
    bn["dec_fc"] = np.concatenate([bd[t::l2] for t in range(l2)], 0)

    for i, p in enumerate(params["dec_blocks"]):
        wn[f"dec{i}_c1"], bn[f"dec{i}_c1"] = _fold_conv(p["conv1_w"], p["conv1_b"], p["bn1"])
        wn[f"dec{i}_c2"], bn[f"dec{i}_c2"] = _fold_conv(p["conv2_w"], p["conv2_b"], p["bn2"])
        wu = np.asarray(p["up_w"], np.float32)               # (C_in, C_out, 2)
        wn[f"dec{i}_up"] = np.concatenate([wu[:, :, 0].T, wu[:, :, 1].T], 0)
        bu = np.asarray(p["up_b"], np.float32)
        bn[f"dec{i}_up"] = np.concatenate([bu, bu], 0)        # same bias, both taps

    wn["out_conv"], bn["out_conv"] = _fold_conv(params["dec_conv_out_w"],
                                                params["dec_conv_out_b"])

    wblob, _ = _pack_rows(wn, _weight_shapes(L, in_channels, H, l2, n_blocks))
    bblob, _ = _pack_bias(bn, _bias_shapes(L, in_channels, H, l2, n_blocks))
    return (jnp.asarray(wblob, dtype=jnp.bfloat16),
            jnp.asarray(bblob, dtype=jnp.float32))


# ---------------------------------------------------------------------------
# Forward pass: a single grid-less pallas_call, 5 inputs / 2 outputs
# ---------------------------------------------------------------------------
def vae_cnn_forward(weights, x, eps, *, latent_dim, in_channels, freq_dim,
                    hidden_channels, n_blocks=5, normalization="min-max"):
    wblob, bblob = weights
    n, c_in, l_in = x.shape
    assert c_in == in_channels and l_in == freq_dim
    assert freq_dim % (2 ** n_blocks) == 0
    l2 = freq_dim // (2 ** n_blocks)
    assert eps.shape == (latent_dim, n)

    # geometry constants (built host-side at trace time -> one extra DMA)
    cblob, c_offs = _pack_rows(_const_values(n, l_in, l2, n_blocks),
                               _const_shapes(n, l_in, l2, n_blocks))
    w_offs, _ = _row_offsets(_weight_shapes(latent_dim, c_in, hidden_channels,
                                            l2, n_blocks))
    b_offs = {name: (k, ln) for k, (name, ln) in enumerate(
        _bias_shapes(latent_dim, c_in, hidden_channels, l2, n_blocks))}

    kernel = _make_vae_kernel(
        n=n, c_in=c_in, l_in=l_in, hidden=hidden_channels, latent=latent_dim,
        l2=l2, n_blocks=n_blocks, sigmoid_out=(normalization == "min-max"),
        w_offs=w_offs, b_offs=b_offs, c_offs=c_offs)

    vmem = pl.BlockSpec(memory_space=pltpu.MemorySpace.VMEM)
    muvar, x_rec = pl.pallas_call(
        kernel,
        out_shape=(jax.ShapeDtypeStruct((2 * latent_dim, n), jnp.float32),
                   jax.ShapeDtypeStruct((n, c_in, l_in), jnp.float32)),
        in_specs=[vmem] * 5,
        out_specs=(vmem, vmem),
    )(x.astype(jnp.float32), eps.astype(jnp.float32), wblob, bblob,
      jnp.asarray(cblob, dtype=jnp.bfloat16))

    muvar_t = jnp.transpose(muvar)          # the single tiny wrapper transpose
    return muvar_t[:, :latent_dim], muvar_t[:, latent_dim:], x_rec


# ---------------------------------------------------------------------------
# Deterministic parameter initialization (shapes per the PyTorch module)
# ---------------------------------------------------------------------------
def _init_conv(key, c_out, c_in, ksize):
    k1, k2 = jax.random.split(key)
    bound = 1.0 / math.sqrt(c_in * ksize)
    w = jax.random.uniform(k1, (c_out, c_in, ksize), jnp.float32, -bound, bound)
    b = jax.random.uniform(k2, (c_out,), jnp.float32, -bound, bound)
    return w, b


def _init_linear(key, d_in, d_out):
    k1, k2 = jax.random.split(key)
    bound = 1.0 / math.sqrt(d_in)
    w = jax.random.uniform(k1, (d_in, d_out), jnp.float32, -bound, bound)
    b = jax.random.uniform(k2, (d_out,), jnp.float32, -bound, bound)
    return w, b


def _init_bn(key, c):
    k1, k2, k3, k4 = jax.random.split(key, 4)
    return {
        "gamma": jax.random.uniform(k1, (c,), jnp.float32, 0.8, 1.2),
        "beta": 0.1 * jax.random.normal(k2, (c,), jnp.float32),
        "mean": 0.1 * jax.random.normal(k3, (c,), jnp.float32),
        "var": jax.random.uniform(k4, (c,), jnp.float32, 0.5, 1.5),
    }


def _init_resblock(key, c, ksize, up):
    keys = jax.random.split(key, 5)
    p = {}
    p["conv1_w"], p["conv1_b"] = _init_conv(keys[0], c, c, ksize)
    p["conv2_w"], p["conv2_b"] = _init_conv(keys[1], c, c, ksize)
    p["bn1"] = _init_bn(keys[2], c)
    p["bn2"] = _init_bn(keys[3], c)
    if up:
        k1, k2 = jax.random.split(keys[4])
        bound = 1.0 / math.sqrt(c * 2)
        p["up_w"] = jax.random.uniform(k1, (c, c, 2), jnp.float32, -bound, bound)
        p["up_b"] = jax.random.uniform(k2, (c,), jnp.float32, -bound, bound)
    return p


def init_params(key, latent_dim, in_channels, freq_dim, hidden_channels, ksize=3):
    keys = jax.random.split(key, 16)
    params = {}
    params["enc_conv0_w"], params["enc_conv0_b"] = _init_conv(
        keys[0], hidden_channels, in_channels, ksize)
    params["enc_blocks"] = [
        _init_resblock(keys[1 + i], hidden_channels, ksize, up=False)
        for i in range(5)]
    params["enc_fc_w"], params["enc_fc_b"] = _init_linear(
        keys[6], hidden_channels * freq_dim // 32, latent_dim * 2)
    params["dec_fc_w"], params["dec_fc_b"] = _init_linear(
        keys[7], latent_dim, hidden_channels * freq_dim // 32)
    params["dec_blocks"] = [
        _init_resblock(keys[8 + i], hidden_channels, ksize, up=True)
        for i in range(5)]
    params["dec_conv_out_w"], params["dec_conv_out_b"] = _init_conv(
        keys[13], in_channels, hidden_channels, ksize)
    return params


# ---------------------------------------------------------------------------
if __name__ == "__main__":
    latent_dim, in_channels, freq_dim, hidden_channels = 16, 4, 64, 8
    n_batch = 2

    key = jax.random.PRNGKey(0)
    kx, keps, kparams = jax.random.split(key, 3)
    x = jax.random.normal(kx, (n_batch, in_channels, freq_dim), jnp.float32)
    # torch draws eps internally; here it is an explicit (latent, n) input
    eps = jax.random.normal(keps, (latent_dim, n_batch), jnp.float32)
    params = init_params(kparams, latent_dim, in_channels, freq_dim,
                         hidden_channels)

    # one-time weight prep (BN fold, tap stacking, blob packing) -- not per call
    weights = prepare_params(params, latent_dim=latent_dim,
                             in_channels=in_channels, freq_dim=freq_dim,
                             hidden_channels=hidden_channels)
    weights = jax.tree_util.tree_map(jax.block_until_ready, weights)

    fwd = jax.jit(functools.partial(
        vae_cnn_forward,
        latent_dim=latent_dim,
        in_channels=in_channels,
        freq_dim=freq_dim,
        hidden_channels=hidden_channels,
        normalization="min-max"))

    mu, logvar, x_rec = fwd(weights, x, eps)
    jax.block_until_ready((mu, logvar, x_rec))

    assert mu.shape == (n_batch, latent_dim)
    assert logvar.shape == (n_batch, latent_dim)
    assert x_rec.shape == (n_batch, in_channels, freq_dim)
    assert bool(jnp.all(jnp.isfinite(mu)))
    assert bool(jnp.all(jnp.isfinite(logvar)))
    assert bool(jnp.all(jnp.isfinite(x_rec)))
    assert bool(jnp.all((x_rec >= 0.0) & (x_rec <= 1.0)))
    print("KERNEL_OK")
</pallas_src>

<mosaic_0001>
module attributes {stable_mosaic.version = 11 : i64} {
  func.func @kernel(%arg0: memref<2x4x64xf32, #tpu.memory_space<vmem>>, %arg1: memref<16x2xf32, #tpu.memory_space<vmem>>, %arg2: memref<864x16xbf16, #tpu.memory_space<vmem>>, %arg3: memref<32x29xf32, #tpu.memory_space<vmem>>, %arg4: memref<1536x128xbf16, #tpu.memory_space<vmem>>, %arg5: memref<32x2xf32, #tpu.memory_space<vmem>>, %arg6: memref<2x4x64xf32, #tpu.memory_space<vmem>>) attributes {dimension_semantics = [], scalar_prefetch = 0 : i64, scratch_operands = 0 : i64, tpu.core_type = #tpu.core_type<tc>} {
    %c0 = arith.constant 0 : index
    %c0_0 = arith.constant 0 : index
    %c0_1 = arith.constant 0 : index
    %0 = vector.load %arg0[%c0, %c0_0, %c0_1] : memref<2x4x64xf32, #tpu.memory_space<vmem>>, vector<1x4x64xf32>
    %1 = vector.shape_cast %0 : vector<1x4x64xf32> to vector<4x64xf32>
    %2 = arith.truncf %1 : vector<4x64xf32> to vector<4x64xbf16>
    %c0_2 = arith.constant 0 : index
    %c0_3 = arith.constant 0 : index
    %3 = vector.load %arg4[%c0_2, %c0_3] : memref<1536x128xbf16, #tpu.memory_space<vmem>>, vector<64x128xbf16>
    %cst = arith.constant dense<0.000000e+00> : vector<4x128xf32>
    %4 = tpu.matmul %2, %3, %cst {dimension_numbers = #tpu.dot_dimension_numbers<[1], [0], [0], [1], [0, 0, 1, 1], [], []>} : vector<4x64xbf16>, vector<64x128xbf16>, vector<4x128xf32> -> vector<4x128xf32>
    %c1 = arith.constant 1 : index
    %c0_4 = arith.constant 0 : index
    %c0_5 = arith.constant 0 : index
    %5 = vector.load %arg0[%c1, %c0_4, %c0_5] : memref<2x4x64xf32, #tpu.memory_space<vmem>>, vector<1x4x64xf32>
    %6 = vector.shape_cast %5 : vector<1x4x64xf32> to vector<4x64xf32>
    %7 = arith.truncf %6 : vector<4x64xf32> to vector<4x64xbf16>
    %c64 = arith.constant 64 : index
    %c0_6 = arith.constant 0 : index
    %8 = vector.load %arg4[%c64, %c0_6] : memref<1536x128xbf16, #tpu.memory_space<vmem>>, vector<64x128xbf16>
    %cst_7 = arith.constant dense<0.000000e+00> : vector<4x128xf32>
    %9 = tpu.matmul %7, %8, %cst_7 {dimension_numbers = #tpu.dot_dimension_numbers<[1], [0], [0], [1], [0, 0, 1, 1], [], []>} : vector<4x64xbf16>, vector<64x128xbf16>, vector<4x128xf32> -> vector<4x128xf32>
    %10 = arith.addf %4, %9 : vector<4x128xf32>
    %c0_8 = arith.constant 0 : index
    %c0_9 = arith.constant 0 : index
    %11 = vector.load %arg2[%c0_8, %c0_9] : memref<864x16xbf16, #tpu.memory_space<vmem>>, vector<24x4xbf16>
    %12 = arith.truncf %10 : vector<4x128xf32> to vector<4x128xbf16>
    %cst_10 = arith.constant dense<0.000000e+00> : vector<24x128xf32>
    %13 = tpu.matmul %11, %12, %cst_10 {dimension_numbers = #tpu.dot_dimension_numbers<[1], [0], [0], [1], [0, 0, 1, 1], [], []>} : vector<24x4xbf16>, vector<4x128xbf16>, vector<24x128xf32> -> vector<24x128xf32>
    %14 = vector.extract_strided_slice %13 {offsets = [8, 0], sizes = [8, 128], strides = [1, 1]} : vector<24x128xf32> to vector<8x128xf32>
    %15 = vector.extract_strided_slice %13 {offsets = [0, 0], sizes = [8, 128], strides = [1, 1]} : vector<24x128xf32> to vector<8x128xf32>
    %16 = arith.truncf %15 : vector<8x128xf32> to vector<8x128xbf16>
    %c128 = arith.constant 128 : index
    %c0_11 = arith.constant 0 : index
    %17 = vector.load %arg4[%c128, %c0_11] : memref<1536x128xbf16, #tpu.memory_space<vmem>>, vector<128x128xbf16>
    %cst_12 = arith.constant dense<0.000000e+00> : vector<8x128xf32>
    %18 = tpu.matmul %16, %17, %cst_12 {dimension_numbers = #tpu.dot_dimension_numbers<[1], [0], [0], [1], [0, 0, 1, 1], [], []>} : vector<8x128xbf16>, vector<128x128xbf16>, vector<8x128xf32> -> vector<8x128xf32>
    %19 = arith.addf %14, %18 : vector<8x128xf32>
    %20 = vector.extract_strided_slice %13 {offsets = [16, 0], sizes = [8, 128], strides = [1, 1]} : vector<24x128xf32> to vector<8x128xf32>
    %21 = arith.truncf %20 : vector<8x128xf32> to vector<8x128xbf16>
    %c256 = arith.constant 256 : index
    %c0_13 = arith.constant 0 : index
    %22 = vector.load %arg4[%c256, %c0_13] : memref<1536x128xbf16, #tpu.memory_space<vmem>>, vector<128x128xbf16>
    %cst_14 = arith.constant dense<0.000000e+00> : vector<8x128xf32>
    %23 = tpu.matmul %21, %22, %cst_14 {dimension_numbers = #tpu.dot_dimension_numbers<[1], [0], [0], [1], [0, 0, 1, 1], [], []>} : vector<8x128xbf16>, vector<128x128xbf16>, vector<8x128xf32> -> vector<8x128xf32>
    %24 = arith.addf %19, %23 : vector<8x128xf32>
    %c0_15 = arith.constant 0 : index
    %c0_16 = arith.constant 0 : index
    %25 = vector.load %arg3[%c0_15, %c0_16] : memref<32x29xf32, #tpu.memory_space<vmem>>, vector<8x1xf32>
    %26 = vector.broadcast %25 : vector<8x1xf32> to vector<8x128xf32>
    %27 = arith.addf %24, %26 : vector<8x128xf32>
    %c32 = arith.constant 32 : index
    %c0_17 = arith.constant 0 : index
    %28 = vector.load %arg2[%c32, %c0_17] : memref<864x16xbf16, #tpu.memory_space<vmem>>, vector<24x8xbf16>
    %29 = arith.truncf %27 : vector<8x128xf32> to vector<8x128xbf16>
    %cst_18 = arith.constant dense<0.000000e+00> : vector<24x128xf32>
    %30 = tpu.matmul %28, %29, %cst_18 {dimension_numbers = #tpu.dot_dimension_numbers<[1], [0], [0], [1], [0, 0, 1, 1], [], []>} : vector<24x8xbf16>, vector<8x128xbf16>, vector<24x128xf32> -> vector<24x128xf32>
    %31 = vector.extract_strided_slice %30 {offsets = [8, 0], sizes = [8, 128], strides = [1, 1]} : vector<24x128xf32> to vector<8x128xf32>
    %32 = vector.extract_strided_slice %30 {offsets = [0, 0], sizes = [8, 128], strides = [1, 1]} : vector<24x128xf32> to vector<8x128xf32>
    %33 = arith.truncf %32 : vector<8x128xf32> to vector<8x128xbf16>
    %c128_19 = arith.constant 128 : index
    %c0_20 = arith.constant 0 : index
    %34 = vector.load %arg4[%c128_19, %c0_20] : memref<1536x128xbf16, #tpu.memory_space<vmem>>, vector<128x128xbf16>
    %cst_21 = arith.constant dense<0.000000e+00> : vector<8x128xf32>
    %35 = tpu.matmul %33, %34, %cst_21 {dimension_numbers = #tpu.dot_dimension_numbers<[1], [0], [0], [1], [0, 0, 1, 1], [], []>} : vector<8x128xbf16>, vector<128x128xbf16>, vector<8x128xf32> -> vector<8x128xf32>
    %36 = arith.addf %31, %35 : vector<8x128xf32>
    %37 = vector.extract_strided_slice %30 {offsets = [16, 0], sizes = [8, 128], strides = [1, 1]} : vector<24x128xf32> to vector<8x128xf32>
    %38 = arith.truncf %37 : vector<8x128xf32> to vector<8x128xbf16>
    %c256_22 = arith.constant 256 : index
    %c0_23 = arith.constant 0 : index
    %39 = vector.load %arg4[%c256_22, %c0_23] : memref<1536x128xbf16, #tpu.memory_space<vmem>>, vector<128x128xbf16>
    %cst_24 = arith.constant dense<0.000000e+00> : vector<8x128xf32>
    %40 = tpu.matmul %38, %39, %cst_24 {dimension_numbers = #tpu.dot_dimension_numbers<[1], [0], [0], [1], [0, 0, 1, 1], [], []>} : vector<8x128xbf16>, vector<128x128xbf16>, vector<8x128xf32> -> vector<8x128xf32>
    %41 = arith.addf %36, %40 : vector<8x128xf32>
    %c0_25 = arith.constant 0 : index
    %c1_26 = arith.constant 1 : index
    %42 = vector.load %arg3[%c0_25, %c1_26] : memref<32x29xf32, #tpu.memory_space<vmem>>, vector<8x1xf32>
    %43 = vector.broadcast %42 : vector<8x1xf32> to vector<8x128xf32>
    %44 = arith.addf %41, %43 : vector<8x128xf32>
    %cst_27 = arith.constant 0.00999999977 : f32
    %45 = vector.broadcast %cst_27 : f32 to vector<8x128xf32>
    %46 = arith.mulf %45, %44 : vector<8x128xf32>
    %47 = arith.maximumf %44, %46 : vector<8x128xf32>
    %c64_28 = arith.constant 64 : index
    %c0_29 = arith.constant 0 : index
    %48 = vector.load %arg2[%c64_28, %c0_29] : memref<864x16xbf16, #tpu.memory_space<vmem>>, vector<24x8xbf16>
    %49 = arith.truncf %47 : vector<8x128xf32> to vector<8x128xbf16>
    %cst_30 = arith.constant dense<0.000000e+00> : vector<24x128xf32>
    %50 = tpu.matmul %48, %49, %cst_30 {dimension_numbers = #tpu.dot_dimension_numbers<[1], [0], [0], [1], [0, 0, 1, 1], [], []>} : vector<24x8xbf16>, vector<8x128xbf16>, vector<24x128xf32> -> vector<24x128xf32>
    %51 = vector.extract_strided_slice %50 {offsets = [8, 0], sizes = [8, 128], strides = [1, 1]} : vector<24x128xf32> to vector<8x128xf32>
    %52 = vector.extract_strided_slice %50 {offsets = [0, 0], sizes = [8, 128], strides = [1, 1]} : vector<24x128xf32> to vector<8x128xf32>
    %53 = arith.truncf %52 : vector<8x128xf32> to vector<8x128xbf16>
    %c128_31 = arith.constant 128 : index
    %c0_32 = arith.constant 0 : index
    %54 = vector.load %arg4[%c128_31, %c0_32] : memref<1536x128xbf16, #tpu.memory_space<vmem>>, vector<128x128xbf16>
    %cst_33 = arith.constant dense<0.000000e+00> : vector<8x128xf32>
    %55 = tpu.matmul %53, %54, %cst_33 {dimension_numbers = #tpu.dot_dimension_numbers<[1], [0], [0], [1], [0, 0, 1, 1], [], []>} : vector<8x128xbf16>, vector<128x128xbf16>, vector<8x128xf32> -> vector<8x128xf32>
    %56 = arith.addf %51, %55 : vector<8x128xf32>
    %57 = vector.extract_strided_slice %50 {offsets = [16, 0], sizes = [8, 128], strides = [1, 1]} : vector<24x128xf32> to vector<8x128xf32>
    %58 = arith.truncf %57 : vector<8x128xf32> to vector<8x128xbf16>
    %c256_34 = arith.constant 256 : index
    %c0_35 = arith.constant 0 : index
    %59 = vector.load %arg4[%c256_34, %c0_35] : memref<1536x128xbf16, #tpu.memory_space<vmem>>, vector<128x128xbf16>
    %cst_36 = arith.constant dense<0.000000e+00> : vector<8x128xf32>
    %60 = tpu.matmul %58, %59, %cst_36 {dimension_numbers = #tpu.dot_dimension_numbers<[1], [0], [0], [1], [0, 0, 1, 1], [], []>} : vector<8x128xbf16>, vector<128x128xbf16>, vector<8x128xf32> -> vector<8x128xf32>
    %61 = arith.addf %56, %60 : vector<8x128xf32>
    %c0_37 = arith.constant 0 : index
    %c2 = arith.constant 2 : index
    %62 = vector.load %arg3[%c0_37, %c2] : memref<32x29xf32, #tpu.memory_space<vmem>>, vector<8x1xf32>
    %63 = vector.broadcast %62 : vector<8x1xf32> to vector<8x128xf32>
    %64 = arith.addf %61, %63 : vector<8x128xf32>
    %65 = arith.addf %64, %27 : vector<8x128xf32>
    %cst_38 = arith.constant 0.00999999977 : f32
    %66 = vector.broadcast %cst_38 : f32 to vector<8x128xf32>
    %67 = arith.mulf %66, %65 : vector<8x128xf32>
    %68 = arith.maximumf %65, %67 : vector<8x128xf32>
    %69 = arith.truncf %68 : vector<8x128xf32> to vector<8x128xbf16>
    %c672 = arith.constant 672 : index
    %c0_39 = arith.constant 0 : index
    %70 = vector.load %arg4[%c672, %c0_39] : memref<1536x128xbf16, #tpu.memory_space<vmem>>, vector<128x64xbf16>
    %cst_40 = arith.constant dense<0.000000e+00> : vector<8x64xf32>
    %71 = tpu.matmul %69, %70, %cst_40 {dimension_numbers = #tpu.dot_dimension_numbers<[1], [0], [0], [1], [0, 0, 1, 1], [], []>} : vector<8x128xbf16>, vector<128x64xbf16>, vector<8x64xf32> -> vector<8x64xf32>
    %c800 = arith.constant 800 : index
    %c0_41 = arith.constant 0 : index
    %72 = vector.load %arg4[%c800, %c0_41] : memref<1536x128xbf16, #tpu.memory_space<vmem>>, vector<128x64xbf16>
    %cst_42 = arith.constant dense<0.000000e+00> : vector<8x64xf32>
    %73 = tpu.matmul %69, %72, %cst_42 {dimension_numbers = #tpu.dot_dimension_numbers<[1], [0], [0], [1], [0, 0, 1, 1], [], []>} : vector<8x128xbf16>, vector<128x64xbf16>, vector<8x64xf32> -> vector<8x64xf32>
    %74 = arith.maximumf %71, %73 : vector<8x64xf32>
    %c96 = arith.constant 96 : index
    %c0_43 = arith.constant 0 : index
    %75 = vector.load %arg2[%c96, %c0_43] : memref<864x16xbf16, #tpu.memory_space<vmem>>, vector<24x8xbf16>
    %76 = arith.truncf %74 : vector<8x64xf32> to vector<8x64xbf16>
    %cst_44 = arith.constant dense<0.000000e+00> : vector<24x64xf32>
    %77 = tpu.matmul %75, %76, %cst_44 {dimension_numbers = #tpu.dot_dimension_numbers<[1], [0], [0], [1], [0, 0, 1, 1], [], []>} : vector<24x8xbf16>, vector<8x64xbf16>, vector<24x64xf32> -> vector<24x64xf32>
    %78 = vector.extract_strided_slice %77 {offsets = [8, 0], sizes = [8, 64], strides = [1, 1]} : vector<24x64xf32> to vector<8x64xf32>
    %79 = vector.extract_strided_slice %77 {offsets = [0, 0], sizes = [8, 64], strides = [1, 1]} : vector<24x64xf32> to vector<8x64xf32>
    %80 = arith.truncf %79 : vector<8x64xf32> to vector<8x64xbf16>
    %c384 = arith.constant 384 : index
    %c0_45 = arith.constant 0 : index
    %81 = vector.load %arg4[%c384, %c0_45] : memref<1536x128xbf16, #tpu.memory_space<vmem>>, vector<64x64xbf16>
    %cst_46 = arith.constant dense<0.000000e+00> : vector<8x64xf32>
    %82 = tpu.matmul %80, %81, %cst_46 {dimension_numbers = #tpu.dot_dimension_numbers<[1], [0], [0], [1], [0, 0, 1, 1], [], []>} : vector<8x64xbf16>, vector<64x64xbf16>, vector<8x64xf32> -> vector<8x64xf32>
    %83 = arith.addf %78, %82 : vector<8x64xf32>
    %84 = vector.extract_strided_slice %77 {offsets = [16, 0], sizes = [8, 64], strides = [1, 1]} : vector<24x64xf32> to vector<8x64xf32>
    %85 = arith.truncf %84 : vector<8x64xf32> to vector<8x64xbf16>
    %c448 = arith.constant 448 : index
    %c0_47 = arith.constant 0 : index
    %86 = vector.load %arg4[%c448, %c0_47] : memref<1536x128xbf16, #tpu.memory_space<vmem>>, vector<64x64xbf16>
    %cst_48 = arith.constant dense<0.000000e+00> : vector<8x64xf32>
    %87 = tpu.matmul %85, %86, %cst_48 {dimension_numbers = #tpu.dot_dimension_numbers<[1], [0], [0], [1], [0, 0, 1, 1], [], []>} : vector<8x64xbf16>, vector<64x64xbf16>, vector<8x64xf32> -> vector<8x64xf32>
    %88 = arith.addf %83, %87 : vector<8x64xf32>
    %c0_49 = arith.constant 0 : index
    %c3 = arith.constant 3 : index
    %89 = vector.load %arg3[%c0_49, %c3] : memref<32x29xf32, #tpu.memory_space<vmem>>, vector<8x1xf32>
    %90 = vector.broadcast %89 : vector<8x1xf32> to vector<8x64xf32>
    %91 = arith.addf %88, %90 : vector<8x64xf32>
    %cst_50 = arith.constant 0.00999999977 : f32
    %92 = vector.broadcast %cst_50 : f32 to vector<8x64xf32>
    %93 = arith.mulf %92, %91 : vector<8x64xf32>
    %94 = arith.maximumf %91, %93 : vector<8x64xf32>
    %c128_51 = arith.constant 128 : index
    %c0_52 = arith.constant 0 : index
    %95 = vector.load %arg2[%c128_51, %c0_52] : memref<864x16xbf16, #tpu.memory_space<vmem>>, vector<24x8xbf16>
    %96 = arith.truncf %94 : vector<8x64xf32> to vector<8x64xbf16>
    %cst_53 = arith.constant dense<0.000000e+00> : vector<24x64xf32>
    %97 = tpu.matmul %95, %96, %cst_53 {dimension_numbers = #tpu.dot_dimension_numbers<[1], [0], [0], [1], [0, 0, 1, 1], [], []>} : vector<24x8xbf16>, vector<8x64xbf16>, vector<24x64xf32> -> vector<24x64xf32>
    %98 = vector.extract_strided_slice %97 {offsets = [8, 0], sizes = [8, 64], strides = [1, 1]} : vector<24x64xf32> to vector<8x64xf32>
    %99 = vector.extract_strided_slice %97 {offsets = [0, 0], sizes = [8, 64], strides = [1, 1]} : vector<24x64xf32> to vector<8x64xf32>
    %100 = arith.truncf %99 : vector<8x64xf32> to vector<8x64xbf16>
    %c384_54 = arith.constant 384 : index
    %c0_55 = arith.constant 0 : index
    %101 = vector.load %arg4[%c384_54, %c0_55] : memref<1536x128xbf16, #tpu.memory_space<vmem>>, vector<64x64xbf16>
    %cst_56 = arith.constant dense<0.000000e+00> : vector<8x64xf32>
    %102 = tpu.matmul %100, %101, %cst_56 {dimension_numbers = #tpu.dot_dimension_numbers<[1], [0], [0], [1], [0, 0, 1, 1], [], []>} : vector<8x64xbf16>, vector<64x64xbf16>, vector<8x64xf32> -> vector<8x64xf32>
    %103 = arith.addf %98, %102 : vector<8x64xf32>
    %104 = vector.extract_strided_slice %97 {offsets = [16, 0], sizes = [8, 64], strides = [1, 1]} : vector<24x64xf32> to vector<8x64xf32>
    %105 = arith.truncf %104 : vector<8x64xf32> to vector<8x64xbf16>
    %c448_57 = arith.constant 448 : index
    %c0_58 = arith.constant 0 : index
    %106 = vector.load %arg4[%c448_57, %c0_58] : memref<1536x128xbf16, #tpu.memory_space<vmem>>, vector<64x64xbf16>
    %cst_59 = arith.constant dense<0.000000e+00> : vector<8x64xf32>
    %107 = tpu.matmul %105, %106, %cst_59 {dimension_numbers = #tpu.dot_dimension_numbers<[1], [0], [0], [1], [0, 0, 1, 1], [], []>} : vector<8x64xbf16>, vector<64x64xbf16>, vector<8x64xf32> -> vector<8x64xf32>
    %108 = arith.addf %103, %107 : vector<8x64xf32>
    %c0_60 = arith.constant 0 : index
    %c4 = arith.constant 4 : index
    %109 = vector.load %arg3[%c0_60, %c4] : memref<32x29xf32, #tpu.memory_space<vmem>>, vector<8x1xf32>
    %110 = vector.broadcast %109 : vector<8x1xf32> to vector<8x64xf32>
    %111 = arith.addf %108, %110 : vector<8x64xf32>
    %112 = arith.addf %111, %74 : vector<8x64xf32>
    %cst_61 = arith.constant 0.00999999977 : f32
    %113 = vector.broadcast %cst_61 : f32 to vector<8x64xf32>
    %114 = arith.mulf %113, %112 : vector<8x64xf32>
    %115 = arith.maximumf %112, %114 : vector<8x64xf32>
    %116 = arith.truncf %115 : vector<8x64xf32> to vector<8x64xbf16>
    %c928 = arith.constant 928 : index
    %c0_62 = arith.constant 0 : index
    %117 = vector.load %arg4[%c928, %c0_62] : memref<1536x128xbf16, #tpu.memory_space<vmem>>, vector<64x32xbf16>
    %cst_63 = arith.constant dense<0.000000e+00> : vector<8x32xf32>
    %118 = tpu.matmul %116, %117, %cst_63 {dimension_numbers = #tpu.dot_dimension_numbers<[1], [0], [0], [1], [0, 0, 1, 1], [], []>} : vector<8x64xbf16>, vector<64x32xbf16>, vector<8x32xf32> -> vector<8x32xf32>
    %c992 = arith.constant 992 : index
    %c0_64 = arith.constant 0 : index
    %119 = vector.load %arg4[%c992, %c0_64] : memref<1536x128xbf16, #tpu.memory_space<vmem>>, vector<64x32xbf16>
    %cst_65 = arith.constant dense<0.000000e+00> : vector<8x32xf32>
    %120 = tpu.matmul %116, %119, %cst_65 {dimension_numbers = #tpu.dot_dimension_numbers<[1], [0], [0], [1], [0, 0, 1, 1], [], []>} : vector<8x64xbf16>, vector<64x32xbf16>, vector<8x32xf32> -> vector<8x32xf32>
    %121 = arith.maximumf %118, %120 : vector<8x32xf32>
    %c160 = arith.constant 160 : index
    %c0_66 = arith.constant 0 : index
    %122 = vector.load %arg2[%c160, %c0_66] : memref<864x16xbf16, #tpu.memory_space<vmem>>, vector<24x8xbf16>
    %123 = arith.truncf %121 : vector<8x32xf32> to vector<8x32xbf16>
    %cst_67 = arith.constant dense<0.000000e+00> : vector<24x32xf32>
    %124 = tpu.matmul %122, %123, %cst_67 {dimension_numbers = #tpu.dot_dimension_numbers<[1], [0], [0], [1], [0, 0, 1, 1], [], []>} : vector<24x8xbf16>, vector<8x32xbf16>, vector<24x32xf32> -> vector<24x32xf32>
    %125 = vector.extract_strided_slice %124 {offsets = [8, 0], sizes = [8, 32], strides = [1, 1]} : vector<24x32xf32> to vector<8x32xf32>
    %126 = vector.extract_strided_slice %124 {offsets = [0, 0], sizes = [8, 32], strides = [1, 1]} : vector<24x32xf32> to vector<8x32xf32>
    %127 = arith.truncf %126 : vector<8x32xf32> to vector<8x32xbf16>
    %c512 = arith.constant 512 : index
    %c0_68 = arith.constant 0 : index
    %128 = vector.load %arg4[%c512, %c0_68] : memref<1536x128xbf16, #tpu.memory_space<vmem>>, vector<32x32xbf16>
    %cst_69 = arith.constant dense<0.000000e+00> : vector<8x32xf32>
    %129 = tpu.matmul %127, %128, %cst_69 {dimension_numbers = #tpu.dot_dimension_numbers<[1], [0], [0], [1], [0, 0, 1, 1], [], []>} : vector<8x32xbf16>, vector<32x32xbf16>, vector<8x32xf32> -> vector<8x32xf32>
    %130 = arith.addf %125, %129 : vector<8x32xf32>
    %131 = vector.extract_strided_slice %124 {offsets = [16, 0], sizes = [8, 32], strides = [1, 1]} : vector<24x32xf32> to vector<8x32xf32>
    %132 = arith.truncf %131 : vector<8x32xf32> to vector<8x32xbf16>
    %c544 = arith.constant 544 : index
    %c0_70 = arith.constant 0 : index
    %133 = vector.load %arg4[%c544, %c0_70] : memref<1536x128xbf16, #tpu.memory_space<vmem>>, vector<32x32xbf16>
    %cst_71 = arith.constant dense<0.000000e+00> : vector<8x32xf32>
    %134 = tpu.matmul %132, %133, %cst_71 {dimension_numbers = #tpu.dot_dimension_numbers<[1], [0], [0], [1], [0, 0, 1, 1], [], []>} : vector<8x32xbf16>, vector<32x32xbf16>, vector<8x32xf32> -> vector<8x32xf32>
    %135 = arith.addf %130, %134 : vector<8x32xf32>
    %c0_72 = arith.constant 0 : index
    %c5 = arith.constant 5 : index
    %136 = vector.load %arg3[%c0_72, %c5] : memref<32x29xf32, #tpu.memory_space<vmem>>, vector<8x1xf32>
    %137 = vector.broadcast %136 : vector<8x1xf32> to vector<8x32xf32>
    %138 = arith.addf %135, %137 : vector<8x32xf32>
    %cst_73 = arith.constant 0.00999999977 : f32
    %139 = vector.broadcast %cst_73 : f32 to vector<8x32xf32>
    %140 = arith.mulf %139, %138 : vector<8x32xf32>
    %141 = arith.maximumf %138, %140 : vector<8x32xf32>
    %c192 = arith.constant 192 : index
    %c0_74 = arith.constant 0 : index
    %142 = vector.load %arg2[%c192, %c0_74] : memref<864x16xbf16, #tpu.memory_space<vmem>>, vector<24x8xbf16>
    %143 = arith.truncf %141 : vector<8x32xf32> to vector<8x32xbf16>
    %cst_75 = arith.constant dense<0.000000e+00> : vector<24x32xf32>
    %144 = tpu.matmul %142, %143, %cst_75 {dimension_numbers = #tpu.dot_dimension_numbers<[1], [0], [0], [1], [0, 0, 1, 1], [], []>} : vector<24x8xbf16>, vector<8x32xbf16>, vector<24x32xf32> -> vector<24x32xf32>
    %145 = vector.extract_strided_slice %144 {offsets = [8, 0], sizes = [8, 32], strides = [1, 1]} : vector<24x32xf32> to vector<8x32xf32>
    %146 = vector.extract_strided_slice %144 {offsets = [0, 0], sizes = [8, 32], strides = [1, 1]} : vector<24x32xf32> to vector<8x32xf32>
    %147 = arith.truncf %146 : vector<8x32xf32> to vector<8x32xbf16>
    %c512_76 = arith.constant 512 : index
    %c0_77 = arith.constant 0 : index
    %148 = vector.load %arg4[%c512_76, %c0_77] : memref<1536x128xbf16, #tpu.memory_space<vmem>>, vector<32x32xbf16>
    %cst_78 = arith.constant dense<0.000000e+00> : vector<8x32xf32>
    %149 = tpu.matmul %147, %148, %cst_78 {dimension_numbers = #tpu.dot_dimension_numbers<[1], [0], [0], [1], [0, 0, 1, 1], [], []>} : vector<8x32xbf16>, vector<32x32xbf16>, vector<8x32xf32> -> vector<8x32xf32>
    %150 = arith.addf %145, %149 : vector<8x32xf32>
    %151 = vector.extract_strided_slice %144 {offsets = [16, 0], sizes = [8, 32], strides = [1, 1]} : vector<24x32xf32> to vector<8x32xf32>
    %152 = arith.truncf %151 : vector<8x32xf32> to vector<8x32xbf16>
    %c544_79 = arith.constant 544 : index
    %c0_80 = arith.constant 0 : index
    %153 = vector.load %arg4[%c544_79, %c0_80] : memref<1536x128xbf16, #tpu.memory_space<vmem>>, vector<32x32xbf16>
    %cst_81 = arith.constant dense<0.000000e+00> : vector<8x32xf32>
    %154 = tpu.matmul %152, %153, %cst_81 {dimension_numbers = #tpu.dot_dimension_numbers<[1], [0], [0], [1], [0, 0, 1, 1], [], []>} : vector<8x32xbf16>, vector<32x32xbf16>, vector<8x32xf32> -> vector<8x32xf32>
    %155 = arith.addf %150, %154 : vector<8x32xf32>
    %c0_82 = arith.constant 0 : index
    %c6 = arith.constant 6 : index
    %156 = vector.load %arg3[%c0_82, %c6] : memref<32x29xf32, #tpu.memory_space<vmem>>, vector<8x1xf32>
    %157 = vector.broadcast %156 : vector<8x1xf32> to vector<8x32xf32>
    %158 = arith.addf %155, %157 : vector<8x32xf32>
    %159 = arith.addf %158, %121 : vector<8x32xf32>
    %cst_83 = arith.constant 0.00999999977 : f32
    %160 = vector.broadcast %cst_83 : f32 to vector<8x32xf32>
    %161 = arith.mulf %160, %159 : vector<8x32xf32>
    %162 = arith.maximumf %159, %161 : vector<8x32xf32>
    %163 = arith.truncf %162 : vector<8x32xf32> to vector<8x32xbf16>
    %c1056 = arith.constant 1056 : index
    %c0_84 = arith.constant 0 : index
    %164 = vector.load %arg4[%c1056, %c0_84] : memref<1536x128xbf16, #tpu.memory_space<vmem>>, vector<32x16xbf16>
    %cst_85 = arith.constant dense<0.000000e+00> : vector<8x16xf32>
    %165 = tpu.matmul %163, %164, %cst_85 {dimension_numbers = #tpu.dot_dimension_numbers<[1], [0], [0], [1], [0, 0, 1, 1], [], []>} : vector<8x32xbf16>, vector<32x16xbf16>, vector<8x16xf32> -> vector<8x16xf32>
    %c1088 = arith.constant 1088 : index
    %c0_86 = arith.constant 0 : index
    %166 = vector.load %arg4[%c1088, %c0_86] : memref<1536x128xbf16, #tpu.memory_space<vmem>>, vector<32x16xbf16>
    %cst_87 = arith.constant dense<0.000000e+00> : vector<8x16xf32>
    %167 = tpu.matmul %163, %166, %cst_87 {dimension_numbers = #tpu.dot_dimension_numbers<[1], [0], [0], [1], [0, 0, 1, 1], [], []>} : vector<8x32xbf16>, vector<32x16xbf16>, vector<8x16xf32> -> vector<8x16xf32>
    %168 = arith.maximumf %165, %167 : vector<8x16xf32>
    %c224 = arith.constant 224 : index
    %c0_88 = arith.constant 0 : index
    %169 = vector.load %arg2[%c224, %c0_88] : memref<864x16xbf16, #tpu.memory_space<vmem>>, vector<24x8xbf16>
    %170 = arith.truncf %168 : vector<8x16xf32> to vector<8x16xbf16>
    %cst_89 = arith.constant dense<0.000000e+00> : vector<24x16xf32>
    %171 = tpu.matmul %169, %170, %cst_89 {dimension_numbers = #tpu.dot_dimension_numbers<[1], [0], [0], [1], [0, 0, 1, 1], [], []>} : vector<24x8xbf16>, vector<8x16xbf16>, vector<24x16xf32> -> vector<24x16xf32>
    %172 = vector.extract_strided_slice %171 {offsets = [8, 0], sizes = [8, 16], strides = [1, 1]} : vector<24x16xf32> to vector<8x16xf32>
    %173 = vector.extract_strided_slice %171 {offsets = [0, 0], sizes = [8, 16], strides = [1, 1]} : vector<24x16xf32> to vector<8x16xf32>
    %174 = arith.truncf %173 : vector<8x16xf32> to vector<8x16xbf16>
    %c576 = arith.constant 576 : index
    %c0_90 = arith.constant 0 : index
    %175 = vector.load %arg4[%c576, %c0_90] : memref<1536x128xbf16, #tpu.memory_space<vmem>>, vector<16x16xbf16>
    %cst_91 = arith.constant dense<0.000000e+00> : vector<8x16xf32>
    %176 = tpu.matmul %174, %175, %cst_91 {dimension_numbers = #tpu.dot_dimension_numbers<[1], [0], [0], [1], [0, 0, 1, 1], [], []>} : vector<8x16xbf16>, vector<16x16xbf16>, vector<8x16xf32> -> vector<8x16xf32>
    %177 = arith.addf %172, %176 : vector<8x16xf32>
    %178 = vector.extract_strided_slice %171 {offsets = [16, 0], sizes = [8, 16], strides = [1, 1]} : vector<24x16xf32> to vector<8x16xf32>
    %179 = arith.truncf %178 : vector<8x16xf32> to vector<8x16xbf16>
    %c592 = arith.constant 592 : index
    %c0_92 = arith.constant 0 : index
    %180 = vector.load %arg4[%c592, %c0_92] : memref<1536x128xbf16, #tpu.memory_space<vmem>>, vector<16x16xbf16>
    %cst_93 = arith.constant dense<0.000000e+00> : vector<8x16xf32>
    %181 = tpu.matmul %179, %180, %cst_93 {dimension_numbers = #tpu.dot_dimension_numbers<[1], [0], [0], [1], [0, 0, 1, 1], [], []>} : vector<8x16xbf16>, vector<16x16xbf16>, vector<8x16xf32> -> vector<8x16xf32>
    %182 = arith.addf %177, %181 : vector<8x16xf32>
    %c0_94 = arith.constant 0 : index
    %c7 = arith.constant 7 : index
    %183 = vector.load %arg3[%c0_94, %c7] : memref<32x29xf32, #tpu.memory_space<vmem>>, vector<8x1xf32>
    %184 = vector.broadcast %183 : vector<8x1xf32> to vector<8x16xf32>
    %185 = arith.addf %182, %184 : vector<8x16xf32>
    %cst_95 = arith.constant 0.00999999977 : f32
    %186 = vector.broadcast %cst_95 : f32 to vector<8x16xf32>
    %187 = arith.mulf %186, %185 : vector<8x16xf32>
    %188 = arith.maximumf %185, %187 : vector<8x16xf32>
    %c256_96 = arith.constant 256 : index
    %c0_97 = arith.constant 0 : index
    %189 = vector.load %arg2[%c256_96, %c0_97] : memref<864x16xbf16, #tpu.memory_space<vmem>>, vector<24x8xbf16>
    %190 = arith.truncf %188 : vector<8x16xf32> to vector<8x16xbf16>
    %cst_98 = arith.constant dense<0.000000e+00> : vector<24x16xf32>
    %191 = tpu.matmul %189, %190, %cst_98 {dimension_numbers = #tpu.dot_dimension_numbers<[1], [0], [0], [1], [0, 0, 1, 1], [], []>} : vector<24x8xbf16>, vector<8x16xbf16>, vector<24x16xf32> -> vector<24x16xf32>
    %192 = vector.extract_strided_slice %191 {offsets = [8, 0], sizes = [8, 16], strides = [1, 1]} : vector<24x16xf32> to vector<8x16xf32>
    %193 = vector.extract_strided_slice %191 {offsets = [0, 0], sizes = [8, 16], strides = [1, 1]} : vector<24x16xf32> to vector<8x16xf32>
    %194 = arith.truncf %193 : vector<8x16xf32> to vector<8x16xbf16>
    %c576_99 = arith.constant 576 : index
    %c0_100 = arith.constant 0 : index
    %195 = vector.load %arg4[%c576_99, %c0_100] : memref<1536x128xbf16, #tpu.memory_space<vmem>>, vector<16x16xbf16>
    %cst_101 = arith.constant dense<0.000000e+00> : vector<8x16xf32>
    %196 = tpu.matmul %194, %195, %cst_101 {dimension_numbers = #tpu.dot_dimension_numbers<[1], [0], [0], [1], [0, 0, 1, 1], [], []>} : vector<8x16xbf16>, vector<16x16xbf16>, vector<8x16xf32> -> vector<8x16xf32>
    %197 = arith.addf %192, %196 : vector<8x16xf32>
    %198 = vector.extract_strided_slice %191 {offsets = [16, 0], sizes = [8, 16], strides = [1, 1]} : vector<24x16xf32> to vector<8x16xf32>
    %199 = arith.truncf %198 : vector<8x16xf32> to vector<8x16xbf16>
    %c592_102 = arith.constant 592 : index
    %c0_103 = arith.constant 0 : index
    %200 = vector.load %arg4[%c592_102, %c0_103] : memref<1536x128xbf16, #tpu.memory_space<vmem>>, vector<16x16xbf16>
    %cst_104 = arith.constant dense<0.000000e+00> : vector<8x16xf32>
    %201 = tpu.matmul %199, %200, %cst_104 {dimension_numbers = #tpu.dot_dimension_numbers<[1], [0], [0], [1], [0, 0, 1, 1], [], []>} : vector<8x16xbf16>, vector<16x16xbf16>, vector<8x16xf32> -> vector<8x16xf32>
    %202 = arith.addf %197, %201 : vector<8x16xf32>
    %c0_105 = arith.constant 0 : index
    %c8 = arith.constant 8 : index
    %203 = vector.load %arg3[%c0_105, %c8] : memref<32x29xf32, #tpu.memory_space<vmem>>, vector<8x1xf32>
    %204 = vector.broadcast %203 : vector<8x1xf32> to vector<8x16xf32>
    %205 = arith.addf %202, %204 : vector<8x16xf32>
    %206 = arith.addf %205, %168 : vector<8x16xf32>
    %cst_106 = arith.constant 0.00999999977 : f32
    %207 = vector.broadcast %cst_106 : f32 to vector<8x16xf32>
    %208 = arith.mulf %207, %206 : vector<8x16xf32>
    %209 = arith.maximumf %206, %208 : vector<8x16xf32>
    %210 = arith.truncf %209 : vector<8x16xf32> to vector<8x16xbf16>
    %c1120 = arith.constant 1120 : index
    %c0_107 = arith.constant 0 : index
    %211 = vector.load %arg4[%c1120, %c0_107] : memref<1536x128xbf16, #tpu.memory_space<vmem>>, vector<16x8xbf16>
    %cst_108 = arith.constant dense<0.000000e+00> : vector<8x8xf32>
    %212 = tpu.matmul %210, %211, %cst_108 {dimension_numbers = #tpu.dot_dimension_numbers<[1], [0], [0], [1], [0, 0, 1, 1], [], []>} : vector<8x16xbf16>, vector<16x8xbf16>, vector<8x8xf32> -> vector<8x8xf32>
    %c1136 = arith.constant 1136 : index
    %c0_109 = arith.constant 0 : index
    %213 = vector.load %arg4[%c1136, %c0_109] : memref<1536x128xbf16, #tpu.memory_space<vmem>>, vector<16x8xbf16>
    %cst_110 = arith.constant dense<0.000000e+00> : vector<8x8xf32>
    %214 = tpu.matmul %210, %213, %cst_110 {dimension_numbers = #tpu.dot_dimension_numbers<[1], [0], [0], [1], [0, 0, 1, 1], [], []>} : vector<8x16xbf16>, vector<16x8xbf16>, vector<8x8xf32> -> vector<8x8xf32>
    %215 = arith.maximumf %212, %214 : vector<8x8xf32>
    %c288 = arith.constant 288 : index
    %c0_111 = arith.constant 0 : index
    %216 = vector.load %arg2[%c288, %c0_111] : memref<864x16xbf16, #tpu.memory_space<vmem>>, vector<24x8xbf16>
    %217 = arith.truncf %215 : vector<8x8xf32> to vector<8x8xbf16>
    %cst_112 = arith.constant dense<0.000000e+00> : vector<24x8xf32>
    %218 = tpu.matmul %216, %217, %cst_112 {dimension_numbers = #tpu.dot_dimension_numbers<[1], [0], [0], [1], [0, 0, 1, 1], [], []>} : vector<24x8xbf16>, vector<8x8xbf16>, vector<24x8xf32> -> vector<24x8xf32>
    %219 = vector.extract_strided_slice %218 {offsets = [8, 0], sizes = [8, 8], strides = [1, 1]} : vector<24x8xf32> to vector<8x8xf32>
    %220 = vector.extract_strided_slice %218 {offsets = [0, 0], sizes = [8, 8], strides = [1, 1]} : vector<24x8xf32> to vector<8x8xf32>
    %221 = arith.truncf %220 : vector<8x8xf32> to vector<8x8xbf16>
    %c608 = arith.constant 608 : index
    %c0_113 = arith.constant 0 : index
    %222 = vector.load %arg4[%c608, %c0_113] : memref<1536x128xbf16, #tpu.memory_space<vmem>>, vector<8x8xbf16>
    %cst_114 = arith.constant dense<0.000000e+00> : vector<8x8xf32>
    %223 = tpu.matmul %221, %222, %cst_114 {dimension_numbers = #tpu.dot_dimension_numbers<[1], [0], [0], [1], [0, 0, 1, 1], [], []>} : vector<8x8xbf16>, vector<8x8xbf16>, vector<8x8xf32> -> vector<8x8xf32>
    %224 = arith.addf %219, %223 : vector<8x8xf32>
    %225 = vector.extract_strided_slice %218 {offsets = [16, 0], sizes = [8, 8], strides = [1, 1]} : vector<24x8xf32> to vector<8x8xf32>
    %226 = arith.truncf %225 : vector<8x8xf32> to vector<8x8xbf16>
    %c624 = arith.constant 624 : index
    %c0_115 = arith.constant 0 : index
    %227 = vector.load %arg4[%c624, %c0_115] : memref<1536x128xbf16, #tpu.memory_space<vmem>>, vector<8x8xbf16>
    %cst_116 = arith.constant dense<0.000000e+00> : vector<8x8xf32>
    %228 = tpu.matmul %226, %227, %cst_116 {dimension_numbers = #tpu.dot_dimension_numbers<[1], [0], [0], [1], [0, 0, 1, 1], [], []>} : vector<8x8xbf16>, vector<8x8xbf16>, vector<8x8xf32> -> vector<8x8xf32>
    %229 = arith.addf %224, %228 : vector<8x8xf32>
    %c0_117 = arith.constant 0 : index
    %c9 = arith.constant 9 : index
    %230 = vector.load %arg3[%c0_117, %c9] : memref<32x29xf32, #tpu.memory_space<vmem>>, vector<8x1xf32>
    %231 = vector.broadcast %230 : vector<8x1xf32> to vector<8x8xf32>
    %232 = arith.addf %229, %231 : vector<8x8xf32>
    %cst_118 = arith.constant 0.00999999977 : f32
    %233 = vector.broadcast %cst_118 : f32 to vector<8x8xf32>
    %234 = arith.mulf %233, %232 : vector<8x8xf32>
    %235 = arith.maximumf %232, %234 : vector<8x8xf32>
    %c320 = arith.constant 320 : index
    %c0_119 = arith.constant 0 : index
    %236 = vector.load %arg2[%c320, %c0_119] : memref<864x16xbf16, #tpu.memory_space<vmem>>, vector<24x8xbf16>
    %237 = arith.truncf %235 : vector<8x8xf32> to vector<8x8xbf16>
    %cst_120 = arith.constant dense<0.000000e+00> : vector<24x8xf32>
    %238 = tpu.matmul %236, %237, %cst_120 {dimension_numbers = #tpu.dot_dimension_numbers<[1], [0], [0], [1], [0, 0, 1, 1], [], []>} : vector<24x8xbf16>, vector<8x8xbf16>, vector<24x8xf32> -> vector<24x8xf32>
    %239 = vector.extract_strided_slice %238 {offsets = [8, 0], sizes = [8, 8], strides = [1, 1]} : vector<24x8xf32> to vector<8x8xf32>
    %240 = vector.extract_strided_slice %238 {offsets = [0, 0], sizes = [8, 8], strides = [1, 1]} : vector<24x8xf32> to vector<8x8xf32>
    %241 = arith.truncf %240 : vector<8x8xf32> to vector<8x8xbf16>
    %c608_121 = arith.constant 608 : index
    %c0_122 = arith.constant 0 : index
    %242 = vector.load %arg4[%c608_121, %c0_122] : memref<1536x128xbf16, #tpu.memory_space<vmem>>, vector<8x8xbf16>
    %cst_123 = arith.constant dense<0.000000e+00> : vector<8x8xf32>
    %243 = tpu.matmul %241, %242, %cst_123 {dimension_numbers = #tpu.dot_dimension_numbers<[1], [0], [0], [1], [0, 0, 1, 1], [], []>} : vector<8x8xbf16>, vector<8x8xbf16>, vector<8x8xf32> -> vector<8x8xf32>
    %244 = arith.addf %239, %243 : vector<8x8xf32>
    %245 = vector.extract_strided_slice %238 {offsets = [16, 0], sizes = [8, 8], strides = [1, 1]} : vector<24x8xf32> to vector<8x8xf32>
    %246 = arith.truncf %245 : vector<8x8xf32> to vector<8x8xbf16>
    %c624_124 = arith.constant 624 : index
    %c0_125 = arith.constant 0 : index
    %247 = vector.load %arg4[%c624_124, %c0_125] : memref<1536x128xbf16, #tpu.memory_space<vmem>>, vector<8x8xbf16>
    %cst_126 = arith.constant dense<0.000000e+00> : vector<8x8xf32>
    %248 = tpu.matmul %246, %247, %cst_126 {dimension_numbers = #tpu.dot_dimension_numbers<[1], [0], [0], [1], [0, 0, 1, 1], [], []>} : vector<8x8xbf16>, vector<8x8xbf16>, vector<8x8xf32> -> vector<8x8xf32>
    %249 = arith.addf %244, %248 : vector<8x8xf32>
    %c0_127 = arith.constant 0 : index
    %c10 = arith.constant 10 : index
    %250 = vector.load %arg3[%c0_127, %c10] : memref<32x29xf32, #tpu.memory_space<vmem>>, vector<8x1xf32>
    %251 = vector.broadcast %250 : vector<8x1xf32> to vector<8x8xf32>
    %252 = arith.addf %249, %251 : vector<8x8xf32>
    %253 = arith.addf %252, %215 : vector<8x8xf32>
    %cst_128 = arith.constant 0.00999999977 : f32
    %254 = vector.broadcast %cst_128 : f32 to vector<8x8xf32>
    %255 = arith.mulf %254, %253 : vector<8x8xf32>
    %256 = arith.maximumf %253, %255 : vector<8x8xf32>
    %257 = arith.truncf %256 : vector<8x8xf32> to vector<8x8xbf16>
    %c1152 = arith.constant 1152 : index
    %c0_129 = arith.constant 0 : index
    %258 = vector.load %arg4[%c1152, %c0_129] : memref<1536x128xbf16, #tpu.memory_space<vmem>>, vector<8x4xbf16>
    %cst_130 = arith.constant dense<0.000000e+00> : vector<8x4xf32>
    %259 = tpu.matmul %257, %258, %cst_130 {dimension_numbers = #tpu.dot_dimension_numbers<[1], [0], [0], [1], [0, 0, 1, 1], [], []>} : vector<8x8xbf16>, vector<8x4xbf16>, vector<8x4xf32> -> vector<8x4xf32>
    %c1168 = arith.constant 1168 : index
    %c0_131 = arith.constant 0 : index
    %260 = vector.load %arg4[%c1168, %c0_131] : memref<1536x128xbf16, #tpu.memory_space<vmem>>, vector<8x4xbf16>
    %cst_132 = arith.constant dense<0.000000e+00> : vector<8x4xf32>
    %261 = tpu.matmul %257, %260, %cst_132 {dimension_numbers = #tpu.dot_dimension_numbers<[1], [0], [0], [1], [0, 0, 1, 1], [], []>} : vector<8x8xbf16>, vector<8x4xbf16>, vector<8x4xf32> -> vector<8x4xf32>
    %262 = arith.maximumf %259, %261 : vector<8x4xf32>
    %263 = arith.truncf %262 : vector<8x4xf32> to vector<8x4xbf16>
    %c1472 = arith.constant 1472 : index
    %c0_133 = arith.constant 0 : index
    %264 = vector.load %arg4[%c1472, %c0_133] : memref<1536x128xbf16, #tpu.memory_space<vmem>>, vector<4x2xbf16>
    %cst_134 = arith.constant dense<0.000000e+00> : vector<8x2xf32>
    %265 = tpu.matmul %263, %264, %cst_134 {dimension_numbers = #tpu.dot_dimension_numbers<[1], [0], [0], [1], [0, 0, 1, 1], [], []>} : vector<8x4xbf16>, vector<4x2xbf16>, vector<8x2xf32> -> vector<8x2xf32>
    %266 = arith.truncf %265 : vector<8x2xf32> to vector<8x2xbf16>
    %c352 = arith.constant 352 : index
    %c0_135 = arith.constant 0 : index
    %267 = vector.load %arg2[%c352, %c0_135] : memref<864x16xbf16, #tpu.memory_space<vmem>>, vector<32x8xbf16>
    %cst_136 = arith.constant dense<0.000000e+00> : vector<32x2xf32>
    %268 = tpu.matmul %267, %266, %cst_136 {dimension_numbers = #tpu.dot_dimension_numbers<[1], [0], [0], [1], [0, 0, 1, 1], [], []>} : vector<32x8xbf16>, vector<8x2xbf16>, vector<32x2xf32> -> vector<32x2xf32>
    %c1504 = arith.constant 1504 : index
    %c0_137 = arith.constant 0 : index
    %269 = vector.load %arg4[%c1504, %c0_137] : memref<1536x128xbf16, #tpu.memory_space<vmem>>, vector<4x2xbf16>
    %cst_138 = arith.constant dense<0.000000e+00> : vector<8x2xf32>
    %270 = tpu.matmul %263, %269, %cst_138 {dimension_numbers = #tpu.dot_dimension_numbers<[1], [0], [0], [1], [0, 0, 1, 1], [], []>} : vector<8x4xbf16>, vector<4x2xbf16>, vector<8x2xf32> -> vector<8x2xf32>
    %271 = arith.truncf %270 : vector<8x2xf32> to vector<8x2xbf16>
    %c384_139 = arith.constant 384 : index
    %c0_140 = arith.constant 0 : index
    %272 = vector.load %arg2[%c384_139, %c0_140] : memref<864x16xbf16, #tpu.memory_space<vmem>>, vector<32x8xbf16>
    %cst_141 = arith.constant dense<0.000000e+00> : vector<32x2xf32>
    %273 = tpu.matmul %272, %271, %cst_141 {dimension_numbers = #tpu.dot_dimension_numbers<[1], [0], [0], [1], [0, 0, 1, 1], [], []>} : vector<32x8xbf16>, vector<8x2xbf16>, vector<32x2xf32> -> vector<32x2xf32>
    %274 = arith.addf %268, %273 : vector<32x2xf32>
    %c0_142 = arith.constant 0 : index
    %c11 = arith.constant 11 : index
    %275 = vector.load %arg3[%c0_142, %c11] : memref<32x29xf32, #tpu.memory_space<vmem>>, vector<32x1xf32>
    %276 = vector.broadcast %275 : vector<32x1xf32> to vector<32x2xf32>
    %277 = arith.addf %274, %276 : vector<32x2xf32>
    %c0_143 = arith.constant 0 : index
    %c0_144 = arith.constant 0 : index
    %278 = vector.load %arg5[%c0_143, %c0_144] : memref<32x2xf32, #tpu.memory_space<vmem>>, vector<32x2xf32>
    tpu.vector_store %arg5[%c0_143, %c0_144], %277 {strides = array<i32>} : memref<32x2xf32, #tpu.memory_space<vmem>>, vector<32x2xf32>,
    %279 = vector.extract_strided_slice %277 {offsets = [0, 0], sizes = [16, 2], strides = [1, 1]} : vector<32x2xf32> to vector<16x2xf32>
    %280 = vector.extract_strided_slice %277 {offsets = [16, 0], sizes = [16, 2], strides = [1, 1]} : vector<32x2xf32> to vector<16x2xf32>
    %c0_145 = arith.constant 0 : index
    %c0_146 = arith.constant 0 : index
    %281 = vector.load %arg1[%c0_145, %c0_146] : memref<16x2xf32, #tpu.memory_space<vmem>>, vector<16x2xf32>
    %cst_147 = arith.constant 5.000000e-01 : f32
    %282 = vector.broadcast %cst_147 : f32 to vector<16x2xf32>
    %283 = arith.mulf %282, %280 : vector<16x2xf32>
    %284 = math.exp %283 : vector<16x2xf32>
    %285 = arith.mulf %281, %284 : vector<16x2xf32>
    %286 = arith.addf %285, %279 : vector<16x2xf32>
    %c416 = arith.constant 416 : index
    %c0_148 = arith.constant 0 : index
    %287 = vector.load %arg2[%c416, %c0_148] : memref<864x16xbf16, #tpu.memory_space<vmem>>, vector<16x16xbf16>
    %288 = arith.truncf %286 : vector<16x2xf32> to vector<16x2xbf16>
    %cst_149 = arith.constant dense<0.000000e+00> : vector<16x2xf32>
    %289 = tpu.matmul %287, %288, %cst_149 {dimension_numbers = #tpu.dot_dimension_numbers<[1], [0], [0], [1], [0, 0, 1, 1], [], []>} : vector<16x16xbf16>, vector<16x2xbf16>, vector<16x2xf32> -> vector<16x2xf32>
    %c0_150 = arith.constant 0 : index
    %c12 = arith.constant 12 : index
    %290 = vector.load %arg3[%c0_150, %c12] : memref<32x29xf32, #tpu.memory_space<vmem>>, vector<16x1xf32>
    %291 = vector.broadcast %290 : vector<16x1xf32> to vector<16x2xf32>
    %292 = arith.addf %289, %291 : vector<16x2xf32>
    %293 = vector.extract_strided_slice %292 {offsets = [0, 0], sizes = [8, 2], strides = [1, 1]} : vector<16x2xf32> to vector<8x2xf32>
    %294 = arith.truncf %293 : vector<8x2xf32> to vector<8x2xbf16>
    %c1488 = arith.constant 1488 : index
    %c0_151 = arith.constant 0 : index
    %295 = vector.load %arg4[%c1488, %c0_151] : memref<1536x128xbf16, #tpu.memory_space<vmem>>, vector<2x4xbf16>
    %cst_152 = arith.constant dense<0.000000e+00> : vector<8x4xf32>
    %296 = tpu.matmul %294, %295, %cst_152 {dimension_numbers = #tpu.dot_dimension_numbers<[1], [0], [0], [1], [0, 0, 1, 1], [], []>} : vector<8x2xbf16>, vector<2x4xbf16>, vector<8x4xf32> -> vector<8x4xf32>
    %297 = vector.extract_strided_slice %292 {offsets = [8, 0], sizes = [8, 2], strides = [1, 1]} : vector<16x2xf32> to vector<8x2xf32>
    %298 = arith.truncf %297 : vector<8x2xf32> to vector<8x2xbf16>
    %c1520 = arith.constant 1520 : index
    %c0_153 = arith.constant 0 : index
    %299 = vector.load %arg4[%c1520, %c0_153] : memref<1536x128xbf16, #tpu.memory_space<vmem>>, vector<2x4xbf16>
    %cst_154 = arith.constant dense<0.000000e+00> : vector<8x4xf32>
    %300 = tpu.matmul %298, %299, %cst_154 {dimension_numbers = #tpu.dot_dimension_numbers<[1], [0], [0], [1], [0, 0, 1, 1], [], []>} : vector<8x2xbf16>, vector<2x4xbf16>, vector<8x4xf32> -> vector<8x4xf32>
    %301 = arith.addf %296, %300 : vector<8x4xf32>
    %c432 = arith.constant 432 : index
    %c0_155 = arith.constant 0 : index
    %302 = vector.load %arg2[%c432, %c0_155] : memref<864x16xbf16, #tpu.memory_space<vmem>>, vector<24x8xbf16>
    %303 = arith.truncf %301 : vector<8x4xf32> to vector<8x4xbf16>
    %cst_156 = arith.constant dense<0.000000e+00> : vector<24x4xf32>
    %304 = tpu.matmul %302, %303, %cst_156 {dimension_numbers = #tpu.dot_dimension_numbers<[1], [0], [0], [1], [0, 0, 1, 1], [], []>} : vector<24x8xbf16>, vector<8x4xbf16>, vector<24x4xf32> -> vector<24x4xf32>
    %305 = vector.extract_strided_slice %304 {offsets = [8, 0], sizes = [8, 4], strides = [1, 1]} : vector<24x4xf32> to vector<8x4xf32>
    %306 = vector.extract_strided_slice %304 {offsets = [0, 0], sizes = [8, 4], strides = [1, 1]} : vector<24x4xf32> to vector<8x4xf32>
    %307 = arith.truncf %306 : vector<8x4xf32> to vector<8x4xbf16>
    %c640 = arith.constant 640 : index
    %c0_157 = arith.constant 0 : index
    %308 = vector.load %arg4[%c640, %c0_157] : memref<1536x128xbf16, #tpu.memory_space<vmem>>, vector<4x4xbf16>
    %cst_158 = arith.constant dense<0.000000e+00> : vector<8x4xf32>
    %309 = tpu.matmul %307, %308, %cst_158 {dimension_numbers = #tpu.dot_dimension_numbers<[1], [0], [0], [1], [0, 0, 1, 1], [], []>} : vector<8x4xbf16>, vector<4x4xbf16>, vector<8x4xf32> -> vector<8x4xf32>
    %310 = arith.addf %305, %309 : vector<8x4xf32>
    %311 = vector.extract_strided_slice %304 {offsets = [16, 0], sizes = [8, 4], strides = [1, 1]} : vector<24x4xf32> to vector<8x4xf32>
    %312 = arith.truncf %311 : vector<8x4xf32> to vector<8x4xbf16>
    %c656 = arith.constant 656 : index
    %c0_159 = arith.constant 0 : index
    %313 = vector.load %arg4[%c656, %c0_159] : memref<1536x128xbf16, #tpu.memory_space<vmem>>, vector<4x4xbf16>
    %cst_160 = arith.constant dense<0.000000e+00> : vector<8x4xf32>
    %314 = tpu.matmul %312, %313, %cst_160 {dimension_numbers = #tpu.dot_dimension_numbers<[1], [0], [0], [1], [0, 0, 1, 1], [], []>} : vector<8x4xbf16>, vector<4x4xbf16>, vector<8x4xf32> -> vector<8x4xf32>
    %315 = arith.addf %310, %314 : vector<8x4xf32>
    %c0_161 = arith.constant 0 : index
    %c13 = arith.constant 13 : index
    %316 = vector.load %arg3[%c0_161, %c13] : memref<32x29xf32, #tpu.memory_space<vmem>>, vector<8x1xf32>
    %317 = vector.broadcast %316 : vector<8x1xf32> to vector<8x4xf32>
    %318 = arith.addf %315, %317 : vector<8x4xf32>
    %cst_162 = arith.constant 0.00999999977 : f32
    %319 = vector.broadcast %cst_162 : f32 to vector<8x4xf32>
    %320 = arith.mulf %319, %318 : vector<8x4xf32>
    %321 = arith.maximumf %318, %320 : vector<8x4xf32>
    %c464 = arith.constant 464 : index
    %c0_163 = arith.constant 0 : index
    %322 = vector.load %arg2[%c464, %c0_163] : memref<864x16xbf16, #tpu.memory_space<vmem>>, vector<24x8xbf16>
    %323 = arith.truncf %321 : vector<8x4xf32> to vector<8x4xbf16>
    %cst_164 = arith.constant dense<0.000000e+00> : vector<24x4xf32>
    %324 = tpu.matmul %322, %323, %cst_164 {dimension_numbers = #tpu.dot_dimension_numbers<[1], [0], [0], [1], [0, 0, 1, 1], [], []>} : vector<24x8xbf16>, vector<8x4xbf16>, vector<24x4xf32> -> vector<24x4xf32>
    %325 = vector.extract_strided_slice %324 {offsets = [8, 0], sizes = [8, 4], strides = [1, 1]} : vector<24x4xf32> to vector<8x4xf32>
    %326 = vector.extract_strided_slice %324 {offsets = [0, 0], sizes = [8, 4], strides = [1, 1]} : vector<24x4xf32> to vector<8x4xf32>
    %327 = arith.truncf %326 : vector<8x4xf32> to vector<8x4xbf16>
    %c640_165 = arith.constant 640 : index
    %c0_166 = arith.constant 0 : index
    %328 = vector.load %arg4[%c640_165, %c0_166] : memref<1536x128xbf16, #tpu.memory_space<vmem>>, vector<4x4xbf16>
    %cst_167 = arith.constant dense<0.000000e+00> : vector<8x4xf32>
    %329 = tpu.matmul %327, %328, %cst_167 {dimension_numbers = #tpu.dot_dimension_numbers<[1], [0], [0], [1], [0, 0, 1, 1], [], []>} : vector<8x4xbf16>, vector<4x4xbf16>, vector<8x4xf32> -> vector<8x4xf32>
    %330 = arith.addf %325, %329 : vector<8x4xf32>
    %331 = vector.extract_strided_slice %324 {offsets = [16, 0], sizes = [8, 4], strides = [1, 1]} : vector<24x4xf32> to vector<8x4xf32>
    %332 = arith.truncf %331 : vector<8x4xf32> to vector<8x4xbf16>
    %c656_168 = arith.constant 656 : index
    %c0_169 = arith.constant 0 : index
    %333 = vector.load %arg4[%c656_168, %c0_169] : memref<1536x128xbf16, #tpu.memory_space<vmem>>, vector<4x4xbf16>
    %cst_170 = arith.constant dense<0.000000e+00> : vector<8x4xf32>
    %334 = tpu.matmul %332, %333, %cst_170 {dimension_numbers = #tpu.dot_dimension_numbers<[1], [0], [0], [1], [0, 0, 1, 1], [], []>} : vector<8x4xbf16>, vector<4x4xbf16>, vector<8x4xf32> -> vector<8x4xf32>
    %335 = arith.addf %330, %334 : vector<8x4xf32>
    %c0_171 = arith.constant 0 : index
    %c14 = arith.constant 14 : index
    %336 = vector.load %arg3[%c0_171, %c14] : memref<32x29xf32, #tpu.memory_space<vmem>>, vector<8x1xf32>
    %337 = vector.broadcast %336 : vector<8x1xf32> to vector<8x4xf32>
    %338 = arith.addf %335, %337 : vector<8x4xf32>
    %339 = arith.addf %338, %301 : vector<8x4xf32>
    %cst_172 = arith.constant 0.00999999977 : f32
    %340 = vector.broadcast %cst_172 : f32 to vector<8x4xf32>
    %341 = arith.mulf %340, %339 : vector<8x4xf32>
    %342 = arith.maximumf %339, %341 : vector<8x4xf32>
    %c496 = arith.constant 496 : index
    %c0_173 = arith.constant 0 : index
    %343 = vector.load %arg2[%c496, %c0_173] : memref<864x16xbf16, #tpu.memory_space<vmem>>, vector<16x8xbf16>
    %344 = arith.truncf %342 : vector<8x4xf32> to vector<8x4xbf16>
    %cst_174 = arith.constant dense<0.000000e+00> : vector<16x4xf32>
    %345 = tpu.matmul %343, %344, %cst_174 {dimension_numbers = #tpu.dot_dimension_numbers<[1], [0], [0], [1], [0, 0, 1, 1], [], []>} : vector<16x8xbf16>, vector<8x4xbf16>, vector<16x4xf32> -> vector<16x4xf32>
    %c0_175 = arith.constant 0 : index
    %c15 = arith.constant 15 : index
    %346 = vector.load %arg3[%c0_175, %c15] : memref<32x29xf32, #tpu.memory_space<vmem>>, vector<16x1xf32>
    %347 = vector.broadcast %346 : vector<16x1xf32> to vector<16x4xf32>
    %348 = arith.addf %345, %347 : vector<16x4xf32>
    %349 = vector.extract_strided_slice %348 {offsets = [0, 0], sizes = [8, 4], strides = [1, 1]} : vector<16x4xf32> to vector<8x4xf32>
    %350 = arith.truncf %349 : vector<8x4xf32> to vector<8x4xbf16>
    %c1440 = arith.constant 1440 : index
    %c0_176 = arith.constant 0 : index
    %351 = vector.load %arg4[%c1440, %c0_176] : memref<1536x128xbf16, #tpu.memory_space<vmem>>, vector<4x8xbf16>
    %cst_177 = arith.constant dense<0.000000e+00> : vector<8x8xf32>
    %352 = tpu.matmul %350, %351, %cst_177 {dimension_numbers = #tpu.dot_dimension_numbers<[1], [0], [0], [1], [0, 0, 1, 1], [], []>} : vector<8x4xbf16>, vector<4x8xbf16>, vector<8x8xf32> -> vector<8x8xf32>
    %353 = vector.extract_strided_slice %348 {offsets = [8, 0], sizes = [8, 4], strides = [1, 1]} : vector<16x4xf32> to vector<8x4xf32>
    %354 = arith.truncf %353 : vector<8x4xf32> to vector<8x4xbf16>
    %c1456 = arith.constant 1456 : index
    %c0_178 = arith.constant 0 : index
    %355 = vector.load %arg4[%c1456, %c0_178] : memref<1536x128xbf16, #tpu.memory_space<vmem>>, vector<4x8xbf16>
    %cst_179 = arith.constant dense<0.000000e+00> : vector<8x8xf32>
    %356 = tpu.matmul %354, %355, %cst_179 {dimension_numbers = #tpu.dot_dimension_numbers<[1], [0], [0], [1], [0, 0, 1, 1], [], []>} : vector<8x4xbf16>, vector<4x8xbf16>, vector<8x8xf32> -> vector<8x8xf32>
    %357 = arith.addf %352, %356 : vector<8x8xf32>
    %c512_180 = arith.constant 512 : index
    %c0_181 = arith.constant 0 : index
    %358 = vector.load %arg2[%c512_180, %c0_181] : memref<864x16xbf16, #tpu.memory_space<vmem>>, vector<24x8xbf16>
    %359 = arith.truncf %357 : vector<8x8xf32> to vector<8x8xbf16>
    %cst_182 = arith.constant dense<0.000000e+00> : vector<24x8xf32>
    %360 = tpu.matmul %358, %359, %cst_182 {dimension_numbers = #tpu.dot_dimension_numbers<[1], [0], [0], [1], [0, 0, 1, 1], [], []>} : vector<24x8xbf16>, vector<8x8xbf16>, vector<24x8xf32> -> vector<24x8xf32>
    %361 = vector.extract_strided_slice %360 {offsets = [8, 0], sizes = [8, 8], strides = [1, 1]} : vector<24x8xf32> to vector<8x8xf32>
    %362 = vector.extract_strided_slice %360 {offsets = [0, 0], sizes = [8, 8], strides = [1, 1]} : vector<24x8xf32> to vector<8x8xf32>
    %363 = arith.truncf %362 : vector<8x8xf32> to vector<8x8xbf16>
    %c608_183 = arith.constant 608 : index
    %c0_184 = arith.constant 0 : index
    %364 = vector.load %arg4[%c608_183, %c0_184] : memref<1536x128xbf16, #tpu.memory_space<vmem>>, vector<8x8xbf16>
    %cst_185 = arith.constant dense<0.000000e+00> : vector<8x8xf32>
    %365 = tpu.matmul %363, %364, %cst_185 {dimension_numbers = #tpu.dot_dimension_numbers<[1], [0], [0], [1], [0, 0, 1, 1], [], []>} : vector<8x8xbf16>, vector<8x8xbf16>, vector<8x8xf32> -> vector<8x8xf32>
    %366 = arith.addf %361, %365 : vector<8x8xf32>
    %367 = vector.extract_strided_slice %360 {offsets = [16, 0], sizes = [8, 8], strides = [1, 1]} : vector<24x8xf32> to vector<8x8xf32>
    %368 = arith.truncf %367 : vector<8x8xf32> to vector<8x8xbf16>
    %c624_186 = arith.constant 624 : index
    %c0_187 = arith.constant 0 : index
    %369 = vector.load %arg4[%c624_186, %c0_187] : memref<1536x128xbf16, #tpu.memory_space<vmem>>, vector<8x8xbf16>
    %cst_188 = arith.constant dense<0.000000e+00> : vector<8x8xf32>
    %370 = tpu.matmul %368, %369, %cst_188 {dimension_numbers = #tpu.dot_dimension_numbers<[1], [0], [0], [1], [0, 0, 1, 1], [], []>} : vector<8x8xbf16>, vector<8x8xbf16>, vector<8x8xf32> -> vector<8x8xf32>
    %371 = arith.addf %366, %370 : vector<8x8xf32>
    %c0_189 = arith.constant 0 : index
    %c16 = arith.constant 16 : index
    %372 = vector.load %arg3[%c0_189, %c16] : memref<32x29xf32, #tpu.memory_space<vmem>>, vector<8x1xf32>
    %373 = vector.broadcast %372 : vector<8x1xf32> to vector<8x8xf32>
    %374 = arith.addf %371, %373 : vector<8x8xf32>
    %cst_190 = arith.constant 0.00999999977 : f32
    %375 = vector.broadcast %cst_190 : f32 to vector<8x8xf32>
    %376 = arith.mulf %375, %374 : vector<8x8xf32>
    %377 = arith.maximumf %374, %376 : vector<8x8xf32>
    %c544_191 = arith.constant 544 : index
    %c0_192 = arith.constant 0 : index
    %378 = vector.load %arg2[%c544_191, %c0_192] : memref<864x16xbf16, #tpu.memory_space<vmem>>, vector<24x8xbf16>
    %379 = arith.truncf %377 : vector<8x8xf32> to vector<8x8xbf16>
    %cst_193 = arith.constant dense<0.000000e+00> : vector<24x8xf32>
    %380 = tpu.matmul %378, %379, %cst_193 {dimension_numbers = #tpu.dot_dimension_numbers<[1], [0], [0], [1], [0, 0, 1, 1], [], []>} : vector<24x8xbf16>, vector<8x8xbf16>, vector<24x8xf32> -> vector<24x8xf32>
    %381 = vector.extract_strided_slice %380 {offsets = [8, 0], sizes = [8, 8], strides = [1, 1]} : vector<24x8xf32> to vector<8x8xf32>
    %382 = vector.extract_strided_slice %380 {offsets = [0, 0], sizes = [8, 8], strides = [1, 1]} : vector<24x8xf32> to vector<8x8xf32>
    %383 = arith.truncf %382 : vector<8x8xf32> to vector<8x8xbf16>
    %c608_194 = arith.constant 608 : index
    %c0_195 = arith.constant 0 : index
    %384 = vector.load %arg4[%c608_194, %c0_195] : memref<1536x128xbf16, #tpu.memory_space<vmem>>, vector<8x8xbf16>
    %cst_196 = arith.constant dense<0.000000e+00> : vector<8x8xf32>
    %385 = tpu.matmul %383, %384, %cst_196 {dimension_numbers = #tpu.dot_dimension_numbers<[1], [0], [0], [1], [0, 0, 1, 1], [], []>} : vector<8x8xbf16>, vector<8x8xbf16>, vector<8x8xf32> -> vector<8x8xf32>
    %386 = arith.addf %381, %385 : vector<8x8xf32>
    %387 = vector.extract_strided_slice %380 {offsets = [16, 0], sizes = [8, 8], strides = [1, 1]} : vector<24x8xf32> to vector<8x8xf32>
    %388 = arith.truncf %387 : vector<8x8xf32> to vector<8x8xbf16>
    %c624_197 = arith.constant 624 : index
    %c0_198 = arith.constant 0 : index
    %389 = vector.load %arg4[%c624_197, %c0_198] : memref<1536x128xbf16, #tpu.memory_space<vmem>>, vector<8x8xbf16>
    %cst_199 = arith.constant dense<0.000000e+00> : vector<8x8xf32>
    %390 = tpu.matmul %388, %389, %cst_199 {dimension_numbers = #tpu.dot_dimension_numbers<[1], [0], [0], [1], [0, 0, 1, 1], [], []>} : vector<8x8xbf16>, vector<8x8xbf16>, vector<8x8xf32> -> vector<8x8xf32>
    %391 = arith.addf %386, %390 : vector<8x8xf32>
    %c0_200 = arith.constant 0 : index
    %c17 = arith.constant 17 : index
    %392 = vector.load %arg3[%c0_200, %c17] : memref<32x29xf32, #tpu.memory_space<vmem>>, vector<8x1xf32>
    %393 = vector.broadcast %392 : vector<8x1xf32> to vector<8x8xf32>
    %394 = arith.addf %391, %393 : vector<8x8xf32>
    %395 = arith.addf %394, %357 : vector<8x8xf32>
    %cst_201 = arith.constant 0.00999999977 : f32
    %396 = vector.broadcast %cst_201 : f32 to vector<8x8xf32>
    %397 = arith.mulf %396, %395 : vector<8x8xf32>
    %398 = arith.maximumf %395, %397 : vector<8x8xf32>
    %c576_202 = arith.constant 576 : index
    %c0_203 = arith.constant 0 : index
    %399 = vector.load %arg2[%c576_202, %c0_203] : memref<864x16xbf16, #tpu.memory_space<vmem>>, vector<16x8xbf16>
    %400 = arith.truncf %398 : vector<8x8xf32> to vector<8x8xbf16>
    %cst_204 = arith.constant dense<0.000000e+00> : vector<16x8xf32>
    %401 = tpu.matmul %399, %400, %cst_204 {dimension_numbers = #tpu.dot_dimension_numbers<[1], [0], [0], [1], [0, 0, 1, 1], [], []>} : vector<16x8xbf16>, vector<8x8xbf16>, vector<16x8xf32> -> vector<16x8xf32>
    %c0_205 = arith.constant 0 : index
    %c18 = arith.constant 18 : index
    %402 = vector.load %arg3[%c0_205, %c18] : memref<32x29xf32, #tpu.memory_space<vmem>>, vector<16x1xf32>
    %403 = vector.broadcast %402 : vector<16x1xf32> to vector<16x8xf32>
    %404 = arith.addf %401, %403 : vector<16x8xf32>
    %405 = vector.extract_strided_slice %404 {offsets = [0, 0], sizes = [8, 8], strides = [1, 1]} : vector<16x8xf32> to vector<8x8xf32>
    %406 = arith.truncf %405 : vector<8x8xf32> to vector<8x8xbf16>
    %c1408 = arith.constant 1408 : index
    %c0_206 = arith.constant 0 : index
    %407 = vector.load %arg4[%c1408, %c0_206] : memref<1536x128xbf16, #tpu.memory_space<vmem>>, vector<8x16xbf16>
    %cst_207 = arith.constant dense<0.000000e+00> : vector<8x16xf32>
    %408 = tpu.matmul %406, %407, %cst_207 {dimension_numbers = #tpu.dot_dimension_numbers<[1], [0], [0], [1], [0, 0, 1, 1], [], []>} : vector<8x8xbf16>, vector<8x16xbf16>, vector<8x16xf32> -> vector<8x16xf32>
    %409 = vector.extract_strided_slice %404 {offsets = [8, 0], sizes = [8, 8], strides = [1, 1]} : vector<16x8xf32> to vector<8x8xf32>
    %410 = arith.truncf %409 : vector<8x8xf32> to vector<8x8xbf16>
    %c1424 = arith.constant 1424 : index
    %c0_208 = arith.constant 0 : index
    %411 = vector.load %arg4[%c1424, %c0_208] : memref<1536x128xbf16, #tpu.memory_space<vmem>>, vector<8x16xbf16>
    %cst_209 = arith.constant dense<0.000000e+00> : vector<8x16xf32>
    %412 = tpu.matmul %410, %411, %cst_209 {dimension_numbers = #tpu.dot_dimension_numbers<[1], [0], [0], [1], [0, 0, 1, 1], [], []>} : vector<8x8xbf16>, vector<8x16xbf16>, vector<8x16xf32> -> vector<8x16xf32>
    %413 = arith.addf %408, %412 : vector<8x16xf32>
    %c592_210 = arith.constant 592 : index
    %c0_211 = arith.constant 0 : index
    %414 = vector.load %arg2[%c592_210, %c0_211] : memref<864x16xbf16, #tpu.memory_space<vmem>>, vector<24x8xbf16>
    %415 = arith.truncf %413 : vector<8x16xf32> to vector<8x16xbf16>
    %cst_212 = arith.constant dense<0.000000e+00> : vector<24x16xf32>
    %416 = tpu.matmul %414, %415, %cst_212 {dimension_numbers = #tpu.dot_dimension_numbers<[1], [0], [0], [1], [0, 0, 1, 1], [], []>} : vector<24x8xbf16>, vector<8x16xbf16>, vector<24x16xf32> -> vector<24x16xf32>
    %417 = vector.extract_strided_slice %416 {offsets = [8, 0], sizes = [8, 16], strides = [1, 1]} : vector<24x16xf32> to vector<8x16xf32>
    %418 = vector.extract_strided_slice %416 {offsets = [0, 0], sizes = [8, 16], strides = [1, 1]} : vector<24x16xf32> to vector<8x16xf32>
    %419 = arith.truncf %418 : vector<8x16xf32> to vector<8x16xbf16>
    %c576_213 = arith.constant 576 : index
    %c0_214 = arith.constant 0 : index
    %420 = vector.load %arg4[%c576_213, %c0_214] : memref<1536x128xbf16, #tpu.memory_space<vmem>>, vector<16x16xbf16>
    %cst_215 = arith.constant dense<0.000000e+00> : vector<8x16xf32>
    %421 = tpu.matmul %419, %420, %cst_215 {dimension_numbers = #tpu.dot_dimension_numbers<[1], [0], [0], [1], [0, 0, 1, 1], [], []>} : vector<8x16xbf16>, vector<16x16xbf16>, vector<8x16xf32> -> vector<8x16xf32>
    %422 = arith.addf %417, %421 : vector<8x16xf32>
    %423 = vector.extract_strided_slice %416 {offsets = [16, 0], sizes = [8, 16], strides = [1, 1]} : vector<24x16xf32> to vector<8x16xf32>
    %424 = arith.truncf %423 : vector<8x16xf32> to vector<8x16xbf16>
    %c592_216 = arith.constant 592 : index
    %c0_217 = arith.constant 0 : index
    %425 = vector.load %arg4[%c592_216, %c0_217] : memref<1536x128xbf16, #tpu.memory_space<vmem>>, vector<16x16xbf16>
    %cst_218 = arith.constant dense<0.000000e+00> : vector<8x16xf32>
    %426 = tpu.matmul %424, %425, %cst_218 {dimension_numbers = #tpu.dot_dimension_numbers<[1], [0], [0], [1], [0, 0, 1, 1], [], []>} : vector<8x16xbf16>, vector<16x16xbf16>, vector<8x16xf32> -> vector<8x16xf32>
    %427 = arith.addf %422, %426 : vector<8x16xf32>
    %c0_219 = arith.constant 0 : index
    %c19 = arith.constant 19 : index
    %428 = vector.load %arg3[%c0_219, %c19] : memref<32x29xf32, #tpu.memory_space<vmem>>, vector<8x1xf32>
    %429 = vector.broadcast %428 : vector<8x1xf32> to vector<8x16xf32>
    %430 = arith.addf %427, %429 : vector<8x16xf32>
    %cst_220 = arith.constant 0.00999999977 : f32
    %431 = vector.broadcast %cst_220 : f32 to vector<8x16xf32>
    %432 = arith.mulf %431, %430 : vector<8x16xf32>
    %433 = arith.maximumf %430, %432 : vector<8x16xf32>
    %c624_221 = arith.constant 624 : index
    %c0_222 = arith.constant 0 : index
    %434 = vector.load %arg2[%c624_221, %c0_222] : memref<864x16xbf16, #tpu.memory_space<vmem>>, vector<24x8xbf16>
    %435 = arith.truncf %433 : vector<8x16xf32> to vector<8x16xbf16>
    %cst_223 = arith.constant dense<0.000000e+00> : vector<24x16xf32>
    %436 = tpu.matmul %434, %435, %cst_223 {dimension_numbers = #tpu.dot_dimension_numbers<[1], [0], [0], [1], [0, 0, 1, 1], [], []>} : vector<24x8xbf16>, vector<8x16xbf16>, vector<24x16xf32> -> vector<24x16xf32>
    %437 = vector.extract_strided_slice %436 {offsets = [8, 0], sizes = [8, 16], strides = [1, 1]} : vector<24x16xf32> to vector<8x16xf32>
    %438 = vector.extract_strided_slice %436 {offsets = [0, 0], sizes = [8, 16], strides = [1, 1]} : vector<24x16xf32> to vector<8x16xf32>
    %439 = arith.truncf %438 : vector<8x16xf32> to vector<8x16xbf16>
    %c576_224 = arith.constant 576 : index
    %c0_225 = arith.constant 0 : index
    %440 = vector.load %arg4[%c576_224, %c0_225] : memref<1536x128xbf16, #tpu.memory_space<vmem>>, vector<16x16xbf16>
    %cst_226 = arith.constant dense<0.000000e+00> : vector<8x16xf32>
    %441 = tpu.matmul %439, %440, %cst_226 {dimension_numbers = #tpu.dot_dimension_numbers<[1], [0], [0], [1], [0, 0, 1, 1], [], []>} : vector<8x16xbf16>, vector<16x16xbf16>, vector<8x16xf32> -> vector<8x16xf32>
    %442 = arith.addf %437, %441 : vector<8x16xf32>
    %443 = vector.extract_strided_slice %436 {offsets = [16, 0], sizes = [8, 16], strides = [1, 1]} : vector<24x16xf32> to vector<8x16xf32>
    %444 = arith.truncf %443 : vector<8x16xf32> to vector<8x16xbf16>
    %c592_227 = arith.constant 592 : index
    %c0_228 = arith.constant 0 : index
    %445 = vector.load %arg4[%c592_227, %c0_228] : memref<1536x128xbf16, #tpu.memory_space<vmem>>, vector<16x16xbf16>
    %cst_229 = arith.constant dense<0.000000e+00> : vector<8x16xf32>
    %446 = tpu.matmul %444, %445, %cst_229 {dimension_numbers = #tpu.dot_dimension_numbers<[1], [0], [0], [1], [0, 0, 1, 1], [], []>} : vector<8x16xbf16>, vector<16x16xbf16>, vector<8x16xf32> -> vector<8x16xf32>
    %447 = arith.addf %442, %446 : vector<8x16xf32>
    %c0_230 = arith.constant 0 : index
    %c20 = arith.constant 20 : index
    %448 = vector.load %arg3[%c0_230, %c20] : memref<32x29xf32, #tpu.memory_space<vmem>>, vector<8x1xf32>
    %449 = vector.broadcast %448 : vector<8x1xf32> to vector<8x16xf32>
    %450 = arith.addf %447, %449 : vector<8x16xf32>
    %451 = arith.addf %450, %413 : vector<8x16xf32>
    %cst_231 = arith.constant 0.00999999977 : f32
    %452 = vector.broadcast %cst_231 : f32 to vector<8x16xf32>
    %453 = arith.mulf %452, %451 : vector<8x16xf32>
    %454 = arith.maximumf %451, %453 : vector<8x16xf32>
    %c656_232 = arith.constant 656 : index
    %c0_233 = arith.constant 0 : index
    %455 = vector.load %arg2[%c656_232, %c0_233] : memref<864x16xbf16, #tpu.memory_space<vmem>>, vector<16x8xbf16>
    %456 = arith.truncf %454 : vector<8x16xf32> to vector<8x16xbf16>
    %cst_234 = arith.constant dense<0.000000e+00> : vector<16x16xf32>
    %457 = tpu.matmul %455, %456, %cst_234 {dimension_numbers = #tpu.dot_dimension_numbers<[1], [0], [0], [1], [0, 0, 1, 1], [], []>} : vector<16x8xbf16>, vector<8x16xbf16>, vector<16x16xf32> -> vector<16x16xf32>
    %c0_235 = arith.constant 0 : index
    %c21 = arith.constant 21 : index
    %458 = vector.load %arg3[%c0_235, %c21] : memref<32x29xf32, #tpu.memory_space<vmem>>, vector<16x1xf32>
    %459 = vector.broadcast %458 : vector<16x1xf32> to vector<16x16xf32>
    %460 = arith.addf %457, %459 : vector<16x16xf32>
    %461 = vector.extract_strided_slice %460 {offsets = [0, 0], sizes = [8, 16], strides = [1, 1]} : vector<16x16xf32> to vector<8x16xf32>
    %462 = arith.truncf %461 : vector<8x16xf32> to vector<8x16xbf16>
    %c1376 = arith.constant 1376 : index
    %c0_236 = arith.constant 0 : index
    %463 = vector.load %arg4[%c1376, %c0_236] : memref<1536x128xbf16, #tpu.memory_space<vmem>>, vector<16x32xbf16>
    %cst_237 = arith.constant dense<0.000000e+00> : vector<8x32xf32>
    %464 = tpu.matmul %462, %463, %cst_237 {dimension_numbers = #tpu.dot_dimension_numbers<[1], [0], [0], [1], [0, 0, 1, 1], [], []>} : vector<8x16xbf16>, vector<16x32xbf16>, vector<8x32xf32> -> vector<8x32xf32>
    %465 = vector.extract_strided_slice %460 {offsets = [8, 0], sizes = [8, 16], strides = [1, 1]} : vector<16x16xf32> to vector<8x16xf32>
    %466 = arith.truncf %465 : vector<8x16xf32> to vector<8x16xbf16>
    %c1392 = arith.constant 1392 : index
    %c0_238 = arith.constant 0 : index
    %467 = vector.load %arg4[%c1392, %c0_238] : memref<1536x128xbf16, #tpu.memory_space<vmem>>, vector<16x32xbf16>
    %cst_239 = arith.constant dense<0.000000e+00> : vector<8x32xf32>
    %468 = tpu.matmul %466, %467, %cst_239 {dimension_numbers = #tpu.dot_dimension_numbers<[1], [0], [0], [1], [0, 0, 1, 1], [], []>} : vector<8x16xbf16>, vector<16x32xbf16>, vector<8x32xf32> -> vector<8x32xf32>
    %469 = arith.addf %464, %468 : vector<8x32xf32>
    %c672_240 = arith.constant 672 : index
    %c0_241 = arith.constant 0 : index
    %470 = vector.load %arg2[%c672_240, %c0_241] : memref<864x16xbf16, #tpu.memory_space<vmem>>, vector<24x8xbf16>
    %471 = arith.truncf %469 : vector<8x32xf32> to vector<8x32xbf16>
    %cst_242 = arith.constant dense<0.000000e+00> : vector<24x32xf32>
    %472 = tpu.matmul %470, %471, %cst_242 {dimension_numbers = #tpu.dot_dimension_numbers<[1], [0], [0], [1], [0, 0, 1, 1], [], []>} : vector<24x8xbf16>, vector<8x32xbf16>, vector<24x32xf32> -> vector<24x32xf32>
    %473 = vector.extract_strided_slice %472 {offsets = [8, 0], sizes = [8, 32], strides = [1, 1]} : vector<24x32xf32> to vector<8x32xf32>
    %474 = vector.extract_strided_slice %472 {offsets = [0, 0], sizes = [8, 32], strides = [1, 1]} : vector<24x32xf32> to vector<8x32xf32>
    %475 = arith.truncf %474 : vector<8x32xf32> to vector<8x32xbf16>
    %c512_243 = arith.constant 512 : index
    %c0_244 = arith.constant 0 : index
    %476 = vector.load %arg4[%c512_243, %c0_244] : memref<1536x128xbf16, #tpu.memory_space<vmem>>, vector<32x32xbf16>
    %cst_245 = arith.constant dense<0.000000e+00> : vector<8x32xf32>
    %477 = tpu.matmul %475, %476, %cst_245 {dimension_numbers = #tpu.dot_dimension_numbers<[1], [0], [0], [1], [0, 0, 1, 1], [], []>} : vector<8x32xbf16>, vector<32x32xbf16>, vector<8x32xf32> -> vector<8x32xf32>
    %478 = arith.addf %473, %477 : vector<8x32xf32>
    %479 = vector.extract_strided_slice %472 {offsets = [16, 0], sizes = [8, 32], strides = [1, 1]} : vector<24x32xf32> to vector<8x32xf32>
    %480 = arith.truncf %479 : vector<8x32xf32> to vector<8x32xbf16>
    %c544_246 = arith.constant 544 : index
    %c0_247 = arith.constant 0 : index
    %481 = vector.load %arg4[%c544_246, %c0_247] : memref<1536x128xbf16, #tpu.memory_space<vmem>>, vector<32x32xbf16>
    %cst_248 = arith.constant dense<0.000000e+00> : vector<8x32xf32>
    %482 = tpu.matmul %480, %481, %cst_248 {dimension_numbers = #tpu.dot_dimension_numbers<[1], [0], [0], [1], [0, 0, 1, 1], [], []>} : vector<8x32xbf16>, vector<32x32xbf16>, vector<8x32xf32> -> vector<8x32xf32>
    %483 = arith.addf %478, %482 : vector<8x32xf32>
    %c0_249 = arith.constant 0 : index
    %c22 = arith.constant 22 : index
    %484 = vector.load %arg3[%c0_249, %c22] : memref<32x29xf32, #tpu.memory_space<vmem>>, vector<8x1xf32>
    %485 = vector.broadcast %484 : vector<8x1xf32> to vector<8x32xf32>
    %486 = arith.addf %483, %485 : vector<8x32xf32>
    %cst_250 = arith.constant 0.00999999977 : f32
    %487 = vector.broadcast %cst_250 : f32 to vector<8x32xf32>
    %488 = arith.mulf %487, %486 : vector<8x32xf32>
    %489 = arith.maximumf %486, %488 : vector<8x32xf32>
    %c704 = arith.constant 704 : index
    %c0_251 = arith.constant 0 : index
    %490 = vector.load %arg2[%c704, %c0_251] : memref<864x16xbf16, #tpu.memory_space<vmem>>, vector<24x8xbf16>
    %491 = arith.truncf %489 : vector<8x32xf32> to vector<8x32xbf16>
    %cst_252 = arith.constant dense<0.000000e+00> : vector<24x32xf32>
    %492 = tpu.matmul %490, %491, %cst_252 {dimension_numbers = #tpu.dot_dimension_numbers<[1], [0], [0], [1], [0, 0, 1, 1], [], []>} : vector<24x8xbf16>, vector<8x32xbf16>, vector<24x32xf32> -> vector<24x32xf32>
    %493 = vector.extract_strided_slice %492 {offsets = [8, 0], sizes = [8, 32], strides = [1, 1]} : vector<24x32xf32> to vector<8x32xf32>
    %494 = vector.extract_strided_slice %492 {offsets = [0, 0], sizes = [8, 32], strides = [1, 1]} : vector<24x32xf32> to vector<8x32xf32>
    %495 = arith.truncf %494 : vector<8x32xf32> to vector<8x32xbf16>
    %c512_253 = arith.constant 512 : index
    %c0_254 = arith.constant 0 : index
    %496 = vector.load %arg4[%c512_253, %c0_254] : memref<1536x128xbf16, #tpu.memory_space<vmem>>, vector<32x32xbf16>
    %cst_255 = arith.constant dense<0.000000e+00> : vector<8x32xf32>
    %497 = tpu.matmul %495, %496, %cst_255 {dimension_numbers = #tpu.dot_dimension_numbers<[1], [0], [0], [1], [0, 0, 1, 1], [], []>} : vector<8x32xbf16>, vector<32x32xbf16>, vector<8x32xf32> -> vector<8x32xf32>
    %498 = arith.addf %493, %497 : vector<8x32xf32>
    %499 = vector.extract_strided_slice %492 {offsets = [16, 0], sizes = [8, 32], strides = [1, 1]} : vector<24x32xf32> to vector<8x32xf32>
    %500 = arith.truncf %499 : vector<8x32xf32> to vector<8x32xbf16>
    %c544_256 = arith.constant 544 : index
    %c0_257 = arith.constant 0 : index
    %501 = vector.load %arg4[%c544_256, %c0_257] : memref<1536x128xbf16, #tpu.memory_space<vmem>>, vector<32x32xbf16>
    %cst_258 = arith.constant dense<0.000000e+00> : vector<8x32xf32>
    %502 = tpu.matmul %500, %501, %cst_258 {dimension_numbers = #tpu.dot_dimension_numbers<[1], [0], [0], [1], [0, 0, 1, 1], [], []>} : vector<8x32xbf16>, vector<32x32xbf16>, vector<8x32xf32> -> vector<8x32xf32>
    %503 = arith.addf %498, %502 : vector<8x32xf32>
    %c0_259 = arith.constant 0 : index
    %c23 = arith.constant 23 : index
    %504 = vector.load %arg3[%c0_259, %c23] : memref<32x29xf32, #tpu.memory_space<vmem>>, vector<8x1xf32>
    %505 = vector.broadcast %504 : vector<8x1xf32> to vector<8x32xf32>
    %506 = arith.addf %503, %505 : vector<8x32xf32>
    %507 = arith.addf %506, %469 : vector<8x32xf32>
    %cst_260 = arith.constant 0.00999999977 : f32
    %508 = vector.broadcast %cst_260 : f32 to vector<8x32xf32>
    %509 = arith.mulf %508, %507 : vector<8x32xf32>
    %510 = arith.maximumf %507, %509 : vector<8x32xf32>
    %c736 = arith.constant 736 : index
    %c0_261 = arith.constant 0 : index
    %511 = vector.load %arg2[%c736, %c0_261] : memref<864x16xbf16, #tpu.memory_space<vmem>>, vector<16x8xbf16>
    %512 = arith.truncf %510 : vector<8x32xf32> to vector<8x32xbf16>
    %cst_262 = arith.constant dense<0.000000e+00> : vector<16x32xf32>
    %513 = tpu.matmul %511, %512, %cst_262 {dimension_numbers = #tpu.dot_dimension_numbers<[1], [0], [0], [1], [0, 0, 1, 1], [], []>} : vector<16x8xbf16>, vector<8x32xbf16>, vector<16x32xf32> -> vector<16x32xf32>
    %c0_263 = arith.constant 0 : index
    %c24 = arith.constant 24 : index
    %514 = vector.load %arg3[%c0_263, %c24] : memref<32x29xf32, #tpu.memory_space<vmem>>, vector<16x1xf32>
    %515 = vector.broadcast %514 : vector<16x1xf32> to vector<16x32xf32>
    %516 = arith.addf %513, %515 : vector<16x32xf32>
    %517 = vector.extract_strided_slice %516 {offsets = [0, 0], sizes = [8, 32], strides = [1, 1]} : vector<16x32xf32> to vector<8x32xf32>
    %518 = arith.truncf %517 : vector<8x32xf32> to vector<8x32xbf16>
    %c1312 = arith.constant 1312 : index
    %c0_264 = arith.constant 0 : index
    %519 = vector.load %arg4[%c1312, %c0_264] : memref<1536x128xbf16, #tpu.memory_space<vmem>>, vector<32x64xbf16>
    %cst_265 = arith.constant dense<0.000000e+00> : vector<8x64xf32>
    %520 = tpu.matmul %518, %519, %cst_265 {dimension_numbers = #tpu.dot_dimension_numbers<[1], [0], [0], [1], [0, 0, 1, 1], [], []>} : vector<8x32xbf16>, vector<32x64xbf16>, vector<8x64xf32> -> vector<8x64xf32>
    %521 = vector.extract_strided_slice %516 {offsets = [8, 0], sizes = [8, 32], strides = [1, 1]} : vector<16x32xf32> to vector<8x32xf32>
    %522 = arith.truncf %521 : vector<8x32xf32> to vector<8x32xbf16>
    %c1344 = arith.constant 1344 : index
    %c0_266 = arith.constant 0 : index
    %523 = vector.load %arg4[%c1344, %c0_266] : memref<1536x128xbf16, #tpu.memory_space<vmem>>, vector<32x64xbf16>
    %cst_267 = arith.constant dense<0.000000e+00> : vector<8x64xf32>
    %524 = tpu.matmul %522, %523, %cst_267 {dimension_numbers = #tpu.dot_dimension_numbers<[1], [0], [0], [1], [0, 0, 1, 1], [], []>} : vector<8x32xbf16>, vector<32x64xbf16>, vector<8x64xf32> -> vector<8x64xf32>
    %525 = arith.addf %520, %524 : vector<8x64xf32>
    %c752 = arith.constant 752 : index
    %c0_268 = arith.constant 0 : index
    %526 = vector.load %arg2[%c752, %c0_268] : memref<864x16xbf16, #tpu.memory_space<vmem>>, vector<24x8xbf16>
    %527 = arith.truncf %525 : vector<8x64xf32> to vector<8x64xbf16>
    %cst_269 = arith.constant dense<0.000000e+00> : vector<24x64xf32>
    %528 = tpu.matmul %526, %527, %cst_269 {dimension_numbers = #tpu.dot_dimension_numbers<[1], [0], [0], [1], [0, 0, 1, 1], [], []>} : vector<24x8xbf16>, vector<8x64xbf16>, vector<24x64xf32> -> vector<24x64xf32>
    %529 = vector.extract_strided_slice %528 {offsets = [8, 0], sizes = [8, 64], strides = [1, 1]} : vector<24x64xf32> to vector<8x64xf32>
    %530 = vector.extract_strided_slice %528 {offsets = [0, 0], sizes = [8, 64], strides = [1, 1]} : vector<24x64xf32> to vector<8x64xf32>
    %531 = arith.truncf %530 : vector<8x64xf32> to vector<8x64xbf16>
    %c384_270 = arith.constant 384 : index
    %c0_271 = arith.constant 0 : index
    %532 = vector.load %arg4[%c384_270, %c0_271] : memref<1536x128xbf16, #tpu.memory_space<vmem>>, vector<64x64xbf16>
    %cst_272 = arith.constant dense<0.000000e+00> : vector<8x64xf32>
    %533 = tpu.matmul %531, %532, %cst_272 {dimension_numbers = #tpu.dot_dimension_numbers<[1], [0], [0], [1], [0, 0, 1, 1], [], []>} : vector<8x64xbf16>, vector<64x64xbf16>, vector<8x64xf32> -> vector<8x64xf32>
    %534 = arith.addf %529, %533 : vector<8x64xf32>
    %535 = vector.extract_strided_slice %528 {offsets = [16, 0], sizes = [8, 64], strides = [1, 1]} : vector<24x64xf32> to vector<8x64xf32>
    %536 = arith.truncf %535 : vector<8x64xf32> to vector<8x64xbf16>
    %c448_273 = arith.constant 448 : index
    %c0_274 = arith.constant 0 : index
    %537 = vector.load %arg4[%c448_273, %c0_274] : memref<1536x128xbf16, #tpu.memory_space<vmem>>, vector<64x64xbf16>
    %cst_275 = arith.constant dense<0.000000e+00> : vector<8x64xf32>
    %538 = tpu.matmul %536, %537, %cst_275 {dimension_numbers = #tpu.dot_dimension_numbers<[1], [0], [0], [1], [0, 0, 1, 1], [], []>} : vector<8x64xbf16>, vector<64x64xbf16>, vector<8x64xf32> -> vector<8x64xf32>
    %539 = arith.addf %534, %538 : vector<8x64xf32>
    %c0_276 = arith.constant 0 : index
    %c25 = arith.constant 25 : index
    %540 = vector.load %arg3[%c0_276, %c25] : memref<32x29xf32, #tpu.memory_space<vmem>>, vector<8x1xf32>
    %541 = vector.broadcast %540 : vector<8x1xf32> to vector<8x64xf32>
    %542 = arith.addf %539, %541 : vector<8x64xf32>
    %cst_277 = arith.constant 0.00999999977 : f32
    %543 = vector.broadcast %cst_277 : f32 to vector<8x64xf32>
    %544 = arith.mulf %543, %542 : vector<8x64xf32>
    %545 = arith.maximumf %542, %544 : vector<8x64xf32>
    %c784 = arith.constant 784 : index
    %c0_278 = arith.constant 0 : index
    %546 = vector.load %arg2[%c784, %c0_278] : memref<864x16xbf16, #tpu.memory_space<vmem>>, vector<24x8xbf16>
    %547 = arith.truncf %545 : vector<8x64xf32> to vector<8x64xbf16>
    %cst_279 = arith.constant dense<0.000000e+00> : vector<24x64xf32>
    %548 = tpu.matmul %546, %547, %cst_279 {dimension_numbers = #tpu.dot_dimension_numbers<[1], [0], [0], [1], [0, 0, 1, 1], [], []>} : vector<24x8xbf16>, vector<8x64xbf16>, vector<24x64xf32> -> vector<24x64xf32>
    %549 = vector.extract_strided_slice %548 {offsets = [8, 0], sizes = [8, 64], strides = [1, 1]} : vector<24x64xf32> to vector<8x64xf32>
    %550 = vector.extract_strided_slice %548 {offsets = [0, 0], sizes = [8, 64], strides = [1, 1]} : vector<24x64xf32> to vector<8x64xf32>
    %551 = arith.truncf %550 : vector<8x64xf32> to vector<8x64xbf16>
    %c384_280 = arith.constant 384 : index
    %c0_281 = arith.constant 0 : index
    %552 = vector.load %arg4[%c384_280, %c0_281] : memref<1536x128xbf16, #tpu.memory_space<vmem>>, vector<64x64xbf16>
    %cst_282 = arith.constant dense<0.000000e+00> : vector<8x64xf32>
    %553 = tpu.matmul %551, %552, %cst_282 {dimension_numbers = #tpu.dot_dimension_numbers<[1], [0], [0], [1], [0, 0, 1, 1], [], []>} : vector<8x64xbf16>, vector<64x64xbf16>, vector<8x64xf32> -> vector<8x64xf32>
    %554 = arith.addf %549, %553 : vector<8x64xf32>
    %555 = vector.extract_strided_slice %548 {offsets = [16, 0], sizes = [8, 64], strides = [1, 1]} : vector<24x64xf32> to vector<8x64xf32>
    %556 = arith.truncf %555 : vector<8x64xf32> to vector<8x64xbf16>
    %c448_283 = arith.constant 448 : index
    %c0_284 = arith.constant 0 : index
    %557 = vector.load %arg4[%c448_283, %c0_284] : memref<1536x128xbf16, #tpu.memory_space<vmem>>, vector<64x64xbf16>
    %cst_285 = arith.constant dense<0.000000e+00> : vector<8x64xf32>
    %558 = tpu.matmul %556, %557, %cst_285 {dimension_numbers = #tpu.dot_dimension_numbers<[1], [0], [0], [1], [0, 0, 1, 1], [], []>} : vector<8x64xbf16>, vector<64x64xbf16>, vector<8x64xf32> -> vector<8x64xf32>
    %559 = arith.addf %554, %558 : vector<8x64xf32>
    %c0_286 = arith.constant 0 : index
    %c26 = arith.constant 26 : index
    %560 = vector.load %arg3[%c0_286, %c26] : memref<32x29xf32, #tpu.memory_space<vmem>>, vector<8x1xf32>
    %561 = vector.broadcast %560 : vector<8x1xf32> to vector<8x64xf32>
    %562 = arith.addf %559, %561 : vector<8x64xf32>
    %563 = arith.addf %562, %525 : vector<8x64xf32>
    %cst_287 = arith.constant 0.00999999977 : f32
    %564 = vector.broadcast %cst_287 : f32 to vector<8x64xf32>
    %565 = arith.mulf %564, %563 : vector<8x64xf32>
    %566 = arith.maximumf %563, %565 : vector<8x64xf32>
    %c816 = arith.constant 816 : index
    %c0_288 = arith.constant 0 : index
    %567 = vector.load %arg2[%c816, %c0_288] : memref<864x16xbf16, #tpu.memory_space<vmem>>, vector<16x8xbf16>
    %568 = arith.truncf %566 : vector<8x64xf32> to vector<8x64xbf16>
    %cst_289 = arith.constant dense<0.000000e+00> : vector<16x64xf32>
    %569 = tpu.matmul %567, %568, %cst_289 {dimension_numbers = #tpu.dot_dimension_numbers<[1], [0], [0], [1], [0, 0, 1, 1], [], []>} : vector<16x8xbf16>, vector<8x64xbf16>, vector<16x64xf32> -> vector<16x64xf32>
    %c0_290 = arith.constant 0 : index
    %c27 = arith.constant 27 : index
    %570 = vector.load %arg3[%c0_290, %c27] : memref<32x29xf32, #tpu.memory_space<vmem>>, vector<16x1xf32>
    %571 = vector.broadcast %570 : vector<16x1xf32> to vector<16x64xf32>
    %572 = arith.addf %569, %571 : vector<16x64xf32>
    %573 = vector.extract_strided_slice %572 {offsets = [0, 0], sizes = [8, 64], strides = [1, 1]} : vector<16x64xf32> to vector<8x64xf32>
    %574 = arith.truncf %573 : vector<8x64xf32> to vector<8x64xbf16>
    %c1184 = arith.constant 1184 : index
    %c0_291 = arith.constant 0 : index
    %575 = vector.load %arg4[%c1184, %c0_291] : memref<1536x128xbf16, #tpu.memory_space<vmem>>, vector<64x128xbf16>
    %cst_292 = arith.constant dense<0.000000e+00> : vector<8x128xf32>
    %576 = tpu.matmul %574, %575, %cst_292 {dimension_numbers = #tpu.dot_dimension_numbers<[1], [0], [0], [1], [0, 0, 1, 1], [], []>} : vector<8x64xbf16>, vector<64x128xbf16>, vector<8x128xf32> -> vector<8x128xf32>
    %577 = vector.extract_strided_slice %572 {offsets = [8, 0], sizes = [8, 64], strides = [1, 1]} : vector<16x64xf32> to vector<8x64xf32>
    %578 = arith.truncf %577 : vector<8x64xf32> to vector<8x64xbf16>
    %c1248 = arith.constant 1248 : index
    %c0_293 = arith.constant 0 : index
    %579 = vector.load %arg4[%c1248, %c0_293] : memref<1536x128xbf16, #tpu.memory_space<vmem>>, vector<64x128xbf16>
    %cst_294 = arith.constant dense<0.000000e+00> : vector<8x128xf32>
    %580 = tpu.matmul %578, %579, %cst_294 {dimension_numbers = #tpu.dot_dimension_numbers<[1], [0], [0], [1], [0, 0, 1, 1], [], []>} : vector<8x64xbf16>, vector<64x128xbf16>, vector<8x128xf32> -> vector<8x128xf32>
    %581 = arith.addf %576, %580 : vector<8x128xf32>
    %c832 = arith.constant 832 : index
    %c0_295 = arith.constant 0 : index
    %582 = vector.load %arg2[%c832, %c0_295] : memref<864x16xbf16, #tpu.memory_space<vmem>>, vector<24x8xbf16>
    %583 = arith.truncf %581 : vector<8x128xf32> to vector<8x128xbf16>
    %cst_296 = arith.constant dense<0.000000e+00> : vector<24x128xf32>
    %584 = tpu.matmul %582, %583, %cst_296 {dimension_numbers = #tpu.dot_dimension_numbers<[1], [0], [0], [1], [0, 0, 1, 1], [], []>} : vector<24x8xbf16>, vector<8x128xbf16>, vector<24x128xf32> -> vector<24x128xf32>
    %585 = vector.extract_strided_slice %584 {offsets = [8, 0], sizes = [4, 128], strides = [1, 1]} : vector<24x128xf32> to vector<4x128xf32>
    %586 = vector.extract_strided_slice %584 {offsets = [0, 0], sizes = [4, 128], strides = [1, 1]} : vector<24x128xf32> to vector<4x128xf32>
    %587 = arith.truncf %586 : vector<4x128xf32> to vector<4x128xbf16>
    %c128_297 = arith.constant 128 : index
    %c0_298 = arith.constant 0 : index
    %588 = vector.load %arg4[%c128_297, %c0_298] : memref<1536x128xbf16, #tpu.memory_space<vmem>>, vector<128x128xbf16>
    %cst_299 = arith.constant dense<0.000000e+00> : vector<4x128xf32>
    %589 = tpu.matmul %587, %588, %cst_299 {dimension_numbers = #tpu.dot_dimension_numbers<[1], [0], [0], [1], [0, 0, 1, 1], [], []>} : vector<4x128xbf16>, vector<128x128xbf16>, vector<4x128xf32> -> vector<4x128xf32>
    %590 = arith.addf %585, %589 : vector<4x128xf32>
    %591 = vector.extract_strided_slice %584 {offsets = [16, 0], sizes = [4, 128], strides = [1, 1]} : vector<24x128xf32> to vector<4x128xf32>
    %592 = arith.truncf %591 : vector<4x128xf32> to vector<4x128xbf16>
    %c256_300 = arith.constant 256 : index
    %c0_301 = arith.constant 0 : index
    %593 = vector.load %arg4[%c256_300, %c0_301] : memref<1536x128xbf16, #tpu.memory_space<vmem>>, vector<128x128xbf16>
    %cst_302 = arith.constant dense<0.000000e+00> : vector<4x128xf32>
    %594 = tpu.matmul %592, %593, %cst_302 {dimension_numbers = #tpu.dot_dimension_numbers<[1], [0], [0], [1], [0, 0, 1, 1], [], []>} : vector<4x128xbf16>, vector<128x128xbf16>, vector<4x128xf32> -> vector<4x128xf32>
    %595 = arith.addf %590, %594 : vector<4x128xf32>
    %c0_303 = arith.constant 0 : index
    %c28 = arith.constant 28 : index
    %596 = vector.load %arg3[%c0_303, %c28] : memref<32x29xf32, #tpu.memory_space<vmem>>, vector<4x1xf32>
    %597 = vector.broadcast %596 : vector<4x1xf32> to vector<4x128xf32>
    %598 = arith.addf %595, %597 : vector<4x128xf32>
    %cst_304 = arith.constant 0.000000e+00 : f32
    %599 = vector.broadcast %cst_304 : f32 to vector<4x128xf32>
    %600 = arith.subf %599, %598 : vector<4x128xf32>
    %601 = math.exp %600 : vector<4x128xf32>
    %cst_305 = arith.constant 1.000000e+00 : f32
    %602 = vector.broadcast %cst_305 : f32 to vector<4x128xf32>
    %603 = arith.addf %602, %601 : vector<4x128xf32>
    %cst_306 = arith.constant 1.000000e+00 : f32
    %604 = vector.broadcast %cst_306 : f32 to vector<4x128xf32>
    %605 = arith.divf %604, %603 : vector<4x128xf32>
    %cst_307 = arith.constant 0.000000e+00 : f32
    %cst_308 = arith.constant 1.000000e+00 : f32
    %606 = vector.broadcast %cst_307 : f32 to vector<4x128xf32>
    %607 = arith.maximumf %606, %605 : vector<4x128xf32>
    %608 = vector.broadcast %cst_308 : f32 to vector<4x128xf32>
    %609 = arith.minimumf %608, %607 : vector<4x128xf32>
    %610 = vector.extract_strided_slice %609 {offsets = [0, 0], sizes = [4, 64], strides = [1, 1]} : vector<4x128xf32> to vector<4x64xf32>
    %c0_309 = arith.constant 0 : index
    %c0_310 = arith.constant 0 : index
    %c0_311 = arith.constant 0 : index
    %611 = vector.load %arg6[%c0_309, %c0_310, %c0_311] : memref<2x4x64xf32, #tpu.memory_space<vmem>>, vector<1x4x64xf32>
    %612 = vector.shape_cast %611 : vector<1x4x64xf32> to vector<4x64xf32>
    %613 = vector.shape_cast %610 : vector<4x64xf32> to vector<1x4x64xf32>
    tpu.vector_store %arg6[%c0_309, %c0_310, %c0_311], %613 {strides = array<i32>} : memref<2x4x64xf32, #tpu.memory_space<vmem>>, vector<1x4x64xf32>,
    %614 = vector.extract_strided_slice %609 {offsets = [0, 64], sizes = [4, 64], strides = [1, 1]} : vector<4x128xf32> to vector<4x64xf32>
    %c1_312 = arith.constant 1 : index
    %c0_313 = arith.constant 0 : index
    %c0_314 = arith.constant 0 : index
    %615 = vector.load %arg6[%c1_312, %c0_313, %c0_314] : memref<2x4x64xf32, #tpu.memory_space<vmem>>, vector<1x4x64xf32>
    %616 = vector.shape_cast %615 : vector<1x4x64xf32> to vector<4x64xf32>
    %617 = vector.shape_cast %614 : vector<4x64xf32> to vector<1x4x64xf32>
    tpu.vector_store %arg6[%c1_312, %c0_313, %c0_314], %617 {strides = array<i32>} : memref<2x4x64xf32, #tpu.memory_space<vmem>>, vector<1x4x64xf32>,
    return
  }
}

</mosaic_0001>

<bundles_post_ra>
// kernel: vae_cnn_forward.1
= control target key start
LH: loop header
LB: loop body
LE: loop exit
PB: predicated region body
PF: predicated region fallthrough
CT: control target
= control target key end

     0   :  { %12 = vsyncpa [#allocation3], 0  ;;  %s9179_s0 = inlined_call_operand.vmem [shape: f32[2,4,64], index: 0, kind: input, shape index: {}]   ;;  %s9180_s1 = inlined_call_operand.vmem [shape: f32[16,2], index: 1, kind: input, shape index: {}]   ;;  %s9181_s2 = inlined_call_operand.vmem [shape: bf16[864,16], index: 2, kind: input, shape index: {}]   ;;  %s9182_s3 = inlined_call_operand.vmem [shape: f32[32,29], index: 3, kind: input, shape index: {}]   ;;  %s9183_s4 = inlined_call_operand.hbm [shape: bf16[1536,128], index: 4, kind: input, shape index: {}]   ;;  %s9184_s5 = inlined_call_operand.vmem [shape: f32[32,2], index: 5, kind: output, shape index: {0}]   ;;  %s9185_s6 = inlined_call_operand.hbm [shape: f32[2,4,64], index: 6, kind: output, shape index: {1}]  }
   0x1   :  { %13 = vsyncpa [#allocation4], 0  ;;  %s8169_s21 = smov [#allocation2]  }
   0x2   :  { %s27_s22 = sshll.u32 %s8169_s21, 4  ;;  %s28_s22 = int_to_ptr.vmem [resolvable:$true] %s27_s22 }
   0x3   :  { %s8133_s23 = scalar_lea.vmem %s28_s22, 12288  ;;  %p8138_p1 = scmp.lt.s32.totalorder %s28_s22, %s28_s22 }
   0x4   :  { %p8134_p0 = scmp.ne.s32.totalorder %s28_s22, %s8133_s23  ;;  %p8139_p2 = scmp.lt.s32.totalorder %s8133_s23, %s8133_s23 }
   0x6   :  { %p8140_p3 = por %p8139_p2, %p8138_p1 }
   0x8   :  { %p8141_p4 = pnand %p8140_p3, %p8134_p0 }
   0xa   :  { %8144 = shalt.err (!%p8141_p4)
}
   0xb   :  { %s8170_s24 = smov 64   ;;  %s8171_s25 = smov 4  }
   0xc   :  { %33 = dma.hbm_to_vmem [thread:$0]  %s9183_s4, 12288, %s28_s22, [#allocation3], %s8170_s24, %s8170_s24, %s8171_s25  }
   0xd   :  { %8165 = dma.done.wait [#allocation3], 12288  }
   0xe   :  { %8166 = vsyncadd [#allocation3], 4294955008  ;;  %v8172_v0 = vmov 0.0   ;;  %vm8173_vm0 = vmmov 0   ;;  %v7948_v1 = vld [vmem:[#allocation2 + $0x38] sm:$0xff]   ;;  %v7950_v3 = vld [vmem:[#allocation2 + $0x30] sm:$0xff]  }
   0xf   :  { %7007 = vmatprep.subr.bf16.mxu0 %v8172_v0  ;;  %7019 = vmatprep.subr.bf16.mxu1 %v8172_v0  ;;  %v7949_v2 = vld [vmem:[#allocation2 + $0x18] sm:$0xff]   ;;  %v7951_v4 = vld [vmem:[#allocation2 + $0x10] sm:$0xff]   ;;  %v7952_v5 = vld [vmem:[#allocation2 + $0x28] sm:$0xff]   ;;  %vm83_vm1 = vcmask 523264   ;;  %vm206_vm2 = vcmask 31744   ;;  %vm213_vm3 = vcmask 1041408  }
  0x10   :  { %7015 = vmatprep.mubr.msk.bf16.mxu0 %vm8173_vm0, %v8172_v0  ;;  %7027 = vmatprep.mubr.msk.bf16.mxu1 %vm8173_vm0, %v8172_v0  ;;  %v7953_v6 = vld [vmem:[#allocation2 + $0x8] sm:$0xff]   ;;  %v7954_v7 = vld [vmem:[#allocation2 + $0x20] sm:$0xff]   ;;  %v8272_v14 = vld [vmem:[#allocation2 + $0x78] sm:$0xff]   ;;  %v8174_v43 = vmov 0   ;;  %vm496_vm4 = vcmask 64512   ;;  %vm503_vm5 = vcmask 1043456  }
  0x11   :  { %7008 = vmatpush3.bf16.msra.mxu0 %v7948_v1  ;;  %7020 = vmatpush3.bf16.msra.mxu1 %v7949_v2  ;;  %v6378_v8 = vld [vmem:[%s9179_s0 + $0x4] sm:$0xf]  ;;  %v38_v10 = vld [vmem:[%s9179_s0] sm:$0xf]  ;;  %v8276_v15 = vld [vmem:[#allocation2 + $0x70] sm:$0xff]   ;;  %vm1649_vm6 = vcmask 261120  }
  0x12   :  { %7009 = vmatprep.subr.bf16.mxu0 %v8172_v0  ;;  %7021 = vmatprep.subr.bf16.mxu1 %v8172_v0  ;;  %v7955_v9 = vld [vmem:[#allocation2] sm:$0xff]   ;;  %v50_v11 = vpack.c.bf16 %v6378_v8, %v6378_v8  ;;  %v39_v12 = vpack.c.bf16 %v38_v10, %v38_v10  ;;  %v8280_v16 = vld [vmem:[#allocation2 + $0x68] sm:$0xff]   ;;  %v8288_v18 = vld [vmem:[#allocation2 + $0x58] sm:$0xff]   ;;  %vm2124_vm7 = vcmask 130048   ;;  %vm3197_vm8 = vcmask 15360  }
  0x13   :  { %v7956_v13 = vld [vmem:[%s9181_s2] sm:$0xff]   ;;  %v8292_v19 = vld [vmem:[#allocation2 + $0x50] sm:$0xff]   ;;  %v8296_v20 = vld [vmem:[#allocation2 + $0x48] sm:$0xff]   ;;  %7914 = vset.pattern.permute.xlu0 %v8174_v43  ;;  %vm3285_vm9 = vcmask 1040384   ;;  %vm6349_vm10 = vcmask 519168  }
  0x14   :  { %v8284_v17 = vld [vmem:[#allocation2 + $0x60] sm:$0xff]   ;;  %v7957_v31 = vld [vmem:[%s9181_s2 + $0x8] ss:$0 sps:$4 sm:$0xff]   ;;  %v8305_v33 = vld [vmem:[#allocation2 + $0xb8] sm:$0xff]  }
  0x15   :  { %7010 = vmatpush3.bf16.msra.mxu0 %v7950_v3  ;;  %7022 = vmatpush3.bf16.msra.mxu1 %v7951_v4  ;;  %v8310_v34 = vld [vmem:[#allocation2 + $0xb0] sm:$0xff]   ;;  %v8316_v35 = vld [vmem:[#allocation2 + $0xa8] sm:$0xff]   ;;  %v8320_v36 = vld [vmem:[#allocation2 + $0xa0] sm:$0xff]   ;;  %v8175_v3 = vmov 1  }
  0x16   :  { %7011 = vmatprep.subr.bf16.mxu0 %v8172_v0  ;;  %7023 = vmatprep.subr.bf16.mxu1 %v8172_v0  ;;  %v8324_v37 = vld [vmem:[#allocation2 + $0x98] sm:$0xff]   ;;  %v8328_v38 = vld [vmem:[#allocation2 + $0x90] sm:$0xff]   ;;  %v8332_v39 = vld [vmem:[#allocation2 + $0x88] sm:$0xff]  }
  0x17   :  { %v8337_v40 = vld [vmem:[#allocation2 + $0x80] sm:$0xff]   ;;  %v7974_v49 = vld [vmem:[%s9181_s2 + $0x10] sm:$0xff]   ;;  %v7975_v2 = vld [vmem:[%s9181_s2 + $0x18] ss:$0 sps:$4 sm:$0xff]  }
  0x18   :  { %v8340_v41 = vld [vmem:[#allocation2 + $0x40] sm:$0xff]   ;;  %v7986_v43 = vld [vmem:[#allocation2 + $0x168] sm:$0xff]  }
  0x19   :  { %7012 = vmatpush3.bf16.msra.mxu0 %v7952_v5  ;;  %7024 = vmatpush3.bf16.msra.mxu1 %v7953_v6  ;;  %v8347_v42 = vld [vmem:[%s9182_s3] sm:$0xff] }
  0x1a   :  { %7013 = vmatprep.subr.bf16.mxu0 %v8172_v0  ;;  %7025 = vmatprep.subr.bf16.mxu1 %v8172_v0 }
  0x1b   :  { %480 = vperm.xlu0 %7914, %v8347_v42  }
  0x1d   :  { %7014 = vmatpush3.bf16.msra.mxu0 %v7954_v7  ;;  %7026 = vmatpush3.bf16.msra.mxu1 %v7955_v9  ;;  %v7976_v9 = vld [vmem:[%s9181_s2 + $0x20] sm:$0xff]  }
  0x1e   :  { %7037 = vmatprep.subr.bf16.mxu1 %v8172_v0 }
  0x1f   :  { %7915 = vset.pattern.permute.xlu0 %v8175_v3 }
  0x20   :  { %7016 = vmatmul.mubr.msk.bf16.vlgmr.msra.gmra.mxu0 %vm83_vm1, %v50_v11  ;;  %7028 = vmatmul.mubr.msk.bf16.vlgmr.msra.gmra.mxu1 %vm83_vm1, %v39_v12 }
  0x21   :  { %7053 = vmatprep.mubr.msk.bf16.mxu1 %vm8173_vm0, %v8172_v0  ;;  %7033 = vmatprep.mubr.msk.bf16.mxu0 %vm206_vm2, %v7956_v13 }
  0x22   :  { %7038 = vmatpush3.bf16.msra.mxu1 %v8272_v14  ;;  %640 = vperm.xlu0 %7915, %v8347_v42  }
  0x23   :  { %7039 = vmatprep.subr.bf16.mxu1 %v8172_v0 }
  0x26   :  { %7040 = vmatpush3.bf16.msra.mxu1 %v8276_v15 }
  0x27   :  { %7041 = vmatprep.subr.bf16.mxu1 %v8172_v0 }
  0x2a   :  { %7042 = vmatpush3.bf16.msra.mxu1 %v8280_v16 }
  0x2b   :  { %7043 = vmatprep.subr.bf16.mxu1 %v8172_v0 }
  0x2e   :  { %7044 = vmatpush3.bf16.msra.mxu1 %v8284_v17 }
  0x2f   :  { %7045 = vmatprep.subr.bf16.mxu1 %v8172_v0 }
  0x32   :  { %7046 = vmatpush3.bf16.msra.mxu1 %v8288_v18 }
  0x33   :  { %7047 = vmatprep.subr.bf16.mxu1 %v8172_v0 }
  0x36   :  { %7048 = vmatpush3.bf16.msra.mxu1 %v8292_v19 }
  0x37   :  { %7049 = vmatprep.subr.bf16.mxu1 %v8172_v0 }
  0x3a   :  { %7050 = vmatpush3.bf16.msra.mxu1 %v8296_v20 }
  0x3b   :  { %7051 = vmatprep.subr.bf16.mxu1 %v8172_v0 }
  0x3e   :  { %7052 = vmatpush3.bf16.msra.mxu1 %v8340_v41 }
  0x96   :  { %v481_v55 = vpop.permute.xlu0 %480 }
  0xe0   :  { %v121_v21 = vpop.f32.mrf.mxu0  ;;  %v188_v22 = vpop.f32.mrf.mxu1 }
  0xe1   :  { %v189_v23 = vadd.f32 %v188_v22, %v121_v21 }
  0xe2   :  { %v7017_v24 = vpop.f32.mrf.mxu0  ;;  %v7029_v25 = vpop.f32.mrf.mxu1 }
  0xe3   :  { %v197_v26 = vpack.c.bf16 %v189_v23, %v189_v23 }
  0xe4   :  { %v124_v27 = vpop.f32.mrf.mxu0  ;;  %v191_v28 = vpop.f32.mrf.mxu1 }
  0xe5   :  { %v215_v29 = vsel %vm213_vm3, %v197_v26, 0  ;;  %7855 = vmatprep.subr.msk.bf16.mxu0 %vm213_vm3, %v197_v26  ;;  %v7977_v27 = vld [vmem:[%s9181_s2 + $0x28] ss:$0 sps:$4 sm:$0xff]   ;;  %v8176_v28 = vmov 2  }
  0xe6   :  { %v7018_v30 = vpop.f32.mrf.mxu0  ;;  %v7030_v32 = vpop.f32.mrf.mxu1  ;;  %7032 = vmatpush3.bf16.msra.mxu0 %v215_v29  ;;  %7916 = vset.pattern.permute.xlu1 %v8176_v28 }
  0xe7   :  { %7057 = vmatprep.subr.bf16.mxu0 %v8172_v0  ;;  %800 = vperm.xlu1 %7916, %v8347_v42   ;;  %v7979_v30 = vld [vmem:[#allocation2 + $0x1c8] sm:$0xff]  }
  0xe9   :  { %7034 = vmatmul.mubr.msk.bf16.vlgmr.msra.gmra.mxu0 %vm206_vm2, %v7957_v31 }
  0xea   :  { %7058 = vmatpush3.bf16.msra.mxu0 %v8305_v33  ;;  %7073 = vmatprep.mubr.msk.bf16.mxu0 %vm8173_vm0, %v8172_v0 }
  0xeb   :  { %7059 = vmatprep.subr.bf16.mxu0 %v8172_v0 }
  0xee   :  { %7060 = vmatpush3.bf16.msra.mxu0 %v8310_v34 }
  0xef   :  { %7061 = vmatprep.subr.bf16.mxu0 %v8172_v0 }
  0xf2   :  { %7062 = vmatpush3.bf16.msra.mxu0 %v8316_v35 }
  0xf3   :  { %7063 = vmatprep.subr.bf16.mxu0 %v8172_v0 }
  0xf6   :  { %7064 = vmatpush3.bf16.msra.mxu0 %v8320_v36 }
  0xf7   :  { %7065 = vmatprep.subr.bf16.mxu0 %v8172_v0 }
  0xfa   :  { %7066 = vmatpush3.bf16.msra.mxu0 %v8324_v37 }
  0xfb   :  { %7067 = vmatprep.subr.bf16.mxu0 %v8172_v0 }
  0xfe   :  { %7068 = vmatpush3.bf16.msra.mxu0 %v8328_v38 }
  0xff   :  { %7069 = vmatprep.subr.bf16.mxu0 %v8172_v0 }
 0x102   :  { %7070 = vmatpush3.bf16.msra.mxu0 %v8332_v39 }
 0x103   :  { %7071 = vmatprep.subr.bf16.mxu0 %v8172_v0 }
 0x106   :  { %7072 = vmatpush3.bf16.msra.mxu0 %v8337_v40 }
 0x107   :  { %7083 = vmatprep.subr.bf16.mxu0 %v8172_v0 }
 0x1a9   :  { %v7035_v44 = vpop.f32.mrf.mxu0 }
 0x1aa   :  { %v371_v45 = vpack.c.bf16 %v7035_v44, %v7035_v44  ;;  %v7987_v44 = vld [vmem:[#allocation2 + $0x1a8] sm:$0xff]  }
 0x1ab   :  { %v251_v46 = vpop.f32.mrf.mxu0 }
 0x1ac   :  { %v265_v47 = vpack.c.bf16 %v251_v46, %v251_v46  ;;  %7074 = vmatmul.mubr.bf16.vlgmr.msra.gmra.mxu0 %v371_v45  ;;  %v7988_v45 = vld [vmem:[#allocation2 + $0x160] sm:$0xff]  }
 0x1ad   :  { %v7036_v48 = vpop.f32.mrf.mxu0  ;;  %7084 = vmatpush3.bf16.msra.mxu0 %v8272_v14  ;;  %7099 = vmatprep.mubr.msk.bf16.mxu0 %vm8173_vm0, %v8172_v0  ;;  %v7989_v46 = vld [vmem:[#allocation2 + $0x1a0] sm:$0xff]  }
 0x1ae   :  { %7054 = vmatmul.mubr.bf16.vlgmr.msra.gmra.mxu1 %v265_v47  ;;  %7085 = vmatprep.subr.bf16.mxu0 %v8172_v0  ;;  %v7990_v47 = vld [vmem:[#allocation2 + $0x158] sm:$0xff]  }
 0x1af   :  { %7079 = vmatprep.mubr.msk.bf16.mxu1 %vm496_vm4, %v7974_v49  ;;  %v254_v50 = vpop.f32.mrf.mxu0  ;;  %v7991_v48 = vld [vmem:[#allocation2 + $0x198] sm:$0xff]   ;;  %v7992_v49 = vld [vmem:[#allocation2 + $0x150] sm:$0xff]  }
 0x1b1   :  { %7086 = vmatpush3.bf16.msra.mxu0 %v8276_v15 }
 0x1b2   :  { %7087 = vmatprep.subr.bf16.mxu0 %v8172_v0 }
 0x1b5   :  { %7088 = vmatpush3.bf16.msra.mxu0 %v8280_v16 }
 0x1b6   :  { %7089 = vmatprep.subr.bf16.mxu0 %v8172_v0 }
 0x1b9   :  { %7090 = vmatpush3.bf16.msra.mxu0 %v8284_v17 }
 0x1ba   :  { %7091 = vmatprep.subr.bf16.mxu0 %v8172_v0 }
 0x1bd   :  { %7092 = vmatpush3.bf16.msra.mxu0 %v8288_v18 }
 0x1be   :  { %7093 = vmatprep.subr.bf16.mxu0 %v8172_v0 }
 0x1c1   :  { %7094 = vmatpush3.bf16.msra.mxu0 %v8292_v19 }
 0x1c2   :  { %7095 = vmatprep.subr.bf16.mxu0 %v8172_v0 }
 0x1c5   :  { %7096 = vmatpush3.bf16.msra.mxu0 %v8296_v20 }
 0x1c6   :  { %7097 = vmatprep.subr.bf16.mxu0 %v8172_v0 }
 0x1c9   :  { %7098 = vmatpush3.bf16.msra.mxu0 %v8340_v41 }
 0x26c   :  { %v470_v51 = vpop.f32.mrf.mxu0 }
 0x26e   :  { %v364_v52 = vpop.f32.mrf.mxu1  ;;  %v7075_v53 = vpop.f32.mrf.mxu0 }
 0x26f   :  { %v370_v54 = vadd.f32 %v364_v52, %v254_v50  ;;  %v7993_v50 = vld [vmem:[#allocation2 + $0x190] sm:$0xff]  }
 0x270   :  { %v7055_v56 = vpop.f32.mrf.mxu1  ;;  %v473_v57 = vpop.f32.mrf.mxu0 }
 0x271   :  { %v476_v58 = vadd.f32 %v470_v51, %v370_v54  ;;  %v801_v56 = vpop.permute.xlu1 %800 }
 0x272   :  { %v367_v59 = vpop.f32.mrf.mxu1  ;;  %v7076_v60 = vpop.f32.mrf.mxu0 }
 0x273   :  { %v8371_v61 = vadd.f32 %v481_v55, %v476_v58 }
 0x274   :  { %v7056_v62 = vpop.f32.mrf.mxu1 }
 0x275   :  { %v487_v63 = vpack.c.bf16 %v8371_v61, %v8371_v61 }
 0x277   :  { %7856 = vmatprep.subr.msk.bf16.mxu1 %vm503_vm5, %v487_v63  ;;  %v505_v1 = vsel %vm503_vm5, %v487_v63, 0 }
 0x278   :  { %7078 = vmatpush3.bf16.msra.mxu1 %v505_v1 }
 0x279   :  { %7103 = vmatprep.subr.bf16.mxu1 %v8172_v0 }
 0x27b   :  { %7080 = vmatmul.mubr.msk.bf16.vlgmr.msra.gmra.mxu1 %vm496_vm4, %v7975_v2 }
 0x27c   :  { %7104 = vmatpush3.bf16.msra.mxu1 %v8305_v33  ;;  %7119 = vmatprep.mubr.msk.bf16.mxu1 %vm8173_vm0, %v8172_v0 }
 0x27d   :  { %7105 = vmatprep.subr.bf16.mxu1 %v8172_v0 }
 0x280   :  { %7106 = vmatpush3.bf16.msra.mxu1 %v8310_v34 }
 0x281   :  { %7107 = vmatprep.subr.bf16.mxu1 %v8172_v0 }
 0x284   :  { %7108 = vmatpush3.bf16.msra.mxu1 %v8316_v35 }
 0x285   :  { %7109 = vmatprep.subr.bf16.mxu1 %v8172_v0 }
 0x288   :  { %7110 = vmatpush3.bf16.msra.mxu1 %v8320_v36 }
 0x289   :  { %7111 = vmatprep.subr.bf16.mxu1 %v8172_v0 }
 0x28c   :  { %7112 = vmatpush3.bf16.msra.mxu1 %v8324_v37 }
 0x28d   :  { %7113 = vmatprep.subr.bf16.mxu1 %v8172_v0 }
 0x290   :  { %7114 = vmatpush3.bf16.msra.mxu1 %v8328_v38 }
 0x291   :  { %7115 = vmatprep.subr.bf16.mxu1 %v8172_v0 }
 0x294   :  { %7116 = vmatpush3.bf16.msra.mxu1 %v8332_v39 }
 0x295   :  { %7117 = vmatprep.subr.bf16.mxu1 %v8172_v0 }
 0x298   :  { %7118 = vmatpush3.bf16.msra.mxu1 %v8337_v40 }
 0x299   :  { %7129 = vmatprep.subr.bf16.mxu1 %v8172_v0 }
 0x33b   :  { %v7081_v4 = vpop.f32.mrf.mxu1 }
 0x33c   :  { %v597_v5 = vpack.c.bf16 %v7081_v4, %v7081_v4 }
 0x33d   :  { %v541_v6 = vpop.f32.mrf.mxu1 }
 0x33e   :  { %v555_v7 = vpack.c.bf16 %v541_v6, %v541_v6  ;;  %7120 = vmatmul.mubr.bf16.vlgmr.msra.gmra.mxu1 %v597_v5  ;;  %v7994_v6 = vld [vmem:[%s9181_s2 + $0x30] sm:$0xff]  }
 0x33f   :  { %v7082_v8 = vpop.f32.mrf.mxu1  ;;  %7130 = vmatpush3.bf16.msra.mxu1 %v8272_v14  ;;  %7145 = vmatprep.mubr.msk.bf16.mxu1 %vm8173_vm0, %v8172_v0 }
 0x340   :  { %7100 = vmatmul.mubr.bf16.vlgmr.msra.gmra.mxu0 %v555_v7  ;;  %7131 = vmatprep.subr.bf16.mxu1 %v8172_v0  ;;  %v7997_v7 = vld [vmem:[#allocation2 + $0xd8] sm:$0xff]   ;;  %v7999_v8 = vld [vmem:[#allocation2 + $0xd0] sm:$0xff]  }
 0x341   :  { %7125 = vmatprep.mubr.msk.bf16.mxu0 %vm496_vm4, %v7976_v9  ;;  %v544_v10 = vpop.f32.mrf.mxu1 }
 0x343   :  { %7132 = vmatpush3.bf16.msra.mxu1 %v8276_v15  ;;  %v641_v15 = vpop.permute.xlu0 %640 }
 0x344   :  { %7133 = vmatprep.subr.bf16.mxu1 %v8172_v0 }
 0x347   :  { %7134 = vmatpush3.bf16.msra.mxu1 %v8280_v16 }
 0x348   :  { %7135 = vmatprep.subr.bf16.mxu1 %v8172_v0 }
 0x34b   :  { %7136 = vmatpush3.bf16.msra.mxu1 %v8284_v17 }
 0x34c   :  { %7137 = vmatprep.subr.bf16.mxu1 %v8172_v0 }
 0x34f   :  { %7138 = vmatpush3.bf16.msra.mxu1 %v8288_v18 }
 0x350   :  { %7139 = vmatprep.subr.bf16.mxu1 %v8172_v0 }
 0x353   :  { %7140 = vmatpush3.bf16.msra.mxu1 %v8292_v19 }
 0x354   :  { %7141 = vmatprep.subr.bf16.mxu1 %v8172_v0 }
 0x357   :  { %7142 = vmatpush3.bf16.msra.mxu1 %v8296_v20 }
 0x358   :  { %7143 = vmatprep.subr.bf16.mxu1 %v8172_v0 }
 0x35b   :  { %7144 = vmatpush3.bf16.msra.mxu1 %v8340_v41  ;;  %v7984_v41 = vld [vmem:[#allocation2 + $0x170] sm:$0xff]  }
 0x35c   :  { %7169 = vmatprep.subr.bf16.mxu1 %v8172_v0 }
 0x3fe   :  { %v632_v11 = vpop.f32.mrf.mxu1 }
 0x400   :  { %v590_v12 = vpop.f32.mrf.mxu0  ;;  %v7121_v13 = vpop.f32.mrf.mxu1 }
 0x401   :  { %v596_v14 = vadd.f32 %v590_v12, %v544_v10 }
 0x402   :  { %v7101_v16 = vpop.f32.mrf.mxu0  ;;  %v635_v17 = vpop.f32.mrf.mxu1 }
 0x403   :  { %v638_v18 = vadd.f32 %v632_v11, %v596_v14 }
 0x404   :  { %v593_v19 = vpop.f32.mrf.mxu0  ;;  %v7122_v20 = vpop.f32.mrf.mxu1 }
 0x405   :  { %v643_v21 = vadd.f32 %v641_v15, %v638_v18  ;;  %v7995_v18 = vld [vmem:[%s9181_s2 + $0x38] ss:$0 sps:$4 sm:$0xff]  }
 0x406   :  { %v7102_v22 = vpop.f32.mrf.mxu0 }
 0x407   :  { %v644_v23 = vmul.f32 0.01, %v643_v21  ;;  %v7998_v22 = vld [vmem:[#allocation2 + $0xf0] sm:$0xff]  }
 0x409   :  { %v645_v24 = vmax.f32 %v643_v21, %v644_v23  ;;  %v7996_v21 = vld [vmem:[#allocation2 + $0xf8] sm:$0xff]   ;;  %v8000_v23 = vld [vmem:[#allocation2 + $0xe8] sm:$0xff]  }
 0x40b   :  { %v649_v25 = vpack.c.bf16 %v645_v24, %v645_v24  ;;  %v8002_v24 = vld [vmem:[#allocation2 + $0xe0] sm:$0xff]  }
 0x40d   :  { %7857 = vmatprep.subr.msk.bf16.mxu0 %vm503_vm5, %v649_v25  ;;  %v665_v26 = vsel %vm503_vm5, %v649_v25, 0  ;;  %v8003_v25 = vld [vmem:[#allocation2 + $0xc0] sm:$0xff]  }
 0x40e   :  { %7124 = vmatpush3.bf16.msra.mxu0 %v665_v26  ;;  %v8177_v26 = vmov 3  }
 0x40f   :  { %7149 = vmatprep.subr.bf16.mxu0 %v8172_v0  ;;  %7917 = vset.pattern.permute.xlu1 %v8177_v26 }
 0x410   :  { %1241 = vperm.xlu1 %7917, %v8347_v42  }
 0x411   :  { %7126 = vmatmul.mubr.msk.bf16.vlgmr.msra.gmra.mxu0 %vm496_vm4, %v7977_v27 }
 0x412   :  { %7150 = vmatpush3.bf16.msra.mxu0 %v8305_v33  ;;  %7165 = vmatprep.mubr.msk.bf16.mxu0 %vm8173_vm0, %v8172_v0  ;;  %v7978_v33 = vld [vmem:[#allocation2 + $0x188] sm:$0xff]  }
 0x413   :  { %7151 = vmatprep.subr.bf16.mxu0 %v8172_v0 }
 0x416   :  { %7152 = vmatpush3.bf16.msra.mxu0 %v8310_v34 }
 0x417   :  { %7153 = vmatprep.subr.bf16.mxu0 %v8172_v0 }
 0x41a   :  { %7154 = vmatpush3.bf16.msra.mxu0 %v8316_v35 }
 0x41b   :  { %7155 = vmatprep.subr.bf16.mxu0 %v8172_v0 }
 0x41e   :  { %7156 = vmatpush3.bf16.msra.mxu0 %v8320_v36  ;;  %v7981_v36 = vld [vmem:[#allocation2 + $0x1c0] sm:$0xff]  }
 0x41f   :  { %7157 = vmatprep.subr.bf16.mxu0 %v8172_v0 }
 0x422   :  { %7158 = vmatpush3.bf16.msra.mxu0 %v8324_v37  ;;  %v7980_v37 = vld [vmem:[#allocation2 + $0x180] sm:$0xff]  }
 0x423   :  { %7159 = vmatprep.subr.bf16.mxu0 %v8172_v0 }
 0x426   :  { %7160 = vmatpush3.bf16.msra.mxu0 %v8328_v38  ;;  %v7983_v38 = vld [vmem:[#allocation2 + $0x1b8] sm:$0xff]  }
 0x427   :  { %7161 = vmatprep.subr.bf16.mxu0 %v8172_v0 }
 0x42a   :  { %7162 = vmatpush3.bf16.msra.mxu0 %v8332_v39  ;;  %v7982_v39 = vld [vmem:[#allocation2 + $0x178] sm:$0xff]  }
 0x42b   :  { %7163 = vmatprep.subr.bf16.mxu0 %v8172_v0 }
 0x42e   :  { %7164 = vmatpush3.bf16.msra.mxu0 %v8337_v40  ;;  %v7985_v40 = vld [vmem:[#allocation2 + $0x1b0] sm:$0xff]  }
 0x42f   :  { %7189 = vmatprep.subr.bf16.mxu0 %v8172_v0 }
 0x4d1   :  { %v7127_v29 = vpop.f32.mrf.mxu0 }
 0x4d2   :  { %v757_v31 = vpack.c.bf16 %v7127_v29, %v7127_v29 }
 0x4d3   :  { %v701_v32 = vpop.f32.mrf.mxu0 }
 0x4d4   :  { %v715_v34 = vpack.c.bf16 %v701_v32, %v701_v32  ;;  %7166 = vmatmul.mubr.bf16.vlgmr.msra.gmra.mxu0 %v757_v31  ;;  %v8004_v32 = vld [vmem:[%s9181_s2 + $0x40] sm:$0xff]  }
 0x4d5   :  { %v7128_v35 = vpop.f32.mrf.mxu0  ;;  %7190 = vmatpush3.bf16.msra.mxu0 %v7979_v30  ;;  %7205 = vmatprep.mubr.msk.bf16.mxu0 %vm8173_vm0, %v8172_v0 }
 0x4d6   :  { %7146 = vmatmul.mubr.bf16.vlgmr.msra.gmra.mxu1 %v715_v34  ;;  %7191 = vmatprep.subr.bf16.mxu0 %v8172_v0 }
 0x4d7   :  { %7170 = vmatpush3.bf16.msra.mxu1 %v7978_v33  ;;  %7185 = vmatprep.mubr.msk.bf16.mxu1 %vm8173_vm0, %v8172_v0  ;;  %v704_v51 = vpop.f32.mrf.mxu0 }
 0x4d8   :  { %7171 = vmatprep.subr.bf16.mxu1 %v8172_v0 }
 0x4d9   :  { %7192 = vmatpush3.bf16.msra.mxu0 %v7981_v36 }
 0x4da   :  { %7193 = vmatprep.subr.bf16.mxu0 %v8172_v0 }
 0x4db   :  { %7172 = vmatpush3.bf16.msra.mxu1 %v7980_v37 }
 0x4dc   :  { %7173 = vmatprep.subr.bf16.mxu1 %v8172_v0 }
 0x4dd   :  { %7194 = vmatpush3.bf16.msra.mxu0 %v7983_v38  ;;  %v1242_v38 = vpop.permute.xlu1 %1241 }
 0x4de   :  { %7195 = vmatprep.subr.bf16.mxu0 %v8172_v0 }
 0x4df   :  { %7174 = vmatpush3.bf16.msra.mxu1 %v7982_v39 }
 0x4e0   :  { %7175 = vmatprep.subr.bf16.mxu1 %v8172_v0 }
 0x4e1   :  { %7196 = vmatpush3.bf16.msra.mxu0 %v7985_v40 }
 0x4e2   :  { %7197 = vmatprep.subr.bf16.mxu0 %v8172_v0 }
 0x4e3   :  { %7176 = vmatpush3.bf16.msra.mxu1 %v7984_v41 }
 0x4e4   :  { %7177 = vmatprep.subr.bf16.mxu1 %v8172_v0 }
 0x4e5   :  { %7198 = vmatpush3.bf16.msra.mxu0 %v7987_v44 }
 0x4e6   :  { %7199 = vmatprep.subr.bf16.mxu0 %v8172_v0 }
 0x4e7   :  { %7178 = vmatpush3.bf16.msra.mxu1 %v7986_v43 }
 0x4e8   :  { %7179 = vmatprep.subr.bf16.mxu1 %v8172_v0 }
 0x4e9   :  { %7200 = vmatpush3.bf16.msra.mxu0 %v7989_v46 }
 0x4ea   :  { %7201 = vmatprep.subr.bf16.mxu0 %v8172_v0 }
 0x4eb   :  { %7180 = vmatpush3.bf16.msra.mxu1 %v7988_v45 }
 0x4ec   :  { %7181 = vmatprep.subr.bf16.mxu1 %v8172_v0 }
 0x4ed   :  { %7202 = vmatpush3.bf16.msra.mxu0 %v7991_v48 }
 0x4ee   :  { %7203 = vmatprep.subr.bf16.mxu0 %v8172_v0 }
 0x4ef   :  { %7182 = vmatpush3.bf16.msra.mxu1 %v7990_v47 }
 0x4f0   :  { %7183 = vmatprep.subr.bf16.mxu1 %v8172_v0 }
 0x4f1   :  { %7204 = vmatpush3.bf16.msra.mxu0 %v7993_v50 }
 0x4f2   :  { %7215 = vmatprep.subr.bf16.mxu0 %v8172_v0 }
 0x4f3   :  { %7184 = vmatpush3.bf16.msra.mxu1 %v7992_v49 }
 0x594   :  { %v792_v52 = vpop.f32.mrf.mxu0 }
 0x596   :  { %v750_v53 = vpop.f32.mrf.mxu1  ;;  %v7167_v54 = vpop.f32.mrf.mxu0 }
 0x597   :  { %v756_v55 = vadd.f32 %v750_v53, %v704_v51  ;;  %v8005_v51 = vld [vmem:[%s9181_s2 + $0x48] ss:$0 sps:$4 sm:$0xff]  }
 0x598   :  { %v7147_v57 = vpop.f32.mrf.mxu1  ;;  %v795_v58 = vpop.f32.mrf.mxu0 }
 0x599   :  { %v798_v59 = vadd.f32 %v792_v52, %v756_v55  ;;  %v8178_v52 = vmov 4   ;;  %v8006_v58 = vld [vmem:[#allocation2 + $0x1e8] sm:$0xff]  }
 0x59a   :  { %v753_v60 = vpop.f32.mrf.mxu1  ;;  %v7168_v62 = vpop.f32.mrf.mxu0  ;;  %7918 = vset.pattern.permute.xlu1 %v8178_v52 }
 0x59b   :  { %v803_v63 = vadd.f32 %v801_v56, %v798_v59  ;;  %1407 = vperm.xlu1 %7918, %v8347_v42   ;;  %v8007_v59 = vld [vmem:[#allocation2 + $0x208] sm:$0xff]   ;;  %v8008_v60 = vld [vmem:[#allocation2 + $0x1e0] sm:$0xff]  }
 0x59c   :  { %v7148_v1 = vpop.f32.mrf.mxu1  ;;  %v8009_v62 = vld [vmem:[#allocation2 + $0x200] sm:$0xff]  }
 0x59d   :  { %v804_v2 = vadd.f32 %v803_v63, %v8371_v61  ;;  %v8001_v61 = vld [vmem:[#allocation2 + $0xc8] sm:$0xff]   ;;  %v8010_v63 = vld [vmem:[#allocation2 + $0x1d8] sm:$0xff]  }
 0x59e   :  { %v8011_v1 = vld [vmem:[#allocation2 + $0x1f8] sm:$0xff]  }
 0x59f   :  { %v805_v3 = vmul.f32 0.01, %v804_v2 }
 0x5a1   :  { %v806_v4 = vmax.f32 %v804_v2, %v805_v3  ;;  %v8012_v2 = vld [vmem:[#allocation2 + $0x1d0] sm:$0xff]  }
 0x5a2   :  { %v8013_v3 = vld [vmem:[#allocation2 + $0x1f0] sm:$0xff]  }
 0x5a3   :  { %v807_v5 = vpack.c.bf16 %v806_v4, %v806_v4 }
 0x5a5   :  { %7186 = vmatmul.mubr.bf16.vlgmr.msra.gmra.mxu1 %v807_v5  ;;  %7206 = vmatmul.mubr.bf16.vlgmr.msra.gmra.mxu0 %v807_v5 }
 0x5a6   :  { %7223 = vmatprep.mubr.msk.bf16.mxu0 %vm8173_vm0, %v8172_v0  ;;  %7211 = vmatprep.mubr.msk.bf16.mxu1 %vm496_vm4, %v7994_v6 }
 0x5a7   :  { %7216 = vmatpush3.bf16.msra.mxu0 %v7997_v7 }
 0x5a8   :  { %7217 = vmatprep.subr.bf16.mxu0 %v8172_v0 }
 0x5ab   :  { %7218 = vmatpush3.bf16.msra.mxu0 %v7999_v8 }
 0x5ac   :  { %7219 = vmatprep.subr.bf16.mxu0 %v8172_v0 }
 0x5af   :  { %7220 = vmatpush3.bf16.msra.mxu0 %v8001_v61 }
 0x5b0   :  { %7221 = vmatprep.subr.bf16.mxu0 %v8172_v0 }
 0x5b3   :  { %7222 = vmatpush3.bf16.msra.mxu0 %v8003_v25 }
 0x665   :  { %v906_v9 = vpop.f32.mrf.mxu1  ;;  %v1010_v10 = vpop.f32.mrf.mxu0 }
 0x666   :  { %v8478_v11 = vmax.f32 %v906_v9, %v1010_v10 }
 0x667   :  { %v7187_v12 = vpop.f32.mrf.mxu1  ;;  %v7207_v13 = vpop.f32.mrf.mxu0 }
 0x668   :  { %v1020_v14 = vpack.c.bf16 %v8478_v11, %v8478_v11 }
 0x669   :  { %v909_v15 = vpop.f32.mrf.mxu1  ;;  %v1013_v16 = vpop.f32.mrf.mxu0 }
 0x66a   :  { %7858 = vmatprep.subr.msk.bf16.mxu1 %vm503_vm5, %v1020_v14  ;;  %v1036_v17 = vsel %vm503_vm5, %v1020_v14, 0 }
 0x66b   :  { %v7188_v19 = vpop.f32.mrf.mxu1  ;;  %v7208_v20 = vpop.f32.mrf.mxu0  ;;  %7210 = vmatpush3.bf16.msra.mxu1 %v1036_v17 }
 0x66c   :  { %7227 = vmatprep.subr.bf16.mxu1 %v8172_v0 }
 0x66e   :  { %7212 = vmatmul.mubr.msk.bf16.vlgmr.msra.gmra.mxu1 %vm496_vm4, %v7995_v18 }
 0x66f   :  { %7228 = vmatpush3.bf16.msra.mxu1 %v7996_v21  ;;  %7235 = vmatprep.mubr.msk.bf16.mxu1 %vm8173_vm0, %v8172_v0 }
 0x670   :  { %7229 = vmatprep.subr.bf16.mxu1 %v8172_v0 }
 0x673   :  { %7230 = vmatpush3.bf16.msra.mxu1 %v7998_v22 }
 0x674   :  { %7231 = vmatprep.subr.bf16.mxu1 %v8172_v0 }
 0x677   :  { %7232 = vmatpush3.bf16.msra.mxu1 %v8000_v23 }
 0x678   :  { %7233 = vmatprep.subr.bf16.mxu1 %v8172_v0 }
 0x67b   :  { %7234 = vmatpush3.bf16.msra.mxu1 %v8002_v24 }
 0x67c   :  { %7245 = vmatprep.subr.bf16.mxu1 %v8172_v0 }
 0x72e   :  { %v7213_v27 = vpop.f32.mrf.mxu1 }
 0x72f   :  { %v1163_v28 = vpack.c.bf16 %v7213_v27, %v7213_v27 }
 0x730   :  { %v1072_v29 = vpop.f32.mrf.mxu1 }
 0x731   :  { %v1086_v30 = vpack.c.bf16 %v1072_v29, %v1072_v29  ;;  %7236 = vmatmul.mubr.msk.bf16.vlgmr.msra.gmra.mxu1 %vm83_vm1, %v1163_v28 }
 0x732   :  { %v7214_v31 = vpop.f32.mrf.mxu1  ;;  %7246 = vmatpush3.bf16.msra.mxu1 %v7997_v7  ;;  %7253 = vmatprep.mubr.msk.bf16.mxu1 %vm8173_vm0, %v8172_v0 }
 0x733   :  { %7224 = vmatmul.mubr.msk.bf16.vlgmr.msra.gmra.mxu0 %vm83_vm1, %v1086_v30  ;;  %7247 = vmatprep.subr.bf16.mxu1 %v8172_v0  ;;  %v8015_v31 = vld [vmem:[%s9181_s2 + $0x58] ss:$0 sps:$4 sm:$0xff]  }
 0x734   :  { %7241 = vmatprep.mubr.msk.bf16.mxu0 %vm496_vm4, %v8004_v32  ;;  %v1075_v33 = vpop.f32.mrf.mxu1 }
 0x736   :  { %7248 = vmatpush3.bf16.msra.mxu1 %v7999_v8 }
 0x737   :  { %7249 = vmatprep.subr.bf16.mxu1 %v8172_v0 }
 0x73a   :  { %7250 = vmatpush3.bf16.msra.mxu1 %v8001_v61  ;;  %v1408_v61 = vpop.permute.xlu1 %1407 }
 0x73b   :  { %7251 = vmatprep.subr.bf16.mxu1 %v8172_v0 }
 0x73e   :  { %7252 = vmatpush3.bf16.msra.mxu1 %v8003_v25 }
 0x73f   :  { %7269 = vmatprep.subr.bf16.mxu1 %v8172_v0 }
 0x7f1   :  { %v1233_v34 = vpop.f32.mrf.mxu1 }
 0x7f3   :  { %v1156_v35 = vpop.f32.mrf.mxu0  ;;  %v7237_v36 = vpop.f32.mrf.mxu1 }
 0x7f4   :  { %v1162_v37 = vadd.f32 %v1156_v35, %v1075_v33  ;;  %v8018_v35 = vld [vmem:[#allocation2 + $0x110] sm:$0xff]   ;;  %v8019_v36 = vld [vmem:[#allocation2 + $0x100] sm:$0xff]  }
 0x7f5   :  { %v7225_v39 = vpop.f32.mrf.mxu0  ;;  %v1236_v40 = vpop.f32.mrf.mxu1 }
 0x7f6   :  { %v1239_v41 = vadd.f32 %v1233_v34, %v1162_v37  ;;  %v8016_v34 = vld [vmem:[#allocation2 + $0x118] sm:$0xff]   ;;  %v8179_v37 = vmov 5  }
 0x7f7   :  { %v1159_v43 = vpop.f32.mrf.mxu0  ;;  %v7238_v44 = vpop.f32.mrf.mxu1  ;;  %7919 = vset.pattern.permute.xlu0 %v8179_v37  ;;  %v8027_v37 = vld [vmem:[%s9181_s2 + $0x78] ss:$0 sps:$4 sm:$0xff]  }
 0x7f8   :  { %v1244_v45 = vadd.f32 %v1242_v38, %v1239_v41  ;;  %1756 = vperm.xlu0 %7919, %v8347_v42   ;;  %v8020_v44 = vld [vmem:[%s9181_s2 + $0x60] sm:$0xff]  }
 0x7f9   :  { %v7226_v46 = vpop.f32.mrf.mxu0 }
 0x7fa   :  { %v1245_v47 = vmul.f32 0.01, %v1244_v45 }
 0x7fc   :  { %v1246_v48 = vmax.f32 %v1244_v45, %v1245_v47 }
 0x7fe   :  { %v1250_v49 = vpack.c.bf16 %v1246_v48, %v1246_v48 }
 0x800   :  { %7859 = vmatprep.subr.msk.bf16.mxu0 %vm503_vm5, %v1250_v49  ;;  %v1266_v50 = vsel %vm503_vm5, %v1250_v49, 0 }
 0x801   :  { %7240 = vmatpush3.bf16.msra.mxu0 %v1266_v50 }
 0x802   :  { %7257 = vmatprep.subr.bf16.mxu0 %v8172_v0 }
 0x804   :  { %7242 = vmatmul.mubr.msk.bf16.vlgmr.msra.gmra.mxu0 %vm496_vm4, %v8005_v51 }
 0x805   :  { %7258 = vmatpush3.bf16.msra.mxu0 %v7996_v21  ;;  %7265 = vmatprep.mubr.msk.bf16.mxu0 %vm8173_vm0, %v8172_v0  ;;  %v8014_v21 = vld [vmem:[%s9181_s2 + $0x50] sm:$0xff]  }
 0x806   :  { %7259 = vmatprep.subr.bf16.mxu0 %v8172_v0 }
 0x809   :  { %7260 = vmatpush3.bf16.msra.mxu0 %v7998_v22  ;;  %v8017_v22 = vld [vmem:[#allocation2 + $0x108] sm:$0xff]  }
 0x80a   :  { %7261 = vmatprep.subr.bf16.mxu0 %v8172_v0 }
 0x80d   :  { %7262 = vmatpush3.bf16.msra.mxu0 %v8000_v23 }
 0x80e   :  { %7263 = vmatprep.subr.bf16.mxu0 %v8172_v0 }
 0x811   :  { %7264 = vmatpush3.bf16.msra.mxu0 %v8002_v24 }
 0x812   :  { %7281 = vmatprep.subr.bf16.mxu0 %v8172_v0 }
 0x873   :  { %v1757_v50 = vpop.permute.xlu0 %1756 }
 0x8c4   :  { %v7243_v53 = vpop.f32.mrf.mxu0 }
 0x8c5   :  { %v1361_v54 = vpack.c.bf16 %v7243_v53, %v7243_v53 }
 0x8c6   :  { %v1302_v55 = vpop.f32.mrf.mxu0 }
 0x8c7   :  { %v1316_v56 = vpack.c.bf16 %v1302_v55, %v1302_v55  ;;  %7266 = vmatmul.mubr.msk.bf16.vlgmr.msra.gmra.mxu0 %vm83_vm1, %v1361_v54 }
 0x8c8   :  { %v7244_v57 = vpop.f32.mrf.mxu0  ;;  %7289 = vmatprep.mubr.msk.bf16.mxu0 %vm8173_vm0, %v8172_v0  ;;  %7282 = vmatpush3.bf16.msra.mxu0 %v8007_v59 }
 0x8c9   :  { %7254 = vmatmul.mubr.msk.bf16.vlgmr.msra.gmra.mxu1 %vm83_vm1, %v1316_v56  ;;  %7283 = vmatprep.subr.bf16.mxu0 %v8172_v0 }
 0x8ca   :  { %7277 = vmatprep.mubr.msk.bf16.mxu1 %vm8173_vm0, %v8172_v0  ;;  %7270 = vmatpush3.bf16.msra.mxu1 %v8006_v58  ;;  %v1305_v4 = vpop.f32.mrf.mxu0 }
 0x8cb   :  { %7271 = vmatprep.subr.bf16.mxu1 %v8172_v0 }
 0x8cc   :  { %7284 = vmatpush3.bf16.msra.mxu0 %v8009_v62 }
 0x8cd   :  { %7285 = vmatprep.subr.bf16.mxu0 %v8172_v0 }
 0x8ce   :  { %7272 = vmatpush3.bf16.msra.mxu1 %v8008_v60 }
 0x8cf   :  { %7273 = vmatprep.subr.bf16.mxu1 %v8172_v0 }
 0x8d0   :  { %7286 = vmatpush3.bf16.msra.mxu0 %v8011_v1  ;;  %v8180_v1 = vmov 6  }
 0x8d1   :  { %7287 = vmatprep.subr.bf16.mxu0 %v8172_v0  ;;  %7920 = vset.pattern.permute.xlu1 %v8180_v1 }
 0x8d2   :  { %7274 = vmatpush3.bf16.msra.mxu1 %v8010_v63  ;;  %v8021_v63 = vld [vmem:[%s9181_s2 + $0x68] ss:$0 sps:$4 sm:$0xff]   ;;  %1922 = vperm.xlu1 %7920, %v8347_v42  }
 0x8d3   :  { %7275 = vmatprep.subr.bf16.mxu1 %v8172_v0 }
 0x8d4   :  { %7288 = vmatpush3.bf16.msra.mxu0 %v8013_v3 }
 0x8d5   :  { %7299 = vmatprep.subr.bf16.mxu0 %v8172_v0 }
 0x8d6   :  { %7276 = vmatpush3.bf16.msra.mxu1 %v8012_v2 }
 0x987   :  { %v1399_v5 = vpop.f32.mrf.mxu0 }
 0x989   :  { %v1354_v6 = vpop.f32.mrf.mxu1  ;;  %v7267_v7 = vpop.f32.mrf.mxu0 }
 0x98a   :  { %v1360_v8 = vadd.f32 %v1354_v6, %v1305_v4  ;;  %v8022_v7 = vld [vmem:[#allocation2 + $0x218] sm:$0xff]  }
 0x98b   :  { %v7255_v9 = vpop.f32.mrf.mxu1  ;;  %v1402_v10 = vpop.f32.mrf.mxu0 }
 0x98c   :  { %v1405_v12 = vadd.f32 %v1399_v5, %v1360_v8  ;;  %v8023_v8 = vld [vmem:[#allocation2 + $0x228] sm:$0xff]   ;;  %v8025_v9 = vld [vmem:[#allocation2 + $0x220] sm:$0xff]  }
 0x98d   :  { %v1357_v13 = vpop.f32.mrf.mxu1  ;;  %v7268_v14 = vpop.f32.mrf.mxu0 }
 0x98e   :  { %v1410_v15 = vadd.f32 %v1408_v61, %v1405_v12  ;;  %v8024_v61 = vld [vmem:[#allocation2 + $0x210] sm:$0xff]  }
 0x98f   :  { %v7256_v16 = vpop.f32.mrf.mxu1 }
 0x990   :  { %v1411_v17 = vadd.f32 %v1410_v15, %v8478_v11  ;;  %v1923_v16 = vpop.permute.xlu1 %1922 }
 0x992   :  { %v1412_v18 = vmul.f32 0.01, %v1411_v17 }
 0x994   :  { %v1413_v19 = vmax.f32 %v1411_v17, %v1412_v18 }
 0x996   :  { %v1414_v20 = vpack.c.bf16 %v1413_v19, %v1413_v19 }
 0x998   :  { %7278 = vmatmul.mubr.msk.bf16.vlgmr.msra.gmra.mxu1 %vm83_vm1, %v1414_v20  ;;  %7290 = vmatmul.mubr.msk.bf16.vlgmr.msra.gmra.mxu0 %vm83_vm1, %v1414_v20 }
 0x999   :  { %7303 = vmatprep.mubr.msk.bf16.mxu0 %vm8173_vm0, %v8172_v0  ;;  %7295 = vmatprep.mubr.msk.bf16.mxu1 %vm496_vm4, %v8014_v21 }
 0x99a   :  { %7300 = vmatpush3.bf16.msra.mxu0 %v8017_v22 }
 0x99b   :  { %7301 = vmatprep.subr.bf16.mxu0 %v8172_v0 }
 0x99e   :  { %7302 = vmatpush3.bf16.msra.mxu0 %v8019_v36 }
 0xa58   :  { %v1484_v11 = vpop.f32.mrf.mxu1  ;;  %v1556_v23 = vpop.f32.mrf.mxu0 }
 0xa59   :  { %v8545_v24 = vmax.f32 %v1484_v11, %v1556_v23 }
 0xa5a   :  { %v7279_v25 = vpop.f32.mrf.mxu1  ;;  %v7291_v26 = vpop.f32.mrf.mxu0 }
 0xa5b   :  { %v1566_v27 = vpack.c.bf16 %v8545_v24, %v8545_v24 }
 0xa5c   :  { %v1487_v28 = vpop.f32.mrf.mxu1  ;;  %v1559_v29 = vpop.f32.mrf.mxu0 }
 0xa5d   :  { %7860 = vmatprep.subr.msk.bf16.mxu1 %vm503_vm5, %v1566_v27  ;;  %v1582_v30 = vsel %vm503_vm5, %v1566_v27, 0  ;;  %v8026_v28 = vld [vmem:[%s9181_s2 + $0x70] sm:$0xff]  }
 0xa5e   :  { %v7280_v32 = vpop.f32.mrf.mxu1  ;;  %v7292_v33 = vpop.f32.mrf.mxu0  ;;  %7294 = vmatpush3.bf16.msra.mxu1 %v1582_v30 }
 0xa5f   :  { %7307 = vmatprep.subr.bf16.mxu1 %v8172_v0 }
 0xa61   :  { %7296 = vmatmul.mubr.msk.bf16.vlgmr.msra.gmra.mxu1 %vm496_vm4, %v8015_v31 }
 0xa62   :  { %7308 = vmatpush3.bf16.msra.mxu1 %v8016_v34  ;;  %7311 = vmatprep.mubr.msk.bf16.mxu1 %vm8173_vm0, %v8172_v0 }
 0xa63   :  { %7309 = vmatprep.subr.bf16.mxu1 %v8172_v0 }
 0xa66   :  { %7310 = vmatpush3.bf16.msra.mxu1 %v8018_v35 }
 0xa67   :  { %7321 = vmatprep.subr.bf16.mxu1 %v8172_v0 }
 0xb21   :  { %v7297_v38 = vpop.f32.mrf.mxu1 }
 0xb22   :  { %v1694_v39 = vpack.c.bf16 %v7297_v38, %v7297_v38 }
 0xb23   :  { %v1618_v40 = vpop.f32.mrf.mxu1 }
 0xb24   :  { %v1632_v41 = vpack.c.bf16 %v1618_v40, %v1618_v40  ;;  %7312 = vmatmul.mubr.msk.bf16.vlgmr.msra.gmra.mxu1 %vm1649_vm6, %v1694_v39  ;;  %v8028_v40 = vld [vmem:[#allocation2 + $0x128] sm:$0xff]  }
 0xb25   :  { %v7298_v43 = vpop.f32.mrf.mxu1  ;;  %7322 = vmatpush3.bf16.msra.mxu1 %v8017_v22  ;;  %7325 = vmatprep.mubr.msk.bf16.mxu1 %vm8173_vm0, %v8172_v0 }
 0xb26   :  { %7304 = vmatmul.mubr.msk.bf16.vlgmr.msra.gmra.mxu0 %vm1649_vm6, %v1632_v41  ;;  %7323 = vmatprep.subr.bf16.mxu1 %v8172_v0  ;;  %v8029_v41 = vld [vmem:[#allocation2 + $0x120] sm:$0xff]   ;;  %v8181_v43 = vmov 7  }
 0xb27   :  { %7317 = vmatprep.mubr.msk.bf16.mxu0 %vm496_vm4, %v8020_v44  ;;  %v1621_v45 = vpop.f32.mrf.mxu1  ;;  %7921 = vset.pattern.permute.xlu1 %v8181_v43 }
 0xb28   :  { %2223 = vperm.xlu1 %7921, %v8347_v42   ;;  %v8030_v42 = vld [vmem:[%s9181_s2 + $0x80] sm:$0xff]  }
 0xb29   :  { %7324 = vmatpush3.bf16.msra.mxu1 %v8019_v36 }
 0xb2a   :  { %7337 = vmatprep.subr.bf16.mxu1 %v8172_v0 }
 0xbe4   :  { %v1748_v46 = vpop.f32.mrf.mxu1 }
 0xbe6   :  { %v1687_v47 = vpop.f32.mrf.mxu0  ;;  %v7313_v48 = vpop.f32.mrf.mxu1 }
 0xbe7   :  { %v1693_v49 = vadd.f32 %v1687_v47, %v1621_v45 }
 0xbe8   :  { %v7305_v51 = vpop.f32.mrf.mxu0  ;;  %v1751_v52 = vpop.f32.mrf.mxu1 }
 0xbe9   :  { %v1754_v53 = vadd.f32 %v1748_v46, %v1693_v49 }
 0xbea   :  { %v1690_v54 = vpop.f32.mrf.mxu0  ;;  %v7314_v55 = vpop.f32.mrf.mxu1 }
 0xbeb   :  { %v1759_v56 = vadd.f32 %v1757_v50, %v1754_v53  ;;  %v2224_v54 = vpop.permute.xlu1 %2223 }
 0xbec   :  { %v7306_v57 = vpop.f32.mrf.mxu0 }
 0xbed   :  { %v1760_v58 = vmul.f32 0.01, %v1759_v56 }
 0xbef   :  { %v1761_v59 = vmax.f32 %v1759_v56, %v1760_v58 }
 0xbf1   :  { %v1765_v60 = vpack.c.bf16 %v1761_v59, %v1761_v59 }
 0xbf3   :  { %7861 = vmatprep.subr.msk.bf16.mxu0 %vm503_vm5, %v1765_v60  ;;  %v1781_v62 = vsel %vm503_vm5, %v1765_v60, 0 }
 0xbf4   :  { %7316 = vmatpush3.bf16.msra.mxu0 %v1781_v62 }
 0xbf5   :  { %7329 = vmatprep.subr.bf16.mxu0 %v8172_v0 }
 0xbf7   :  { %7318 = vmatmul.mubr.msk.bf16.vlgmr.msra.gmra.mxu0 %vm496_vm4, %v8021_v63 }
 0xbf8   :  { %7330 = vmatpush3.bf16.msra.mxu0 %v8016_v34  ;;  %7333 = vmatprep.mubr.msk.bf16.mxu0 %vm8173_vm0, %v8172_v0 }
 0xbf9   :  { %7331 = vmatprep.subr.bf16.mxu0 %v8172_v0 }
 0xbfc   :  { %7332 = vmatpush3.bf16.msra.mxu0 %v8018_v35 }
 0xbfd   :  { %7345 = vmatprep.subr.bf16.mxu0 %v8172_v0 }
 0xcb7   :  { %v7319_v2 = vpop.f32.mrf.mxu0 }
 0xcb8   :  { %v1876_v3 = vpack.c.bf16 %v7319_v2, %v7319_v2 }
 0xcb9   :  { %v1817_v4 = vpop.f32.mrf.mxu0 }
 0xcba   :  { %v1831_v5 = vpack.c.bf16 %v1817_v4, %v1817_v4  ;;  %7334 = vmatmul.mubr.msk.bf16.vlgmr.msra.gmra.mxu0 %vm1649_vm6, %v1876_v3  ;;  %v8031_v4 = vld [vmem:[%s9181_s2 + $0x88] ss:$0 sps:$4 sm:$0xff]  }
 0xcbb   :  { %v7320_v6 = vpop.f32.mrf.mxu0  ;;  %7349 = vmatprep.mubr.msk.bf16.mxu0 %vm8173_vm0, %v8172_v0  ;;  %7346 = vmatpush3.bf16.msra.mxu0 %v8023_v8 }
 0xcbc   :  { %7326 = vmatmul.mubr.msk.bf16.vlgmr.msra.gmra.mxu1 %vm1649_vm6, %v1831_v5  ;;  %7347 = vmatprep.subr.bf16.mxu0 %v8172_v0  ;;  %v8182_v5 = vmov 8   ;;  %v8638_v6 = vld [vmem:[%s9182_s3] sm:$0xff] }
 0xcbd   :  { %7341 = vmatprep.mubr.msk.bf16.mxu1 %vm8173_vm0, %v8172_v0  ;;  %7338 = vmatpush3.bf16.msra.mxu1 %v8022_v7  ;;  %v1820_v10 = vpop.f32.mrf.mxu0 }
 0xcbe   :  { %7339 = vmatprep.subr.bf16.mxu1 %v8172_v0  ;;  %7922 = vset.pattern.permute.xlu0 %v8182_v5 }
 0xcbf   :  { %7348 = vmatpush3.bf16.msra.mxu0 %v8025_v9  ;;  %2389 = vperm.xlu0 %7922, %v8638_v6  }
 0xcc0   :  { %7359 = vmatprep.subr.bf16.mxu0 %v8172_v0 }
 0xcc1   :  { %7340 = vmatpush3.bf16.msra.mxu1 %v8024_v61 }
 0xd7a   :  { %v1914_v12 = vpop.f32.mrf.mxu0 }
 0xd7c   :  { %v1869_v13 = vpop.f32.mrf.mxu1  ;;  %v7335_v14 = vpop.f32.mrf.mxu0 }
 0xd7d   :  { %v1875_v15 = vadd.f32 %v1869_v13, %v1820_v10  ;;  %v8033_v13 = vld [vmem:[#allocation2 + $0x238] sm:$0xff]  }
 0xd7e   :  { %v7327_v17 = vpop.f32.mrf.mxu1  ;;  %v1917_v18 = vpop.f32.mrf.mxu0 }
 0xd7f   :  { %v1920_v19 = vadd.f32 %v1914_v12, %v1875_v15  ;;  %v8032_v12 = vld [vmem:[#allocation2 + $0x230] sm:$0xff]  }
 0xd80   :  { %v1872_v20 = vpop.f32.mrf.mxu1  ;;  %v7336_v21 = vpop.f32.mrf.mxu0 }
 0xd81   :  { %v1925_v22 = vadd.f32 %v1923_v16, %v1920_v19  ;;  %v2390_v19 = vpop.permute.xlu0 %2389 }
 0xd82   :  { %v7328_v11 = vpop.f32.mrf.mxu1 }
 0xd83   :  { %v1926_v23 = vadd.f32 %v1925_v22, %v8545_v24 }
 0xd85   :  { %v1927_v25 = vmul.f32 0.01, %v1926_v23 }
 0xd87   :  { %v1928_v26 = vmax.f32 %v1926_v23, %v1927_v25 }
 0xd89   :  { %v1929_v27 = vpack.c.bf16 %v1928_v26, %v1928_v26 }
 0xd8b   :  { %7342 = vmatmul.mubr.msk.bf16.vlgmr.msra.gmra.mxu1 %vm1649_vm6, %v1929_v27  ;;  %7350 = vmatmul.mubr.msk.bf16.vlgmr.msra.gmra.mxu0 %vm1649_vm6, %v1929_v27 }
 0xd8c   :  { %7361 = vmatprep.mubr.msk.bf16.mxu0 %vm8173_vm0, %v8172_v0  ;;  %7355 = vmatprep.mubr.msk.bf16.mxu1 %vm496_vm4, %v8026_v28 }
 0xd8d   :  { %7360 = vmatpush3.bf16.msra.mxu0 %v8029_v41 }
 0xe4b   :  { %v1983_v29 = vpop.f32.mrf.mxu1  ;;  %v2039_v30 = vpop.f32.mrf.mxu0 }
 0xe4c   :  { %v8601_v31 = vmax.f32 %v1983_v29, %v2039_v30 }
 0xe4d   :  { %v7343_v24 = vpop.f32.mrf.mxu1  ;;  %v7351_v32 = vpop.f32.mrf.mxu0 }
 0xe4e   :  { %v2049_v33 = vpack.c.bf16 %v8601_v31, %v8601_v31  ;;  %v8034_v24 = vld [vmem:[%s9181_s2 + $0x90] sm:$0xff]  }
 0xe4f   :  { %v1986_v34 = vpop.f32.mrf.mxu1  ;;  %v2042_v35 = vpop.f32.mrf.mxu0 }
 0xe50   :  { %7862 = vmatprep.subr.msk.bf16.mxu1 %vm503_vm5, %v2049_v33  ;;  %v2065_v36 = vsel %vm503_vm5, %v2049_v33, 0 }
 0xe51   :  { %v7344_v38 = vpop.f32.mrf.mxu1  ;;  %v7352_v39 = vpop.f32.mrf.mxu0  ;;  %7354 = vmatpush3.bf16.msra.mxu1 %v2065_v36 }
 0xe52   :  { %7365 = vmatprep.subr.bf16.mxu1 %v8172_v0 }
 0xe54   :  { %7356 = vmatmul.mubr.msk.bf16.vlgmr.msra.gmra.mxu1 %vm496_vm4, %v8027_v37 }
 0xe55   :  { %7367 = vmatprep.mubr.msk.bf16.mxu1 %vm8173_vm0, %v8172_v0  ;;  %7366 = vmatpush3.bf16.msra.mxu1 %v8028_v40 }
 0xe56   :  { %7377 = vmatprep.subr.bf16.mxu1 %v8172_v0 }
 0xf14   :  { %v7357_v44 = vpop.f32.mrf.mxu1 }
 0xf15   :  { %v2169_v45 = vpack.c.bf16 %v7357_v44, %v7357_v44  ;;  %v2616_v44 = vld [vmem:[#allocation2 + $0x138] sm:$0xf] }
 0xf16   :  { %v2101_v46 = vpop.f32.mrf.mxu1 }
 0xf17   :  { %v2115_v47 = vpack.c.bf16 %v2101_v46, %v2101_v46  ;;  %7368 = vmatmul.mubr.msk.bf16.vlgmr.msra.gmra.mxu1 %vm2124_vm7, %v2169_v45  ;;  %v2621_v45 = vsel %vm503_vm5, %v2616_v44, 0  ;;  %v2567_v46 = vld [vmem:[#allocation2 + $0x130] sm:$0xf] }
 0xf18   :  { %v7358_v48 = vpop.f32.mrf.mxu1  ;;  %7378 = vmatpush3.bf16.msra.mxu1 %v8029_v41  ;;  %7379 = vmatprep.mubr.msk.bf16.mxu1 %vm8173_vm0, %v8172_v0 }
 0xf19   :  { %7362 = vmatmul.mubr.msk.bf16.vlgmr.msra.gmra.mxu0 %vm2124_vm7, %v2115_v47  ;;  %7389 = vmatprep.subr.bf16.mxu1 %v8172_v0  ;;  %v2572_v47 = vsel %vm503_vm5, %v2567_v46, 0  ;;  %v8183_v48 = vmov 9  }
 0xf1a   :  { %7373 = vmatprep.mubr.msk.bf16.mxu0 %vm496_vm4, %v8030_v42  ;;  %v2104_v49 = vpop.f32.mrf.mxu1  ;;  %7923 = vset.pattern.permute.xlu1 %v8183_v48 }
 0xf1b   :  { %2665 = vperm.xlu1 %7923, %v8638_v6  }
 0xfd7   :  { %v2215_v50 = vpop.f32.mrf.mxu1 }
 0xfd9   :  { %v2162_v51 = vpop.f32.mrf.mxu0  ;;  %v7369_v52 = vpop.f32.mrf.mxu1 }
 0xfda   :  { %v2168_v53 = vadd.f32 %v2162_v51, %v2104_v49 }
 0xfdb   :  { %v7363_v55 = vpop.f32.mrf.mxu0  ;;  %v2218_v56 = vpop.f32.mrf.mxu1 }
 0xfdc   :  { %v2221_v57 = vadd.f32 %v2215_v50, %v2168_v53  ;;  %v8036_v53 = vld [vmem:[%s9181_s2 + $0xa0] sm:$0xff]  }
 0xfdd   :  { %v2165_v58 = vpop.f32.mrf.mxu0  ;;  %v7370_v59 = vpop.f32.mrf.mxu1 }
 0xfde   :  { %v2226_v60 = vadd.f32 %v2224_v54, %v2221_v57  ;;  %v2666_v59 = vpop.permute.xlu1 %2665 }
 0xfdf   :  { %v7364_v62 = vpop.f32.mrf.mxu0 }
 0xfe0   :  { %v2227_v63 = vmul.f32 0.01, %v2226_v60 }
 0xfe2   :  { %v2228_v1 = vmax.f32 %v2226_v60, %v2227_v63 }
 0xfe4   :  { %v2232_v2 = vpack.c.bf16 %v2228_v1, %v2228_v1 }
 0xfe6   :  { %7863 = vmatprep.subr.msk.bf16.mxu0 %vm503_vm5, %v2232_v2  ;;  %v2248_v3 = vsel %vm503_vm5, %v2232_v2, 0 }
 0xfe7   :  { %7372 = vmatpush3.bf16.msra.mxu0 %v2248_v3 }
 0xfe8   :  { %7383 = vmatprep.subr.bf16.mxu0 %v8172_v0 }
 0xfea   :  { %7374 = vmatmul.mubr.msk.bf16.vlgmr.msra.gmra.mxu0 %vm496_vm4, %v8031_v4 }
 0xfeb   :  { %7384 = vmatpush3.bf16.msra.mxu0 %v8028_v40  ;;  %7385 = vmatprep.mubr.msk.bf16.mxu0 %vm8173_vm0, %v8172_v0  ;;  %v8035_v40 = vld [vmem:[%s9181_s2 + $0x98] ss:$0 sps:$4 sm:$0xff]  }
 0xfec   :  { %7395 = vmatprep.subr.bf16.mxu0 %v8172_v0 }
0x10aa   :  { %v7375_v7 = vpop.f32.mrf.mxu0 }
0x10ab   :  { %v2343_v8 = vpack.c.bf16 %v7375_v7, %v7375_v7 }
0x10ac   :  { %v2284_v61 = vpop.f32.mrf.mxu0 }
0x10ad   :  { %v2298_v9 = vpack.c.bf16 %v2284_v61, %v2284_v61  ;;  %7386 = vmatmul.mubr.msk.bf16.vlgmr.msra.gmra.mxu0 %vm2124_vm7, %v2343_v8 }
0x10ae   :  { %v7376_v10 = vpop.f32.mrf.mxu0  ;;  %7397 = vmatprep.mubr.msk.bf16.mxu0 %vm8173_vm0, %v8172_v0  ;;  %7396 = vmatpush3.bf16.msra.mxu0 %v8033_v13 }
0x10af   :  { %7380 = vmatmul.mubr.msk.bf16.vlgmr.msra.gmra.mxu1 %vm2124_vm7, %v2298_v9  ;;  %7407 = vmatprep.subr.bf16.mxu0 %v8172_v0  ;;  %v8037_v9 = vld [vmem:[%s9181_s2 + $0xa8] ss:$0 sps:$4 sm:$0xff]   ;;  %v8184_v10 = vmov 10  }
0x10b0   :  { %7391 = vmatprep.mubr.msk.bf16.mxu1 %vm8173_vm0, %v8172_v0  ;;  %7390 = vmatpush3.bf16.msra.mxu1 %v8032_v12  ;;  %v2287_v14 = vpop.f32.mrf.mxu0 }
0x10b1   :  { %7924 = vset.pattern.permute.xlu1 %v8184_v10 }
0x10b2   :  { %2831 = vperm.xlu1 %7924, %v8638_v6  }
0x116d   :  { %v2381_v15 = vpop.f32.mrf.mxu0 }
0x116f   :  { %v2336_v16 = vpop.f32.mrf.mxu1  ;;  %v7387_v17 = vpop.f32.mrf.mxu0 }
0x1170   :  { %v2342_v18 = vadd.f32 %v2336_v16, %v2287_v14  ;;  %v2839_v17 = vld [vmem:[#allocation2 + $0x240] sm:$0xf] }
0x1171   :  { %v7381_v20 = vpop.f32.mrf.mxu1  ;;  %v2384_v21 = vpop.f32.mrf.mxu0 }
0x1172   :  { %v2387_v22 = vadd.f32 %v2381_v15, %v2342_v18  ;;  %v2886_v18 = vld [vmem:[#allocation2 + $0x248] sm:$0xf] }
0x1173   :  { %v2339_v11 = vpop.f32.mrf.mxu1  ;;  %v7388_v23 = vpop.f32.mrf.mxu0  ;;  %v2888_v6 = vsel %vm503_vm5, %v2886_v18, 0 }
0x1174   :  { %v2392_v25 = vadd.f32 %v2390_v19, %v2387_v22  ;;  %v2844_v19 = vsel %vm503_vm5, %v2839_v17, 0 }
0x1175   :  { %v7382_v26 = vpop.f32.mrf.mxu1 }
0x1176   :  { %v2393_v27 = vadd.f32 %v2392_v25, %v8601_v31  ;;  %v2832_v25 = vpop.permute.xlu1 %2831 }
0x1178   :  { %v2394_v28 = vmul.f32 0.01, %v2393_v27 }
0x117a   :  { %v2395_v29 = vmax.f32 %v2393_v27, %v2394_v28 }
0x117c   :  { %v2396_v30 = vpack.c.bf16 %v2395_v29, %v2395_v29 }
0x117e   :  { %7392 = vmatmul.mubr.msk.bf16.vlgmr.msra.gmra.mxu1 %vm2124_vm7, %v2396_v30  ;;  %7398 = vmatmul.mubr.msk.bf16.vlgmr.msra.gmra.mxu0 %vm2124_vm7, %v2396_v30 }
0x117f   :  { %7409 = vmatprep.mubr.msk.bf16.mxu0 %vm8173_vm0, %v8172_v0  ;;  %7403 = vmatprep.mubr.msk.bf16.mxu1 %vm496_vm4, %v8034_v24 }
0x1180   :  { %7408 = vmatpush3.bf16.msra.mxu0 %v2572_v47 }
0x123e   :  { %v2442_v32 = vpop.f32.mrf.mxu1  ;;  %v2490_v33 = vpop.f32.mrf.mxu0 }
0x123f   :  { %v8657_v34 = vmax.f32 %v2442_v32, %v2490_v33 }
0x1240   :  { %v7393_v31 = vpop.f32.mrf.mxu1  ;;  %v7399_v35 = vpop.f32.mrf.mxu0 }
0x1241   :  { %v2500_v36 = vpack.c.bf16 %v8657_v34, %v8657_v34 }
0x1242   :  { %v2445_v37 = vpop.f32.mrf.mxu1  ;;  %v2493_v38 = vpop.f32.mrf.mxu0 }
0x1243   :  { %7864 = vmatprep.subr.msk.bf16.mxu1 %vm503_vm5, %v2500_v36  ;;  %v2516_v39 = vsel %vm503_vm5, %v2500_v36, 0  ;;  %v2932_v37 = vld [vmem:[#allocation2 + $0x2e0] sm:$0x3]  ;;  %v2984_v38 = vld [vmem:[#allocation2 + $0x2f0] sm:$0x3] }
0x1244   :  { %v7394_v41 = vpop.f32.mrf.mxu1  ;;  %v7400_v43 = vpop.f32.mrf.mxu0  ;;  %7402 = vmatpush3.bf16.msra.mxu1 %v2516_v39  ;;  %v2937_v39 = vsel %vm213_vm3, %v2932_v37, 0 }
0x1245   :  { %7413 = vmatprep.subr.bf16.mxu1 %v8172_v0 }
0x1247   :  { %7404 = vmatmul.mubr.msk.bf16.vlgmr.msra.gmra.mxu1 %vm496_vm4, %v8035_v40  ;;  %v2986_v40 = vsel %vm213_vm3, %v2984_v38, 0 }
0x1248   :  { %7415 = vmatprep.mubr.msk.bf16.mxu1 %vm8173_vm0, %v8172_v0  ;;  %7414 = vmatpush3.bf16.msra.mxu1 %v2621_v45 }
0x1249   :  { %7425 = vmatprep.subr.bf16.mxu1 %v8172_v0 }
0x1307   :  { %v7405_v42 = vpop.f32.mrf.mxu1 }
0x1308   :  { %v2615_v49 = vpack.c.bf16 %v7405_v42, %v7405_v42 }
0x1309   :  { %v2552_v50 = vpop.f32.mrf.mxu1 }
0x130a   :  { %v2566_v51 = vpack.c.bf16 %v2552_v50, %v2552_v50  ;;  %7416 = vmatmul.mubr.msk.bf16.vlgmr.msra.gmra.mxu1 %vm496_vm4, %v2615_v49  ;;  %v8038_v50 = vld [vmem:[%s9181_s2 + $0xc0] sm:$0xff]  }
0x130b   :  { %v7406_v52 = vpop.f32.mrf.mxu1  ;;  %7426 = vmatpush3.bf16.msra.mxu1 %v2572_v47  ;;  %7427 = vmatprep.mubr.msk.bf16.mxu1 %vm8173_vm0, %v8172_v0 }
0x130c   :  { %7410 = vmatmul.mubr.msk.bf16.vlgmr.msra.gmra.mxu0 %vm496_vm4, %v2566_v51  ;;  %7437 = vmatprep.subr.bf16.mxu1 %v8172_v0  ;;  %v8039_v51 = vld [vmem:[%s9181_s2 + $0xb0] sm:$0xff]   ;;  %v3172_v52 = vld [vmem:[%s9182_s3 + $0x18] sm:$0xff] }
0x130d   :  { %7421 = vmatprep.mubr.msk.bf16.mxu0 %vm496_vm4, %v8036_v53  ;;  %v2555_v54 = vpop.f32.mrf.mxu1  ;;  %v3171_v53 = vld [vmem:[%s9182_s3 + $0x10] sm:$0xff] }
0x13ca   :  { %v2657_v55 = vpop.f32.mrf.mxu1 }
0x13cc   :  { %v2608_v56 = vpop.f32.mrf.mxu0  ;;  %v7417_v57 = vpop.f32.mrf.mxu1 }
0x13cd   :  { %v2614_v58 = vadd.f32 %v2608_v56, %v2555_v54  ;;  %v8185_v54 = vmov 11   ;;  %v8737_v56 = vld [vmem:[%s9182_s3 + $0x8] sm:$0xff] }
0x13ce   :  { %v7411_v60 = vpop.f32.mrf.mxu0  ;;  %v2660_v62 = vpop.f32.mrf.mxu1  ;;  %7926 = vset.pattern.permute.xlu1 %v8185_v54  ;;  %7925 = vset.pattern.permute.xlu0 %v8185_v54 }
0x13cf   :  { %v2663_v63 = vadd.f32 %v2657_v55, %v2614_v58  ;;  %3190 = vperm.xlu1 %7926, %v3172_v52   ;;  %3185 = vperm.xlu0 %7925, %v3171_v53   ;;  %v8732_v55 = vld [vmem:[%s9182_s3] sm:$0xff] }
0x13d0   :  { %v2611_v1 = vpop.f32.mrf.mxu0  ;;  %v7418_v2 = vpop.f32.mrf.mxu1 }
0x13d1   :  { %v2668_v3 = vadd.f32 %v2666_v59, %v2663_v63 }
0x13d2   :  { %v7412_v4 = vpop.f32.mrf.mxu0 }
0x13d3   :  { %v2669_v5 = vmul.f32 0.01, %v2668_v3  ;;  %3175 = vperm.xlu1 %7926, %v8732_v55   ;;  %3180 = vperm.xlu0 %7925, %v8737_v56   ;;  %v8041_v4 = vld [vmem:[%s9181_s2 + $0xb8] sm:$0xff]  }
0x13d5   :  { %v2670_v7 = vmax.f32 %v2668_v3, %v2669_v5  ;;  %v8040_v3 = vld [vmem:[%s9181_s2 + $0xc8] sm:$0xff]  }
0x13d7   :  { %v2674_v8 = vpack.c.bf16 %v2670_v7, %v2670_v7 }
0x13d9   :  { %7865 = vmatprep.subr.msk.bf16.mxu0 %vm503_vm5, %v2674_v8  ;;  %v2690_v61 = vsel %vm503_vm5, %v2674_v8, 0 }
0x13da   :  { %7420 = vmatpush3.bf16.msra.mxu0 %v2690_v61 }
0x13db   :  { %7431 = vmatprep.subr.bf16.mxu0 %v8172_v0 }
0x13dd   :  { %7422 = vmatmul.mubr.msk.bf16.vlgmr.msra.gmra.mxu0 %vm496_vm4, %v8037_v9  ;;  %v8186_v9 = vmov 12  }
0x13de   :  { %7432 = vmatpush3.bf16.msra.mxu0 %v2621_v45  ;;  %7433 = vmatprep.mubr.msk.bf16.mxu0 %vm8173_vm0, %v8172_v0 }
0x13df   :  { %7443 = vmatprep.subr.bf16.mxu0 %v8172_v0  ;;  %7927 = vset.pattern.permute.xlu1 %v8186_v9 }
0x13e0   :  { %7928 = vset.pattern.permute.xlu0 %v8186_v9  ;;  %3221 = vperm.xlu1 %7927, %v8732_v55  }
0x13e1   :  { %3226 = vperm.xlu0 %7928, %v8737_v56  }
0x144a   :  { %v3191_v10 = vpop.permute.xlu1 %3190 }
0x149d   :  { %v7423_v12 = vpop.f32.mrf.mxu0 }
0x149e   :  { %v2785_v13 = vpack.c.bf16 %v7423_v12, %v7423_v12  ;;  %v3186_v12 = vpop.permute.xlu0 %3185 }
0x149f   :  { %v2726_v14 = vpop.f32.mrf.mxu0 }
0x14a0   :  { %v2740_v15 = vpack.c.bf16 %v2726_v14, %v2726_v14  ;;  %7434 = vmatmul.mubr.msk.bf16.vlgmr.msra.gmra.mxu0 %vm496_vm4, %v2785_v13 }
0x14a1   :  { %v7424_v16 = vpop.f32.mrf.mxu0  ;;  %7445 = vmatprep.mubr.msk.bf16.mxu0 %vm8173_vm0, %v8172_v0  ;;  %7444 = vmatpush3.bf16.msra.mxu0 %v2888_v6 }
0x14a2   :  { %7428 = vmatmul.mubr.msk.bf16.vlgmr.msra.gmra.mxu1 %vm496_vm4, %v2740_v15  ;;  %7455 = vmatprep.subr.bf16.mxu0 %v8172_v0  ;;  %v3176_v16 = vpop.permute.xlu1 %3175 }
0x14a3   :  { %7439 = vmatprep.mubr.msk.bf16.mxu1 %vm8173_vm0, %v8172_v0  ;;  %7438 = vmatpush3.bf16.msra.mxu1 %v2844_v19  ;;  %v2729_v20 = vpop.f32.mrf.mxu0 }
0x14a4   :  { %7449 = vmatprep.subr.bf16.mxu1 %v8172_v0 }
0x1560   :  { %v2823_v21 = vpop.f32.mrf.mxu0 }
0x1562   :  { %v2778_v22 = vpop.f32.mrf.mxu1  ;;  %v7435_v11 = vpop.f32.mrf.mxu0 }
0x1563   :  { %v2784_v23 = vadd.f32 %v2778_v22, %v2729_v20 }
0x1564   :  { %v7429_v26 = vpop.f32.mrf.mxu1  ;;  %v2826_v27 = vpop.f32.mrf.mxu0 }
0x1565   :  { %v2829_v28 = vadd.f32 %v2823_v21, %v2784_v23 }
0x1566   :  { %v2781_v29 = vpop.f32.mrf.mxu1  ;;  %v7436_v30 = vpop.f32.mrf.mxu0 }
0x1567   :  { %v2834_v24 = vadd.f32 %v2832_v25, %v2829_v28  ;;  %v3181_v30 = vpop.permute.xlu0 %3180 }
0x1568   :  { %v7430_v32 = vpop.f32.mrf.mxu1 }
0x1569   :  { %v2835_v33 = vadd.f32 %v2834_v24, %v8657_v34 }
0x156b   :  { %v2836_v31 = vmul.f32 0.01, %v2835_v33 }
0x156d   :  { %v2837_v35 = vmax.f32 %v2835_v33, %v2836_v31 }
0x156f   :  { %v2838_v36 = vpack.c.bf16 %v2837_v35, %v2837_v35  ;;  %v3202_v35 = vld [vmem:[%s9180_s1] sm:$0xff] }
0x1571   :  { %7440 = vmatmul.mubr.msk.bf16.vlgmr.msra.gmra.mxu1 %vm496_vm4, %v2838_v36  ;;  %7446 = vmatmul.mubr.msk.bf16.vlgmr.msra.gmra.mxu0 %vm496_vm4, %v2838_v36  ;;  %v3203_v36 = vld [vmem:[%s9180_s1 + $0x8] sm:$0xff] }
0x1572   :  { %7451 = vmatprep.mubr.msk.bf16.mxu1 %vm8173_vm0, %v8172_v0  ;;  %7457 = vmatprep.mubr.msk.bf16.mxu0 %vm8173_vm0, %v8172_v0 }
0x1573   :  { %7450 = vmatpush3.bf16.msra.mxu1 %v2937_v39  ;;  %7456 = vmatpush3.bf16.msra.mxu0 %v2986_v40 }
0x1631   :  { %v2880_v34 = vpop.f32.mrf.mxu1  ;;  %v2924_v41 = vpop.f32.mrf.mxu0 }
0x1632   :  { %v2930_v43 = vmax.f32 %v2880_v34, %v2924_v41 }
0x1633   :  { %v7441_v44 = vpop.f32.mrf.mxu1  ;;  %v7447_v45 = vpop.f32.mrf.mxu0 }
0x1634   :  { %v2931_v46 = vpack.c.bf16 %v2930_v43, %v2930_v43  ;;  %v8042_v43 = vld [vmem:[%s9181_s2 + $0xd0] sm:$0xff]   ;;  %v3279_v44 = vld [vmem:[#allocation2 + $0x2e8] sm:$0x1] }
0x1635   :  { %v2883_v47 = vpop.f32.mrf.mxu1  ;;  %v2927_v48 = vpop.f32.mrf.mxu0  ;;  %v3333_v45 = vsel %vm3285_vm9, %v3279_v44, 0 }
0x1636   :  { %7452 = vmatmul.mubr.msk.bf16.vlgmr.msra.gmra.mxu1 %vm206_vm2, %v2931_v46  ;;  %7458 = vmatmul.mubr.msk.bf16.vlgmr.msra.gmra.mxu0 %vm206_vm2, %v2931_v46  ;;  %v3281_v46 = vld [vmem:[#allocation2 + $0x2f8] sm:$0x1]  ;;  %v3222_v48 = vpop.permute.xlu1 %3221 }
0x1637   :  { %v7442_v42 = vpop.f32.mrf.mxu1  ;;  %v7448_v49 = vpop.f32.mrf.mxu0  ;;  %7463 = vmatprep.mubr.msk.bf16.mxu1 %vm496_vm4, %v8038_v50  ;;  %7469 = vmatprep.mubr.msk.bf16.mxu0 %vm496_vm4, %v8039_v51  ;;  %v3287_v47 = vsel %vm3285_vm9, %v3281_v46, 0 }
0x1638   :  { %v3227_v51 = vpop.permute.xlu0 %3226 }
0x16f6   :  { %v2973_v57 = vpop.f32.mrf.mxu1  ;;  %v3022_v58 = vpop.f32.mrf.mxu0 }
0x16f7   :  { %v2979_v59 = vpack.c.bf16 %v2973_v57, %v2973_v57  ;;  %v3028_v60 = vpack.c.bf16 %v3022_v58, %v3022_v58 }
0x16f8   :  { %v7453_v62 = vpop.f32.mrf.mxu1  ;;  %v7459_v63 = vpop.f32.mrf.mxu0 }
0x16f9   :  { %v3118_v1 = vsel %vm503_vm5, %v2979_v59, 0  ;;  %v3050_v2 = vsel %vm503_vm5, %v3028_v60, 0  ;;  %7866 = vmatprep.subr.msk.bf16.mxu1 %vm503_vm5, %v3028_v60  ;;  %7867 = vmatprep.subr.msk.bf16.mxu0 %vm503_vm5, %v2979_v59  ;;  %v8043_v59 = vld [vmem:[%s9181_s2 + $0xd8] sm:$0xff]  }
0x16fa   :  { %v2976_v5 = vpop.f32.mrf.mxu1  ;;  %v3025_v7 = vpop.f32.mrf.mxu0  ;;  %7462 = vmatpush3.bf16.msra.mxu1 %v3050_v2  ;;  %7468 = vmatpush3.bf16.msra.mxu0 %v3118_v1 }
0x16fb   :  { %7473 = vmatprep.subr.bf16.mxu1 %v8172_v0  ;;  %7479 = vmatprep.subr.bf16.mxu0 %v8172_v0 }
0x16fc   :  { %v7454_v8 = vpop.f32.mrf.mxu1  ;;  %v7460_v61 = vpop.f32.mrf.mxu0 }
0x16fd   :  { %7464 = vmatmul.mubr.msk.bf16.vlgmr.msra.gmra.mxu1 %vm496_vm4, %v8040_v3  ;;  %7470 = vmatmul.mubr.msk.bf16.vlgmr.msra.gmra.mxu0 %vm496_vm4, %v8041_v4  ;;  %v8044_v61 = vld [vmem:[%s9181_s2 + $0xe0] ss:$0 sps:$4 sm:$0xff]  }
0x16fe   :  { %7475 = vmatprep.mubr.msk.bf16.mxu1 %vm8173_vm0, %v8172_v0  ;;  %7481 = vmatprep.mubr.msk.bf16.mxu0 %vm8173_vm0, %v8172_v0 }
0x16ff   :  { %7480 = vmatpush3.bf16.msra.mxu0 %v3287_v47 }
0x17bd   :  { %v7465_v13 = vpop.f32.mrf.mxu1  ;;  %v7471_v14 = vpop.f32.mrf.mxu0 }
0x17be   :  { %v3163_v15 = vadd.f32 %v7471_v14, %v7465_v13  ;;  %v3445_v13 = vld [vmem:[#allocation2 + $0x140] sm:$0x3] }
0x17bf   :  { %v3086_v17 = vpop.f32.mrf.mxu1  ;;  %v3154_v18 = vpop.f32.mrf.mxu0  ;;  %v3450_v14 = vsel %vm213_vm3, %v3445_v13, 0 }
0x17c0   :  { %v3195_v19 = vadd.f32 %v3186_v12, %v3163_v15  ;;  %v3155_v6 = vadd.f32 %v3154_v18, %v3086_v17  ;;  %v8187_v15 = vmov 13  }
0x17c1   :  { %v7466_v20 = vpop.f32.mrf.mxu1  ;;  %v7472_v21 = vpop.f32.mrf.mxu0  ;;  %7929 = vset.pattern.permute.xlu1 %v8187_v15 }
0x17c2   :  { %3200 = vst.msk [vmem:[%s9184_s5 + $0x10] sm:$0xff] %vm3197_vm8, %v3195_v19  ;;  %v3204_v22 = vmul.f32 0.5, %v3195_v19  ;;  %v3193_v11 = vadd.f32 %v3176_v16, %v3155_v6  ;;  %v3166_v23 = vadd.f32 %v7472_v21, %v7466_v20  ;;  %3545 = vperm.xlu1 %7929, %v8732_v55   ;;  %v8045_v20 = vld [vmem:[%s9181_s2 + $0xe8] sm:$0xff]  }
0x17c3   :  { %v3089_v25 = vpop.f32.mrf.mxu1  ;;  %v3157_v26 = vpop.f32.mrf.mxu0 }
0x17c4   :  { %v3206_v27 = vmul.f32 1.442695, %v3204_v22  ;;  %3198 = vst.msk [vmem:[%s9184_s5] sm:$0xff] %vm3197_vm8, %v3193_v11  ;;  %v3196_v28 = vadd.f32 %v3191_v10, %v3166_v23  ;;  %v3158_v29 = vadd.f32 %v3157_v26, %v3089_v25  ;;  %v3494_v10 = vld [vmem:[#allocation2 + $0x148] sm:$0x3] }
0x17c5   :  { %v3499_v12 = vsel %vm213_vm3, %v3494_v10, 0 }
0x17c6   :  { %8114 = vpow2.f32 %v3206_v27  ;;  %3201 = vst.msk [vmem:[%s9184_s5 + $0x18] sm:$0xff] %vm3197_vm8, %v3196_v28  ;;  %v3205_v24 = vmul.f32 0.5, %v3196_v28  ;;  %v3194_v32 = vadd.f32 %v3181_v30, %v3158_v29 }
0x17c8   :  { %v3208_v33 = vmul.f32 1.442695, %v3205_v24  ;;  %3199 = vst.msk [vmem:[%s9184_s5 + $0x8] sm:$0xff] %vm3197_vm8, %v3194_v32 }
0x17ca   :  { %8116 = vpow2.f32 %v3208_v33 }
0x17d3   :  { %v8115_v31 = vpop.eup %8114 }
0x17d4   :  { %v3210_v37 = vmul.f32 %v8115_v31, %v3202_v35 }
0x17d6   :  { %v3212_v40 = vadd.f32 %v3210_v37, %v3193_v11 }
0x17d7   :  { %v8117_v38 = vpop.eup %8116 }
0x17d8   :  { %v3211_v39 = vmul.f32 %v8117_v38, %v3203_v36  ;;  %v8046_v38 = vld [vmem:[%s9181_s2 + $0xf0] ss:$0 sps:$4 sm:$0xff]  }
0x17da   :  { %v3213_v34 = vadd.f32 %v3211_v39, %v3194_v32  ;;  %v8188_v39 = vmov 14  }
0x17db   :  { %7930 = vset.pattern.permute.xlu1 %v8188_v39 }
0x17dc   :  { %v3216_v41 = vpack.c.bf16 %v3213_v34, %v3212_v40  ;;  %3711 = vperm.xlu1 %7930, %v8732_v55  }
0x17de   :  { %7474 = vmatpush3.bf16.msra.mxu1 %v3216_v41 }
0x17df   :  { %7485 = vmatprep.subr.bf16.mxu1 %v8172_v0 }
0x17e1   :  { %7476 = vmatmul.mubr.msk.bf16.vlgmr.msra.gmra.mxu1 %vm2124_vm7, %v8042_v43 }
0x17e2   :  { %7487 = vmatprep.mubr.msk.bf16.mxu1 %vm8173_vm0, %v8172_v0  ;;  %7486 = vmatpush3.bf16.msra.mxu1 %v3333_v45  ;;  %v8189_v45 = vmov 15  }
0x17e3   :  { %7497 = vmatprep.subr.bf16.mxu1 %v8172_v0  ;;  %7931 = vset.pattern.permute.xlu0 %v8189_v45 }
0x17e4   :  { %7932 = vset.pattern.permute.xlu1 %v8189_v45  ;;  %3722 = vperm.xlu0 %7931, %v8732_v55  }
0x17e5   :  { %3726 = vperm.xlu1 %7932, %v8737_v56  }
0x183d   :  { %v3546_v26 = vpop.permute.xlu1 %3545 }
0x18a1   :  { %v3271_v42 = vpop.f32.mrf.mxu1 }
0x18a2   :  { %v3272_v49 = vadd.f32 %v3271_v42, %v3222_v48 }
0x18a3   :  { %v7477_v50 = vpop.f32.mrf.mxu1 }
0x18a4   :  { %v3278_v52 = vpack.c.bf16 %v3272_v49, %v3272_v49  ;;  %v3712_v50 = vpop.permute.xlu1 %3711 }
0x18a5   :  { %v3274_v53 = vpop.f32.mrf.mxu1 }
0x18a6   :  { %v3275_v54 = vadd.f32 %v3274_v53, %v3227_v51  ;;  %7488 = vmatmul.mubr.msk.bf16.vlgmr.msra.gmra.mxu1 %vm3197_vm8, %v3278_v52 }
0x18a7   :  { %v7478_v57 = vpop.f32.mrf.mxu1  ;;  %7499 = vmatprep.mubr.msk.bf16.mxu1 %vm8173_vm0, %v8172_v0  ;;  %7498 = vmatpush3.bf16.msra.mxu1 %v3450_v14 }
0x18a8   :  { %v3280_v58 = vpack.c.bf16 %v3275_v54, %v3275_v54  ;;  %v3727_v13 = vpop.permute.xlu1 %3726 }
0x18aa   :  { %7482 = vmatmul.mubr.msk.bf16.vlgmr.msra.gmra.mxu0 %vm3197_vm8, %v3280_v58 }
0x18ab   :  { %7493 = vmatprep.mubr.msk.bf16.mxu0 %vm496_vm4, %v8043_v59 }
0x1966   :  { %v3369_v60 = vpop.f32.mrf.mxu1 }
0x1968   :  { %v7489_v62 = vpop.f32.mrf.mxu1 }
0x196a   :  { %v3323_v63 = vpop.f32.mrf.mxu0  ;;  %v3372_v1 = vpop.f32.mrf.mxu1 }
0x196b   :  { %v8799_v2 = vadd.f32 %v3369_v60, %v3323_v63 }
0x196c   :  { %v7483_v3 = vpop.f32.mrf.mxu0  ;;  %v7490_v4 = vpop.f32.mrf.mxu1 }
0x196d   :  { %v3378_v5 = vpack.c.bf16 %v8799_v2, %v8799_v2  ;;  %v8047_v4 = vld [vmem:[%s9181_s2 + $0xf8] sm:$0xff]  }
0x196e   :  { %v3326_v7 = vpop.f32.mrf.mxu0 }
0x196f   :  { %7868 = vmatprep.subr.msk.bf16.mxu0 %vm503_vm5, %v3378_v5  ;;  %v3394_v8 = vsel %vm503_vm5, %v3378_v5, 0  ;;  %v3782_v5 = vld [vmem:[#allocation2 + $0x2d0] sm:$0x3]  ;;  %v3784_v7 = vld [vmem:[#allocation2 + $0x2d8] sm:$0x3] }
0x1970   :  { %v7484_v9 = vpop.f32.mrf.mxu0  ;;  %7492 = vmatpush3.bf16.msra.mxu0 %v3394_v8  ;;  %v3789_v8 = vsel %vm213_vm3, %v3784_v7, 0 }
0x1971   :  { %7503 = vmatprep.subr.bf16.mxu0 %v8172_v0 }
0x1973   :  { %7494 = vmatmul.mubr.msk.bf16.vlgmr.msra.gmra.mxu0 %vm496_vm4, %v8044_v61  ;;  %v3723_v61 = vpop.permute.xlu0 %3722 }
0x1974   :  { %7505 = vmatprep.mubr.msk.bf16.mxu0 %vm8173_vm0, %v8172_v0  ;;  %7504 = vmatpush3.bf16.msra.mxu0 %v3499_v12 }
0x1975   :  { %7515 = vmatprep.subr.bf16.mxu0 %v8172_v0 }
0x1a33   :  { %v7495_v16 = vpop.f32.mrf.mxu0 }
0x1a34   :  { %v3493_v17 = vpack.c.bf16 %v7495_v16, %v7495_v16 }
0x1a35   :  { %v3430_v18 = vpop.f32.mrf.mxu0 }
0x1a36   :  { %v3444_v19 = vpack.c.bf16 %v3430_v18, %v3430_v18  ;;  %7506 = vmatmul.mubr.msk.bf16.vlgmr.msra.gmra.mxu0 %vm206_vm2, %v3493_v17 }
0x1a37   :  { %v7496_v6 = vpop.f32.mrf.mxu0  ;;  %7516 = vmatpush3.bf16.msra.mxu0 %v3450_v14  ;;  %7517 = vmatprep.mubr.msk.bf16.mxu0 %vm8173_vm0, %v8172_v0 }
0x1a38   :  { %7500 = vmatmul.mubr.msk.bf16.vlgmr.msra.gmra.mxu1 %vm206_vm2, %v3444_v19  ;;  %7527 = vmatprep.subr.bf16.mxu0 %v8172_v0  ;;  %v8048_v19 = vld [vmem:[%s9181_s2 + $0x100] sm:$0xff]  }
0x1a39   :  { %7511 = vmatprep.mubr.msk.bf16.mxu1 %vm496_vm4, %v8045_v20  ;;  %v3433_v21 = vpop.f32.mrf.mxu0 }
0x1af6   :  { %v3535_v22 = vpop.f32.mrf.mxu0 }
0x1af8   :  { %v3486_v11 = vpop.f32.mrf.mxu1  ;;  %v7507_v23 = vpop.f32.mrf.mxu0 }
0x1af9   :  { %v3492_v25 = vadd.f32 %v3486_v11, %v3433_v21 }
0x1afa   :  { %v7501_v27 = vpop.f32.mrf.mxu1  ;;  %v3538_v28 = vpop.f32.mrf.mxu0 }
0x1afb   :  { %v3541_v29 = vadd.f32 %v3535_v22, %v3492_v25 }
0x1afc   :  { %v3489_v30 = vpop.f32.mrf.mxu1  ;;  %v7508_v24 = vpop.f32.mrf.mxu0 }
0x1afd   :  { %v3548_v32 = vadd.f32 %v3546_v26, %v3541_v29  ;;  %v8049_v29 = vld [vmem:[%s9181_s2 + $0x108] ss:$0 sps:$4 sm:$0xff]   ;;  %v3996_v24 = vld [vmem:[#allocation2 + $0x138] sm:$0xf] }
0x1afe   :  { %v7502_v33 = vpop.f32.mrf.mxu1 }
0x1aff   :  { %v3549_v31 = vmul.f32 0.01, %v3548_v32  ;;  %v3947_v33 = vld [vmem:[#allocation2 + $0x130] sm:$0xf] }
0x1b01   :  { %v3550_v35 = vmax.f32 %v3548_v32, %v3549_v31  ;;  %v4001_v32 = vsel %vm503_vm5, %v3996_v24, 0  ;;  %v3952_v31 = vsel %vm503_vm5, %v3947_v33, 0 }
0x1b03   :  { %v3554_v36 = vpack.c.bf16 %v3550_v35, %v3550_v35  ;;  %v8190_v35 = vmov 16  }
0x1b04   :  { %7933 = vset.pattern.permute.xlu1 %v8190_v35 }
0x1b05   :  { %7869 = vmatprep.subr.msk.bf16.mxu1 %vm503_vm5, %v3554_v36  ;;  %v3570_v37 = vsel %vm503_vm5, %v3554_v36, 0  ;;  %4045 = vperm.xlu1 %7933, %v8732_v55  }
0x1b06   :  { %7510 = vmatpush3.bf16.msra.mxu1 %v3570_v37 }
0x1b07   :  { %7521 = vmatprep.subr.bf16.mxu1 %v8172_v0 }
0x1b09   :  { %7512 = vmatmul.mubr.msk.bf16.vlgmr.msra.gmra.mxu1 %vm496_vm4, %v8046_v38 }
0x1b0a   :  { %7522 = vmatpush3.bf16.msra.mxu1 %v3499_v12  ;;  %7523 = vmatprep.mubr.msk.bf16.mxu1 %vm8173_vm0, %v8172_v0 }
0x1b0b   :  { %7533 = vmatprep.subr.bf16.mxu1 %v8172_v0 }
0x1bc9   :  { %v7513_v40 = vpop.f32.mrf.mxu1 }
0x1bca   :  { %v3665_v34 = vpack.c.bf16 %v7513_v40, %v7513_v40 }
0x1bcb   :  { %v3606_v41 = vpop.f32.mrf.mxu1 }
0x1bcc   :  { %v3620_v43 = vpack.c.bf16 %v3606_v41, %v3606_v41  ;;  %7524 = vmatmul.mubr.msk.bf16.vlgmr.msra.gmra.mxu1 %vm206_vm2, %v3665_v34  ;;  %v8050_v34 = vld [vmem:[%s9181_s2 + $0x110] sm:$0xff]  }
0x1bcd   :  { %v7514_v44 = vpop.f32.mrf.mxu1  ;;  %7535 = vmatprep.mubr.msk.bf16.mxu1 %vm8173_vm0, %v8172_v0  ;;  %7534 = vmatpush3.bf16.msra.mxu1 %v3789_v8 }
0x1bce   :  { %7518 = vmatmul.mubr.msk.bf16.vlgmr.msra.gmra.mxu0 %vm206_vm2, %v3620_v43 }
0x1bcf   :  { %7529 = vmatprep.mubr.msk.bf16.mxu0 %vm8173_vm0, %v8172_v0  ;;  %v3609_v46 = vpop.f32.mrf.mxu1 }
0x1c8c   :  { %v3703_v47 = vpop.f32.mrf.mxu1 }
0x1c8e   :  { %v3658_v48 = vpop.f32.mrf.mxu0  ;;  %v7525_v42 = vpop.f32.mrf.mxu1 }
0x1c8f   :  { %v3664_v49 = vadd.f32 %v3658_v48, %v3609_v46 }
0x1c90   :  { %v7519_v51 = vpop.f32.mrf.mxu0  ;;  %v3706_v52 = vpop.f32.mrf.mxu1 }
0x1c91   :  { %v3709_v53 = vadd.f32 %v3703_v47, %v3664_v49  ;;  %v4046_v47 = vpop.permute.xlu1 %4045 }
0x1c92   :  { %v3661_v54 = vpop.f32.mrf.mxu0  ;;  %v7526_v57 = vpop.f32.mrf.mxu1 }
0x1c93   :  { %v3714_v58 = vadd.f32 %v3712_v50, %v3709_v53 }
0x1c94   :  { %v7520_v59 = vpop.f32.mrf.mxu0 }
0x1c95   :  { %v3715_v60 = vadd.f32 %v3714_v58, %v8799_v2  ;;  %v3835_v2 = vsel %vm213_vm3, %v3782_v5, 0 }
0x1c97   :  { %v3716_v62 = vmul.f32 0.01, %v3715_v60 }
0x1c99   :  { %v3717_v63 = vmax.f32 %v3715_v60, %v3716_v62  ;;  %v8051_v60 = vld [vmem:[%s9181_s2 + $0x118] ss:$0 sps:$4 sm:$0xff]   ;;  %v8191_v62 = vmov 17  }
0x1c9a   :  { %7934 = vset.pattern.permute.xlu0 %v8191_v62  ;;  %v8057_v62 = vld [vmem:[%s9181_s2 + $0x138] sm:$0xff]  }
0x1c9b   :  { %v3720_v1 = vpack.c.bf16 %v3717_v63, %v3717_v63  ;;  %4211 = vperm.xlu0 %7934, %v8732_v55  }
0x1c9d   :  { %v3738_v3 = vsel %vm503_vm5, %v3720_v1, 0 }
0x1c9e   :  { %7528 = vmatpush3.bf16.msra.mxu0 %v3738_v3 }
0x1c9f   :  { %7539 = vmatprep.subr.bf16.mxu0 %v8172_v0 }
0x1ca1   :  { %7530 = vmatmul.mubr.msk.bf16.vlgmr.msra.gmra.mxu0 %vm496_vm4, %v8047_v4 }
0x1ca2   :  { %7541 = vmatprep.mubr.msk.bf16.mxu0 %vm8173_vm0, %v8172_v0  ;;  %7540 = vmatpush3.bf16.msra.mxu0 %v3835_v2  ;;  %v8192_v2 = vmov 18  }
0x1ca3   :  { %7551 = vmatprep.subr.bf16.mxu0 %v8172_v0  ;;  %7935 = vset.pattern.permute.xlu1 %v8192_v2 }
0x1ca4   :  { %4222 = vperm.xlu1 %7935, %v8732_v55  }
0x1ca8   :  { %4226 = vperm.xlu1 %7935, %v8737_v56  }
0x1d61   :  { %v3774_v9 = vpop.f32.mrf.mxu0 }
0x1d62   :  { %v3775_v10 = vadd.f32 %v3774_v9, %v3723_v61 }
0x1d63   :  { %v7531_v12 = vpop.f32.mrf.mxu0 }
0x1d64   :  { %v3781_v14 = vpack.c.bf16 %v3775_v10, %v3775_v10  ;;  %v4212_v12 = vpop.permute.xlu0 %4211 }
0x1d65   :  { %v3777_v15 = vpop.f32.mrf.mxu0 }
0x1d66   :  { %v3778_v16 = vadd.f32 %v3777_v15, %v3727_v13  ;;  %7542 = vmatmul.mubr.msk.bf16.vlgmr.msra.gmra.mxu0 %vm206_vm2, %v3781_v14 }
0x1d67   :  { %v7532_v17 = vpop.f32.mrf.mxu0  ;;  %7553 = vmatprep.mubr.msk.bf16.mxu0 %vm8173_vm0, %v8172_v0  ;;  %7552 = vmatpush3.bf16.msra.mxu0 %v3952_v31 }
0x1d68   :  { %v3783_v18 = vpack.c.bf16 %v3778_v16, %v3778_v16 }
0x1d6a   :  { %7536 = vmatmul.mubr.msk.bf16.vlgmr.msra.gmra.mxu1 %vm206_vm2, %v3783_v18 }
0x1d6b   :  { %7547 = vmatprep.mubr.msk.bf16.mxu1 %vm496_vm4, %v8048_v19 }
0x1e26   :  { %v3871_v6 = vpop.f32.mrf.mxu0 }
0x1e28   :  { %v7543_v20 = vpop.f32.mrf.mxu0 }
0x1e2a   :  { %v3825_v21 = vpop.f32.mrf.mxu1  ;;  %v3874_v22 = vpop.f32.mrf.mxu0 }
0x1e2b   :  { %v8864_v11 = vadd.f32 %v3871_v6, %v3825_v21 }
0x1e2c   :  { %v7537_v23 = vpop.f32.mrf.mxu1  ;;  %v7544_v25 = vpop.f32.mrf.mxu0 }
0x1e2d   :  { %v3880_v26 = vpack.c.bf16 %v8864_v11, %v8864_v11  ;;  %v8052_v25 = vld [vmem:[%s9181_s2 + $0x120] sm:$0xff]  }
0x1e2e   :  { %v3828_v27 = vpop.f32.mrf.mxu1 }
0x1e2f   :  { %7870 = vmatprep.subr.msk.bf16.mxu1 %vm503_vm5, %v3880_v26  ;;  %v3896_v28 = vsel %vm503_vm5, %v3880_v26, 0  ;;  %v4282_v26 = vld [vmem:[#allocation2 + $0x2c0] sm:$0xf]  ;;  %v4284_v27 = vld [vmem:[#allocation2 + $0x2c8] sm:$0xf] }
0x1e30   :  { %v7538_v30 = vpop.f32.mrf.mxu1  ;;  %7546 = vmatpush3.bf16.msra.mxu1 %v3896_v28  ;;  %v4289_v28 = vsel %vm503_vm5, %v4284_v27, 0 }
0x1e31   :  { %7557 = vmatprep.subr.bf16.mxu1 %v8172_v0 }
0x1e33   :  { %7548 = vmatmul.mubr.msk.bf16.vlgmr.msra.gmra.mxu1 %vm496_vm4, %v8049_v29  ;;  %v4223_v29 = vpop.permute.xlu1 %4222 }
0x1e34   :  { %7559 = vmatprep.mubr.msk.bf16.mxu1 %vm8173_vm0, %v8172_v0  ;;  %7558 = vmatpush3.bf16.msra.mxu1 %v4001_v32 }
0x1e35   :  { %7569 = vmatprep.subr.bf16.mxu1 %v8172_v0 }
0x1ef3   :  { %v7549_v36 = vpop.f32.mrf.mxu1 }
0x1ef4   :  { %v3995_v37 = vpack.c.bf16 %v7549_v36, %v7549_v36 }
0x1ef5   :  { %v3932_v38 = vpop.f32.mrf.mxu1 }
0x1ef6   :  { %v3946_v39 = vpack.c.bf16 %v3932_v38, %v3932_v38  ;;  %7560 = vmatmul.mubr.msk.bf16.vlgmr.msra.gmra.mxu1 %vm496_vm4, %v3995_v37 }
0x1ef7   :  { %v7550_v40 = vpop.f32.mrf.mxu1  ;;  %7570 = vmatpush3.bf16.msra.mxu1 %v3952_v31  ;;  %7571 = vmatprep.mubr.msk.bf16.mxu1 %vm8173_vm0, %v8172_v0  ;;  %v4227_v31 = vpop.permute.xlu1 %4226 }
0x1ef8   :  { %7554 = vmatmul.mubr.msk.bf16.vlgmr.msra.gmra.mxu0 %vm496_vm4, %v3946_v39  ;;  %7581 = vmatprep.subr.bf16.mxu1 %v8172_v0  ;;  %v8053_v39 = vld [vmem:[%s9181_s2 + $0x128] sm:$0xff]  }
0x1ef9   :  { %7565 = vmatprep.mubr.msk.bf16.mxu0 %vm496_vm4, %v8050_v34  ;;  %v3935_v41 = vpop.f32.mrf.mxu1 }
0x1fb6   :  { %v4037_v43 = vpop.f32.mrf.mxu1 }
0x1fb8   :  { %v3988_v44 = vpop.f32.mrf.mxu0  ;;  %v7561_v45 = vpop.f32.mrf.mxu1 }
0x1fb9   :  { %v3994_v46 = vadd.f32 %v3988_v44, %v3935_v41 }
0x1fba   :  { %v7555_v48 = vpop.f32.mrf.mxu0  ;;  %v4040_v42 = vpop.f32.mrf.mxu1 }
0x1fbb   :  { %v4043_v49 = vadd.f32 %v4037_v43, %v3994_v46 }
0x1fbc   :  { %v3991_v50 = vpop.f32.mrf.mxu0  ;;  %v7562_v51 = vpop.f32.mrf.mxu1 }
0x1fbd   :  { %v4048_v52 = vadd.f32 %v4046_v47, %v4043_v49  ;;  %v8054_v49 = vld [vmem:[%s9181_s2 + $0x130] ss:$0 sps:$4 sm:$0xff]   ;;  %v8055_v51 = vld [vmem:[#allocation2 + $0x128] sm:$0xff]  }
0x1fbe   :  { %v7556_v53 = vpop.f32.mrf.mxu0 }
0x1fbf   :  { %v4049_v54 = vmul.f32 0.01, %v4048_v52  ;;  %v8193_v53 = vmov 19  }
0x1fc0   :  { %7936 = vset.pattern.permute.xlu0 %v8193_v53 }
0x1fc1   :  { %v4050_v57 = vmax.f32 %v4048_v52, %v4049_v54  ;;  %v8056_v52 = vld [vmem:[#allocation2 + $0x120] sm:$0xff]   ;;  %4553 = vperm.xlu0 %7936, %v8732_v55  }
0x1fc3   :  { %v4054_v58 = vpack.c.bf16 %v4050_v57, %v4050_v57 }
0x1fc5   :  { %7871 = vmatprep.subr.msk.bf16.mxu0 %vm503_vm5, %v4054_v58  ;;  %v4070_v59 = vsel %vm503_vm5, %v4054_v58, 0 }
0x1fc6   :  { %7564 = vmatpush3.bf16.msra.mxu0 %v4070_v59 }
0x1fc7   :  { %7575 = vmatprep.subr.bf16.mxu0 %v8172_v0 }
0x1fc9   :  { %7566 = vmatmul.mubr.msk.bf16.vlgmr.msra.gmra.mxu0 %vm496_vm4, %v8051_v60 }
0x1fca   :  { %7576 = vmatpush3.bf16.msra.mxu0 %v4001_v32  ;;  %7577 = vmatprep.mubr.msk.bf16.mxu0 %vm8173_vm0, %v8172_v0 }
0x1fcb   :  { %7587 = vmatprep.subr.bf16.mxu0 %v8172_v0 }
0x203c   :  { %v4554_v2 = vpop.permute.xlu0 %4553 }
0x2089   :  { %v7567_v63 = vpop.f32.mrf.mxu0 }
0x208a   :  { %v4165_v1 = vpack.c.bf16 %v7567_v63, %v7567_v63 }
0x208b   :  { %v4106_v3 = vpop.f32.mrf.mxu0 }
0x208c   :  { %v4120_v4 = vpack.c.bf16 %v4106_v3, %v4106_v3  ;;  %7578 = vmatmul.mubr.msk.bf16.vlgmr.msra.gmra.mxu0 %vm496_vm4, %v4165_v1 }
0x208d   :  { %v7568_v5 = vpop.f32.mrf.mxu0  ;;  %7589 = vmatprep.mubr.msk.bf16.mxu0 %vm8173_vm0, %v8172_v0  ;;  %7588 = vmatpush3.bf16.msra.mxu0 %v4289_v28 }
0x208e   :  { %7572 = vmatmul.mubr.msk.bf16.vlgmr.msra.gmra.mxu1 %vm496_vm4, %v4120_v4 }
0x208f   :  { %7583 = vmatprep.mubr.msk.bf16.mxu1 %vm8173_vm0, %v8172_v0  ;;  %v4109_v7 = vpop.f32.mrf.mxu0 }
0x214c   :  { %v4203_v8 = vpop.f32.mrf.mxu0 }
0x214e   :  { %v4158_v61 = vpop.f32.mrf.mxu1  ;;  %v7579_v9 = vpop.f32.mrf.mxu0 }
0x214f   :  { %v4164_v10 = vadd.f32 %v4158_v61, %v4109_v7 }
0x2150   :  { %v7573_v13 = vpop.f32.mrf.mxu1  ;;  %v4206_v14 = vpop.f32.mrf.mxu0 }
0x2151   :  { %v4209_v15 = vadd.f32 %v4203_v8, %v4164_v10 }
0x2152   :  { %v4161_v16 = vpop.f32.mrf.mxu1  ;;  %v7580_v17 = vpop.f32.mrf.mxu0 }
0x2153   :  { %v4214_v18 = vadd.f32 %v4212_v12, %v4209_v15 }
0x2154   :  { %v7574_v19 = vpop.f32.mrf.mxu1 }
0x2155   :  { %v4215_v6 = vadd.f32 %v4214_v18, %v8864_v11  ;;  %v4335_v11 = vsel %vm503_vm5, %v4282_v26, 0  ;;  %v8058_v18 = vld [vmem:[%s9181_s2 + $0x140] ss:$0 sps:$4 sm:$0xff]   ;;  %v8194_v19 = vmov 20  }
0x2156   :  { %7937 = vset.pattern.permute.xlu1 %v8194_v19 }
0x2157   :  { %v4216_v20 = vmul.f32 0.01, %v4215_v6  ;;  %4719 = vperm.xlu1 %7937, %v8732_v55  }
0x2159   :  { %v4217_v21 = vmax.f32 %v4215_v6, %v4216_v20 }
0x215b   :  { %v4220_v22 = vpack.c.bf16 %v4217_v21, %v4217_v21 }
0x215d   :  { %v4238_v23 = vsel %vm503_vm5, %v4220_v22, 0 }
0x215e   :  { %7582 = vmatpush3.bf16.msra.mxu1 %v4238_v23 }
0x215f   :  { %7593 = vmatprep.subr.bf16.mxu1 %v8172_v0 }
0x2161   :  { %7584 = vmatmul.mubr.msk.bf16.vlgmr.msra.gmra.mxu1 %vm496_vm4, %v8052_v25  ;;  %v8195_v25 = vmov 21  }
0x2162   :  { %7595 = vmatprep.mubr.msk.bf16.mxu1 %vm8173_vm0, %v8172_v0  ;;  %7594 = vmatpush3.bf16.msra.mxu1 %v4335_v11 }
0x2163   :  { %7605 = vmatprep.subr.bf16.mxu1 %v8172_v0  ;;  %7938 = vset.pattern.permute.xlu1 %v8195_v25 }
0x2164   :  { %7939 = vset.pattern.permute.xlu0 %v8195_v25  ;;  %4730 = vperm.xlu1 %7938, %v8732_v55  }
0x2165   :  { %4734 = vperm.xlu0 %7939, %v8737_v56  }
0x2221   :  { %v4274_v30 = vpop.f32.mrf.mxu1 }
0x2222   :  { %v4275_v24 = vadd.f32 %v4274_v30, %v4223_v29  ;;  %v4720_v30 = vpop.permute.xlu1 %4719 }
0x2223   :  { %v7585_v32 = vpop.f32.mrf.mxu1 }
0x2224   :  { %v4281_v33 = vpack.c.bf16 %v4275_v24, %v4275_v24 }
0x2225   :  { %v4277_v35 = vpop.f32.mrf.mxu1 }
0x2226   :  { %v4278_v36 = vadd.f32 %v4277_v35, %v4227_v31  ;;  %7596 = vmatmul.mubr.msk.bf16.vlgmr.msra.gmra.mxu1 %vm496_vm4, %v4281_v33 }
0x2227   :  { %v7586_v37 = vpop.f32.mrf.mxu1  ;;  %7607 = vmatprep.mubr.msk.bf16.mxu1 %vm8173_vm0, %v8172_v0  ;;  %7606 = vmatpush3.bf16.msra.mxu1 %v8056_v52 }
0x2228   :  { %v4283_v38 = vpack.c.bf16 %v4278_v36, %v4278_v36 }
0x222a   :  { %7590 = vmatmul.mubr.msk.bf16.vlgmr.msra.gmra.mxu0 %vm496_vm4, %v4283_v38 }
0x222b   :  { %7601 = vmatprep.mubr.msk.bf16.mxu0 %vm496_vm4, %v8053_v39 }
0x22e6   :  { %v4371_v40 = vpop.f32.mrf.mxu1 }
0x22e8   :  { %v7597_v34 = vpop.f32.mrf.mxu1 }
0x22ea   :  { %v4325_v41 = vpop.f32.mrf.mxu0  ;;  %v4374_v43 = vpop.f32.mrf.mxu1 }
0x22eb   :  { %v8929_v44 = vadd.f32 %v4371_v40, %v4325_v41  ;;  %v8059_v41 = vld [vmem:[%s9181_s2 + $0x148] sm:$0xff]   ;;  %v8060_v43 = vld [vmem:[#allocation2 + $0x2b0] sm:$0xff]  }
0x22ec   :  { %v7591_v45 = vpop.f32.mrf.mxu0  ;;  %v7598_v46 = vpop.f32.mrf.mxu1 }
0x22ed   :  { %v4380_v47 = vpack.c.bf16 %v8929_v44, %v8929_v44  ;;  %v4731_v45 = vpop.permute.xlu1 %4730 }
0x22ee   :  { %v4328_v48 = vpop.f32.mrf.mxu0 }
0x22ef   :  { %7872 = vmatprep.subr.msk.bf16.mxu0 %vm503_vm5, %v4380_v47  ;;  %v4396_v42 = vsel %vm503_vm5, %v4380_v47, 0 }
0x22f0   :  { %v7592_v50 = vpop.f32.mrf.mxu0  ;;  %7600 = vmatpush3.bf16.msra.mxu0 %v4396_v42  ;;  %v4735_v42 = vpop.permute.xlu0 %4734 }
0x22f1   :  { %7611 = vmatprep.subr.bf16.mxu0 %v8172_v0 }
0x22f3   :  { %7602 = vmatmul.mubr.msk.bf16.vlgmr.msra.gmra.mxu0 %vm496_vm4, %v8054_v49 }
0x22f4   :  { %7613 = vmatprep.mubr.msk.bf16.mxu0 %vm8173_vm0, %v8172_v0  ;;  %7612 = vmatpush3.bf16.msra.mxu0 %v8055_v51 }
0x22f5   :  { %7623 = vmatprep.subr.bf16.mxu0 %v8172_v0 }
0x23b3   :  { %v7603_v54 = vpop.f32.mrf.mxu0 }
0x23b4   :  { %v4499_v57 = vpack.c.bf16 %v7603_v54, %v7603_v54  ;;  %v8062_v54 = vld [vmem:[%s9181_s2 + $0x150] sm:$0xff]  }
0x23b5   :  { %v4432_v58 = vpop.f32.mrf.mxu0 }
0x23b6   :  { %v4446_v59 = vpack.c.bf16 %v4432_v58, %v4432_v58  ;;  %7614 = vmatmul.mubr.msk.bf16.vlgmr.msra.gmra.mxu0 %vm2124_vm7, %v4499_v57  ;;  %v8065_v57 = vld [vmem:[#allocation2 + $0x108] sm:$0xff]  }
0x23b7   :  { %v7604_v60 = vpop.f32.mrf.mxu0  ;;  %7624 = vmatpush3.bf16.msra.mxu0 %v8056_v52  ;;  %7625 = vmatprep.mubr.msk.bf16.mxu0 %vm8173_vm0, %v8172_v0 }
0x23b8   :  { %7608 = vmatmul.mubr.msk.bf16.vlgmr.msra.gmra.mxu1 %vm2124_vm7, %v4446_v59  ;;  %7635 = vmatprep.subr.bf16.mxu0 %v8172_v0 }
0x23b9   :  { %7619 = vmatprep.mubr.msk.bf16.mxu1 %vm496_vm4, %v8057_v62  ;;  %v4435_v63 = vpop.f32.mrf.mxu0 }
0x2476   :  { %v4545_v1 = vpop.f32.mrf.mxu0 }
0x2478   :  { %v4492_v3 = vpop.f32.mrf.mxu1  ;;  %v7615_v4 = vpop.f32.mrf.mxu0 }
0x2479   :  { %v4498_v5 = vadd.f32 %v4492_v3, %v4435_v63 }
0x247a   :  { %v7609_v7 = vpop.f32.mrf.mxu1  ;;  %v4548_v8 = vpop.f32.mrf.mxu0 }
0x247b   :  { %v4551_v61 = vadd.f32 %v4545_v1, %v4498_v5  ;;  %v8063_v7 = vld [vmem:[%s9181_s2 + $0x158] ss:$0 sps:$4 sm:$0xff]  }
0x247c   :  { %v4495_v9 = vpop.f32.mrf.mxu1  ;;  %v7616_v10 = vpop.f32.mrf.mxu0 }
0x247d   :  { %v4556_v12 = vadd.f32 %v4554_v2, %v4551_v61  ;;  %v8064_v61 = vld [vmem:[#allocation2 + $0x118] sm:$0xff]   ;;  %v8066_v9 = vld [vmem:[#allocation2 + $0x110] sm:$0xff]   ;;  %v8067_v10 = vld [vmem:[#allocation2 + $0x100] sm:$0xff]  }
0x247e   :  { %v7610_v13 = vpop.f32.mrf.mxu1 }
0x247f   :  { %v4557_v14 = vmul.f32 0.01, %v4556_v12 }
0x2481   :  { %v4558_v15 = vmax.f32 %v4556_v12, %v4557_v14  ;;  %v8196_v12 = vmov 22  }
0x2482   :  { %7940 = vset.pattern.permute.xlu1 %v8196_v12 }
0x2483   :  { %v4562_v16 = vpack.c.bf16 %v4558_v15, %v4558_v15  ;;  %5085 = vperm.xlu1 %7940, %v8732_v55   ;;  %v8068_v55 = vld [vmem:[%s9181_s2 + $0x160] sm:$0xff]  }
0x2485   :  { %7873 = vmatprep.subr.msk.bf16.mxu1 %vm503_vm5, %v4562_v16  ;;  %v4578_v17 = vsel %vm503_vm5, %v4562_v16, 0 }
0x2486   :  { %7618 = vmatpush3.bf16.msra.mxu1 %v4578_v17 }
0x2487   :  { %7629 = vmatprep.subr.bf16.mxu1 %v8172_v0 }
0x2489   :  { %7620 = vmatmul.mubr.msk.bf16.vlgmr.msra.gmra.mxu1 %vm496_vm4, %v8058_v18 }
0x248a   :  { %7630 = vmatpush3.bf16.msra.mxu1 %v8055_v51  ;;  %7631 = vmatprep.mubr.msk.bf16.mxu1 %vm8173_vm0, %v8172_v0 }
0x248b   :  { %7641 = vmatprep.subr.bf16.mxu1 %v8172_v0 }
0x2549   :  { %v7621_v6 = vpop.f32.mrf.mxu1 }
0x254a   :  { %v4673_v20 = vpack.c.bf16 %v7621_v6, %v7621_v6 }
0x254b   :  { %v4614_v21 = vpop.f32.mrf.mxu1 }
0x254c   :  { %v4628_v22 = vpack.c.bf16 %v4614_v21, %v4614_v21  ;;  %7632 = vmatmul.mubr.msk.bf16.vlgmr.msra.gmra.mxu1 %vm2124_vm7, %v4673_v20 }
0x254d   :  { %v7622_v23 = vpop.f32.mrf.mxu1  ;;  %7643 = vmatprep.mubr.msk.bf16.mxu1 %vm8173_vm0, %v8172_v0 }
0x254e   :  { %7626 = vmatmul.mubr.msk.bf16.vlgmr.msra.gmra.mxu0 %vm2124_vm7, %v4628_v22  ;;  %v5086_v22 = vpop.permute.xlu1 %5085 }
0x254f   :  { %7637 = vmatprep.mubr.msk.bf16.mxu0 %vm8173_vm0, %v8172_v0  ;;  %v4617_v26 = vpop.f32.mrf.mxu1 }
0x260c   :  { %v4711_v11 = vpop.f32.mrf.mxu1 }
0x260e   :  { %v4666_v27 = vpop.f32.mrf.mxu0  ;;  %v7633_v28 = vpop.f32.mrf.mxu1 }
0x260f   :  { %v4672_v29 = vadd.f32 %v4666_v27, %v4617_v26 }
0x2610   :  { %v7627_v24 = vpop.f32.mrf.mxu0  ;;  %v4714_v32 = vpop.f32.mrf.mxu1 }
0x2611   :  { %v4717_v33 = vadd.f32 %v4711_v11, %v4672_v29 }
0x2612   :  { %v4669_v31 = vpop.f32.mrf.mxu0  ;;  %v7634_v35 = vpop.f32.mrf.mxu1 }
0x2613   :  { %v4722_v36 = vadd.f32 %v4720_v30, %v4717_v33  ;;  %v8069_v31 = vld [vmem:[%s9181_s2 + $0x168] ss:$0 sps:$4 sm:$0xff]   ;;  %v8197_v35 = vmov 23  }
0x2614   :  { %v7628_v37 = vpop.f32.mrf.mxu0  ;;  %7941 = vset.pattern.permute.xlu1 %v8197_v35  ;;  %v8199_v35 = vmov 25  }
0x2615   :  { %v4723_v38 = vadd.f32 %v4722_v36, %v8929_v44  ;;  %v8061_v44 = vld [vmem:[#allocation2 + $0x2b8] sm:$0xff]   ;;  %v9031_v36 = vld [vmem:[%s9182_s3] sm:$0xff] }
0x2616   :  { %7642 = vmatpush3.bf16.msra.mxu1 %v8061_v44  ;;  %5251 = vperm.xlu1 %7941, %v9031_v36  }
0x2617   :  { %v4724_v39 = vmul.f32 0.01, %v4723_v38 }
0x2619   :  { %v4725_v40 = vmax.f32 %v4723_v38, %v4724_v39 }
0x261b   :  { %v4728_v34 = vpack.c.bf16 %v4725_v40, %v4725_v40 }
0x261d   :  { %v4746_v56 = vsel %vm503_vm5, %v4728_v34, 0 }
0x261e   :  { %7636 = vmatpush3.bf16.msra.mxu0 %v4746_v56  ;;  %v8198_v56 = vmov 24  }
0x261f   :  { %7647 = vmatprep.subr.bf16.mxu0 %v8172_v0  ;;  %7942 = vset.pattern.permute.xlu0 %v8198_v56 }
0x2620   :  { %7943 = vset.pattern.permute.xlu1 %v8198_v56  ;;  %5262 = vperm.xlu0 %7942, %v9031_v36   ;;  %v8085_v56 = vld [vmem:[%s9181_s2 + $0x188] sm:$0xff]  }
0x2621   :  { %7638 = vmatmul.mubr.msk.bf16.vlgmr.msra.gmra.mxu0 %vm496_vm4, %v8059_v41  ;;  %v9044_v41 = vld [vmem:[%s9182_s3 + $0x8] sm:$0xff] }
0x2622   :  { %7649 = vmatprep.mubr.msk.bf16.mxu0 %vm8173_vm0, %v8172_v0  ;;  %7648 = vmatpush3.bf16.msra.mxu0 %v8060_v43 }
0x2623   :  { %7659 = vmatprep.subr.bf16.mxu0 %v8172_v0  ;;  %5266 = vperm.xlu1 %7943, %v9044_v41  }
0x2627   :  { %7944 = vset.pattern.permute.xlu1 %v8199_v35 }
0x2628   :  { %5665 = vperm.xlu1 %7944, %v9031_v36  }
0x26e1   :  { %v4782_v46 = vpop.f32.mrf.mxu0 }
0x26e2   :  { %v4783_v47 = vadd.f32 %v4782_v46, %v4731_v45 }
0x26e3   :  { %v7639_v48 = vpop.f32.mrf.mxu0 }
0x26e4   :  { %v4789_v49 = vpack.c.bf16 %v4783_v47, %v4783_v47  ;;  %v5252_v48 = vpop.permute.xlu1 %5251 }
0x26e5   :  { %v4785_v50 = vpop.f32.mrf.mxu0 }
0x26e6   :  { %v4786_v51 = vadd.f32 %v4785_v50, %v4735_v42  ;;  %7650 = vmatmul.mubr.msk.bf16.vlgmr.msra.gmra.mxu0 %vm2124_vm7, %v4789_v49 }
0x26e7   :  { %v7640_v52 = vpop.f32.mrf.mxu0  ;;  %7663 = vmatprep.mubr.msk.bf16.mxu0 %vm8173_vm0, %v8172_v0  ;;  %7660 = vmatpush3.bf16.msra.mxu0 %v8065_v57 }
0x26e8   :  { %v4792_v53 = vpack.c.bf16 %v4786_v51, %v4786_v51  ;;  %7661 = vmatprep.subr.bf16.mxu0 %v8172_v0 }
0x26ea   :  { %7644 = vmatmul.mubr.msk.bf16.vlgmr.msra.gmra.mxu1 %vm2124_vm7, %v4792_v53 }
0x26eb   :  { %7655 = vmatprep.mubr.msk.bf16.mxu1 %vm496_vm4, %v8062_v54  ;;  %7662 = vmatpush3.bf16.msra.mxu0 %v8067_v10 }
0x27a6   :  { %v4887_v58 = vpop.f32.mrf.mxu0 }
0x27a8   :  { %v7651_v59 = vpop.f32.mrf.mxu0 }
0x27aa   :  { %v4838_v60 = vpop.f32.mrf.mxu1  ;;  %v4890_v62 = vpop.f32.mrf.mxu0 }
0x27ab   :  { %v8991_v63 = vadd.f32 %v4887_v58, %v4838_v60 }
0x27ac   :  { %v7645_v1 = vpop.f32.mrf.mxu1  ;;  %v7652_v3 = vpop.f32.mrf.mxu0 }
0x27ad   :  { %v4896_v4 = vpack.c.bf16 %v8991_v63, %v8991_v63  ;;  %v8070_v1 = vld [vmem:[%s9181_s2 + $0x170] sm:$0xff]   ;;  %v8071_v3 = vld [vmem:[#allocation2 + $0x298] sm:$0xff]  }
0x27ae   :  { %v4841_v5 = vpop.f32.mrf.mxu1 }
0x27af   :  { %7874 = vmatprep.subr.msk.bf16.mxu1 %vm503_vm5, %v4896_v4  ;;  %v4912_v2 = vsel %vm503_vm5, %v4896_v4, 0  ;;  %v8073_v4 = vld [vmem:[#allocation2 + $0x290] sm:$0xff]   ;;  %v8074_v5 = vld [vmem:[#allocation2 + $0x2a0] sm:$0xff]  }
0x27b0   :  { %v7646_v8 = vpop.f32.mrf.mxu1  ;;  %7654 = vmatpush3.bf16.msra.mxu1 %v4912_v2  ;;  %v5263_v2 = vpop.permute.xlu0 %5262 }
0x27b1   :  { %7667 = vmatprep.subr.bf16.mxu1 %v8172_v0 }
0x27b3   :  { %7656 = vmatmul.mubr.msk.bf16.vlgmr.msra.gmra.mxu1 %vm496_vm4, %v8063_v7 }
0x27b4   :  { %7668 = vmatpush3.bf16.msra.mxu1 %v8064_v61  ;;  %7671 = vmatprep.mubr.msk.bf16.mxu1 %vm8173_vm0, %v8172_v0 }
0x27b5   :  { %7669 = vmatprep.subr.bf16.mxu1 %v8172_v0 }
0x27b8   :  { %7670 = vmatpush3.bf16.msra.mxu1 %v8066_v9 }
0x27b9   :  { %7681 = vmatprep.subr.bf16.mxu1 %v8172_v0 }
0x2873   :  { %v7657_v13 = vpop.f32.mrf.mxu1 }
0x2874   :  { %v5023_v14 = vpack.c.bf16 %v7657_v13, %v7657_v13 }
0x2875   :  { %v4948_v15 = vpop.f32.mrf.mxu1 }
0x2876   :  { %v4962_v16 = vpack.c.bf16 %v4948_v15, %v4948_v15  ;;  %7672 = vmatmul.mubr.msk.bf16.vlgmr.msra.gmra.mxu1 %vm1649_vm6, %v5023_v14 }
0x2877   :  { %v7658_v17 = vpop.f32.mrf.mxu1  ;;  %7682 = vmatpush3.bf16.msra.mxu1 %v8065_v57  ;;  %7685 = vmatprep.mubr.msk.bf16.mxu1 %vm8173_vm0, %v8172_v0 }
0x2878   :  { %7664 = vmatmul.mubr.msk.bf16.vlgmr.msra.gmra.mxu0 %vm1649_vm6, %v4962_v16  ;;  %7683 = vmatprep.subr.bf16.mxu1 %v8172_v0  ;;  %v8075_v16 = vld [vmem:[%s9181_s2 + $0x178] sm:$0xff]  }
0x2879   :  { %7677 = vmatprep.mubr.msk.bf16.mxu0 %vm496_vm4, %v8068_v55  ;;  %v4951_v18 = vpop.f32.mrf.mxu1  ;;  %v8078_v17 = vld [vmem:[#allocation2 + $0xd8] sm:$0xff]   ;;  %v8080_v55 = vld [vmem:[#allocation2 + $0xd0] sm:$0xff]  }
0x287b   :  { %7684 = vmatpush3.bf16.msra.mxu1 %v8067_v10 }
0x287c   :  { %7697 = vmatprep.subr.bf16.mxu1 %v8172_v0 }
0x2936   :  { %v5077_v19 = vpop.f32.mrf.mxu1 }
0x2938   :  { %v5016_v6 = vpop.f32.mrf.mxu0  ;;  %v7673_v20 = vpop.f32.mrf.mxu1 }
0x2939   :  { %v5022_v21 = vadd.f32 %v5016_v6, %v4951_v18  ;;  %v8082_v18 = vld [vmem:[#allocation2 + $0xc8] sm:$0xff]  }
0x293a   :  { %v7665_v23 = vpop.f32.mrf.mxu0  ;;  %v5080_v25 = vpop.f32.mrf.mxu1 }
0x293b   :  { %v5083_v26 = vadd.f32 %v5077_v19, %v5022_v21 }
0x293c   :  { %v5019_v11 = vpop.f32.mrf.mxu0  ;;  %v7674_v27 = vpop.f32.mrf.mxu1 }
0x293d   :  { %v5088_v28 = vadd.f32 %v5086_v22, %v5083_v26 }
0x293e   :  { %v7666_v29 = vpop.f32.mrf.mxu0 }
0x293f   :  { %v5089_v30 = vmul.f32 0.01, %v5088_v28 }
0x2941   :  { %v5090_v24 = vmax.f32 %v5088_v28, %v5089_v30  ;;  %v8076_v28 = vld [vmem:[%s9181_s2 + $0x180] ss:$0 sps:$4 sm:$0xff]   ;;  %v8077_v30 = vld [vmem:[#allocation2 + $0xf8] sm:$0xff]  }
0x2943   :  { %v5094_v32 = vpack.c.bf16 %v5090_v24, %v5090_v24  ;;  %v8079_v24 = vld [vmem:[#allocation2 + $0xf0] sm:$0xff]  }
0x2945   :  { %7875 = vmatprep.subr.msk.bf16.mxu0 %vm503_vm5, %v5094_v32  ;;  %v5110_v33 = vsel %vm503_vm5, %v5094_v32, 0  ;;  %v8081_v32 = vld [vmem:[#allocation2 + $0xe8] sm:$0xff]  }
0x2946   :  { %7676 = vmatpush3.bf16.msra.mxu0 %v5110_v33  ;;  %v8083_v33 = vld [vmem:[#allocation2 + $0xe0] sm:$0xff]  }
0x2947   :  { %7689 = vmatprep.subr.bf16.mxu0 %v8172_v0 }
0x2949   :  { %7678 = vmatmul.mubr.msk.bf16.vlgmr.msra.gmra.mxu0 %vm496_vm4, %v8069_v31  ;;  %v8084_v31 = vld [vmem:[#allocation2 + $0xc0] sm:$0xff]  }
0x294a   :  { %7690 = vmatpush3.bf16.msra.mxu0 %v8064_v61  ;;  %7693 = vmatprep.mubr.msk.bf16.mxu0 %vm8173_vm0, %v8172_v0 }
0x294b   :  { %7691 = vmatprep.subr.bf16.mxu0 %v8172_v0 }
0x294e   :  { %7692 = vmatpush3.bf16.msra.mxu0 %v8066_v9  ;;  %v5267_v9 = vpop.permute.xlu1 %5266 }
0x294f   :  { %7703 = vmatprep.subr.bf16.mxu0 %v8172_v0 }
0x2a09   :  { %v7679_v37 = vpop.f32.mrf.mxu0 }
0x2a0a   :  { %v5205_v38 = vpack.c.bf16 %v7679_v37, %v7679_v37 }
0x2a0b   :  { %v5146_v39 = vpop.f32.mrf.mxu0 }
0x2a0c   :  { %v5160_v40 = vpack.c.bf16 %v5146_v39, %v5146_v39  ;;  %7694 = vmatmul.mubr.msk.bf16.vlgmr.msra.gmra.mxu0 %vm1649_vm6, %v5205_v38 }
0x2a0d   :  { %v7680_v34 = vpop.f32.mrf.mxu0  ;;  %7707 = vmatprep.mubr.msk.bf16.mxu0 %vm8173_vm0, %v8172_v0 }
0x2a0e   :  { %7686 = vmatmul.mubr.msk.bf16.vlgmr.msra.gmra.mxu1 %vm1649_vm6, %v5160_v40 }
0x2a0f   :  { %7699 = vmatprep.mubr.msk.bf16.mxu1 %vm8173_vm0, %v8172_v0  ;;  %v5149_v43 = vpop.f32.mrf.mxu0 }
0x2acc   :  { %v5243_v44 = vpop.f32.mrf.mxu0 }
0x2ace   :  { %v5198_v45 = vpop.f32.mrf.mxu1  ;;  %v7695_v46 = vpop.f32.mrf.mxu0 }
0x2acf   :  { %v5204_v47 = vadd.f32 %v5198_v45, %v5149_v43 }
0x2ad0   :  { %v7687_v42 = vpop.f32.mrf.mxu1  ;;  %v5246_v49 = vpop.f32.mrf.mxu0 }
0x2ad1   :  { %v5249_v50 = vadd.f32 %v5243_v44, %v5204_v47 }
0x2ad2   :  { %v5201_v51 = vpop.f32.mrf.mxu1  ;;  %v7696_v52 = vpop.f32.mrf.mxu0 }
0x2ad3   :  { %v5254_v53 = vadd.f32 %v5252_v48, %v5249_v50  ;;  %v5666_v48 = vpop.permute.xlu1 %5665 }
0x2ad4   :  { %v7688_v54 = vpop.f32.mrf.mxu1 }
0x2ad5   :  { %v5255_v57 = vadd.f32 %v5254_v53, %v8991_v63  ;;  %v8072_v63 = vld [vmem:[#allocation2 + $0x2a8] sm:$0xff]  }
0x2ad6   :  { %7704 = vmatpush3.bf16.msra.mxu0 %v8072_v63 }
0x2ad7   :  { %v5256_v58 = vmul.f32 0.01, %v5255_v57  ;;  %7705 = vmatprep.subr.bf16.mxu0 %v8172_v0 }
0x2ad9   :  { %v5257_v59 = vmax.f32 %v5255_v57, %v5256_v58 }
0x2ada   :  { %7706 = vmatpush3.bf16.msra.mxu0 %v8074_v5 }
0x2adb   :  { %v5260_v60 = vpack.c.bf16 %v5257_v59, %v5257_v59 }
0x2add   :  { %v5278_v62 = vsel %vm503_vm5, %v5260_v60, 0 }
0x2ade   :  { %7698 = vmatpush3.bf16.msra.mxu1 %v5278_v62  ;;  %v8086_v62 = vld [vmem:[%s9181_s2 + $0x190] ss:$0 sps:$4 sm:$0xff]  }
0x2adf   :  { %7711 = vmatprep.subr.bf16.mxu1 %v8172_v0 }
0x2ae1   :  { %7700 = vmatmul.mubr.msk.bf16.vlgmr.msra.gmra.mxu1 %vm496_vm4, %v8070_v1  ;;  %v8200_v1 = vmov 26  }
0x2ae2   :  { %7712 = vmatpush3.bf16.msra.mxu1 %v8071_v3  ;;  %7715 = vmatprep.mubr.msk.bf16.mxu1 %vm8173_vm0, %v8172_v0 }
0x2ae3   :  { %7713 = vmatprep.subr.bf16.mxu1 %v8172_v0  ;;  %7945 = vset.pattern.permute.xlu0 %v8200_v1 }
0x2ae4   :  { %5831 = vperm.xlu0 %7945, %v9031_v36  }
0x2ae6   :  { %7714 = vmatpush3.bf16.msra.mxu1 %v8073_v4 }
0x2ae7   :  { %7725 = vmatprep.subr.bf16.mxu1 %v8172_v0 }
0x2ba1   :  { %v5314_v7 = vpop.f32.mrf.mxu1 }
0x2ba2   :  { %v5315_v8 = vadd.f32 %v5314_v7, %v5263_v2  ;;  %v8201_v7 = vmov 27  }
0x2ba3   :  { %v7701_v61 = vpop.f32.mrf.mxu1  ;;  %7946 = vset.pattern.permute.xlu1 %v8201_v7  ;;  %v8108_v7 = vld [vmem:[#allocation2 + $0x90] sm:$0xff]  }
0x2ba4   :  { %v5321_v10 = vpack.c.bf16 %v5315_v8, %v5315_v8  ;;  %5842 = vperm.xlu1 %7946, %v9031_v36   ;;  %v8089_v8 = vld [vmem:[#allocation2 + $0x288] sm:$0xff]   ;;  %v8091_v61 = vld [vmem:[#allocation2 + $0x280] sm:$0xff]  }
0x2ba5   :  { %v5317_v12 = vpop.f32.mrf.mxu1 }
0x2ba6   :  { %v5318_v13 = vadd.f32 %v5317_v12, %v5267_v9  ;;  %7716 = vmatmul.mubr.msk.bf16.vlgmr.msra.gmra.mxu1 %vm1649_vm6, %v5321_v10 }
0x2ba7   :  { %v7702_v14 = vpop.f32.mrf.mxu1  ;;  %7733 = vmatprep.mubr.msk.bf16.mxu1 %vm8173_vm0, %v8172_v0  ;;  %7726 = vmatpush3.bf16.msra.mxu1 %v8078_v17 }
0x2ba8   :  { %v5326_v15 = vpack.c.bf16 %v5318_v13, %v5318_v13  ;;  %7727 = vmatprep.subr.bf16.mxu1 %v8172_v0  ;;  %5846 = vperm.xlu1 %7946, %v9044_v41  }
0x2baa   :  { %7708 = vmatmul.mubr.msk.bf16.vlgmr.msra.gmra.mxu0 %vm1649_vm6, %v5326_v15  ;;  %v5832_v15 = vpop.permute.xlu0 %5831 }
0x2bab   :  { %7721 = vmatprep.mubr.msk.bf16.mxu0 %vm496_vm4, %v8075_v16  ;;  %7728 = vmatpush3.bf16.msra.mxu1 %v8080_v55 }
0x2bac   :  { %7729 = vmatprep.subr.bf16.mxu1 %v8172_v0 }
0x2baf   :  { %7730 = vmatpush3.bf16.msra.mxu1 %v8082_v18 }
0x2bb0   :  { %7731 = vmatprep.subr.bf16.mxu1 %v8172_v0 }
0x2bb3   :  { %7732 = vmatpush3.bf16.msra.mxu1 %v8084_v31 }
0x2c66   :  { %v5435_v19 = vpop.f32.mrf.mxu1 }
0x2c68   :  { %v7717_v6 = vpop.f32.mrf.mxu1 }
0x2c6a   :  { %v5380_v20 = vpop.f32.mrf.mxu0  ;;  %v5438_v21 = vpop.f32.mrf.mxu1 }
0x2c6b   :  { %v9070_v22 = vadd.f32 %v5435_v19, %v5380_v20 }
0x2c6c   :  { %v7709_v23 = vpop.f32.mrf.mxu0  ;;  %v7718_v25 = vpop.f32.mrf.mxu1 }
0x2c6d   :  { %v5444_v26 = vpack.c.bf16 %v9070_v22, %v9070_v22 }
0x2c6e   :  { %v5383_v11 = vpop.f32.mrf.mxu0 }
0x2c6f   :  { %7876 = vmatprep.subr.msk.bf16.mxu0 %vm503_vm5, %v5444_v26  ;;  %v5460_v27 = vsel %vm503_vm5, %v5444_v26, 0  ;;  %v8087_v26 = vld [vmem:[%s9181_s2 + $0x198] sm:$0xff]   ;;  %v8088_v11 = vld [vmem:[#allocation2 + $0x268] sm:$0xff]  }
0x2c70   :  { %v7710_v29 = vpop.f32.mrf.mxu0  ;;  %7720 = vmatpush3.bf16.msra.mxu0 %v5460_v27  ;;  %v8090_v27 = vld [vmem:[#allocation2 + $0x260] sm:$0xff]  }
0x2c71   :  { %7737 = vmatprep.subr.bf16.mxu0 %v8172_v0  ;;  %v8094_v29 = vld [vmem:[#allocation2 + $0x250] sm:$0xff]  }
0x2c73   :  { %7722 = vmatmul.mubr.msk.bf16.vlgmr.msra.gmra.mxu0 %vm496_vm4, %v8076_v28  ;;  %v8093_v28 = vld [vmem:[#allocation2 + $0x278] sm:$0xff]  }
0x2c74   :  { %7738 = vmatpush3.bf16.msra.mxu0 %v8077_v30  ;;  %7745 = vmatprep.mubr.msk.bf16.mxu0 %vm8173_vm0, %v8172_v0 }
0x2c75   :  { %7739 = vmatprep.subr.bf16.mxu0 %v8172_v0 }
0x2c78   :  { %7740 = vmatpush3.bf16.msra.mxu0 %v8079_v24 }
0x2c79   :  { %7741 = vmatprep.subr.bf16.mxu0 %v8172_v0 }
0x2c7c   :  { %7742 = vmatpush3.bf16.msra.mxu0 %v8081_v32 }
0x2c7d   :  { %7743 = vmatprep.subr.bf16.mxu0 %v8172_v0 }
0x2c80   :  { %7744 = vmatpush3.bf16.msra.mxu0 %v8083_v33 }
0x2c81   :  { %7755 = vmatprep.subr.bf16.mxu0 %v8172_v0 }
0x2d33   :  { %v7723_v37 = vpop.f32.mrf.mxu0 }
0x2d34   :  { %v5587_v38 = vpack.c.bf16 %v7723_v37, %v7723_v37 }
0x2d35   :  { %v5496_v39 = vpop.f32.mrf.mxu0 }
0x2d36   :  { %v5510_v40 = vpack.c.bf16 %v5496_v39, %v5496_v39  ;;  %7746 = vmatmul.mubr.msk.bf16.vlgmr.msra.gmra.mxu0 %vm83_vm1, %v5587_v38 }
0x2d37   :  { %v7724_v34 = vpop.f32.mrf.mxu0  ;;  %7756 = vmatpush3.bf16.msra.mxu0 %v8078_v17  ;;  %7763 = vmatprep.mubr.msk.bf16.mxu0 %vm8173_vm0, %v8172_v0 }
0x2d38   :  { %7734 = vmatmul.mubr.msk.bf16.vlgmr.msra.gmra.mxu1 %vm83_vm1, %v5510_v40  ;;  %7757 = vmatprep.subr.bf16.mxu0 %v8172_v0 }
0x2d39   :  { %7751 = vmatprep.mubr.msk.bf16.mxu1 %vm496_vm4, %v8085_v56  ;;  %v5499_v43 = vpop.f32.mrf.mxu0  ;;  %v8096_v56 = vld [vmem:[%s9181_s2 + $0x1a0] sm:$0xff]  }
0x2d3b   :  { %7758 = vmatpush3.bf16.msra.mxu0 %v8080_v55 }
0x2d3c   :  { %7759 = vmatprep.subr.bf16.mxu0 %v8172_v0 }
0x2d3f   :  { %7760 = vmatpush3.bf16.msra.mxu0 %v8082_v18 }
0x2d40   :  { %7761 = vmatprep.subr.bf16.mxu0 %v8172_v0 }
0x2d43   :  { %7762 = vmatpush3.bf16.msra.mxu0 %v8084_v31 }
0x2d44   :  { %7779 = vmatprep.subr.bf16.mxu0 %v8172_v0 }
0x2df6   :  { %v5657_v44 = vpop.f32.mrf.mxu0 }
0x2df8   :  { %v5580_v45 = vpop.f32.mrf.mxu1  ;;  %v7747_v46 = vpop.f32.mrf.mxu0 }
0x2df9   :  { %v5586_v47 = vadd.f32 %v5580_v45, %v5499_v43  ;;  %v8099_v43 = vld [vmem:[#allocation2 + $0x78] sm:$0xff]   ;;  %v8103_v45 = vld [vmem:[#allocation2 + $0x68] sm:$0xff]   ;;  %v8105_v46 = vld [vmem:[#allocation2 + $0x60] sm:$0xff]  }
0x2dfa   :  { %v7735_v42 = vpop.f32.mrf.mxu1  ;;  %v5660_v49 = vpop.f32.mrf.mxu0 }
0x2dfb   :  { %v5663_v50 = vadd.f32 %v5657_v44, %v5586_v47  ;;  %v8101_v44 = vld [vmem:[#allocation2 + $0x70] sm:$0xff]   ;;  %v8107_v47 = vld [vmem:[#allocation2 + $0x58] sm:$0xff]   ;;  %v8111_v42 = vld [vmem:[#allocation2 + $0x48] sm:$0xff]  }
0x2dfc   :  { %v5583_v51 = vpop.f32.mrf.mxu1  ;;  %v7748_v52 = vpop.f32.mrf.mxu0 }
0x2dfd   :  { %v5668_v53 = vadd.f32 %v5666_v48, %v5663_v50  ;;  %v8109_v48 = vld [vmem:[#allocation2 + $0x50] sm:$0xff]  }
0x2dfe   :  { %v7736_v54 = vpop.f32.mrf.mxu1 }
0x2dff   :  { %v5669_v57 = vmul.f32 0.01, %v5668_v53 }
0x2e01   :  { %v5670_v58 = vmax.f32 %v5668_v53, %v5669_v57 }
0x2e03   :  { %v5674_v59 = vpack.c.bf16 %v5670_v58, %v5670_v58 }
0x2e05   :  { %7877 = vmatprep.subr.msk.bf16.mxu1 %vm503_vm5, %v5674_v59  ;;  %v5690_v60 = vsel %vm503_vm5, %v5674_v59, 0 }
0x2e06   :  { %7750 = vmatpush3.bf16.msra.mxu1 %v5690_v60 }
0x2e07   :  { %7767 = vmatprep.subr.bf16.mxu1 %v8172_v0 }
0x2e09   :  { %7752 = vmatmul.mubr.msk.bf16.vlgmr.msra.gmra.mxu1 %vm496_vm4, %v8086_v62  ;;  %v8097_v62 = vld [vmem:[%s9181_s2 + $0x1a8] ss:$0 sps:$4 sm:$0xff]  }
0x2e0a   :  { %7768 = vmatpush3.bf16.msra.mxu1 %v8077_v30  ;;  %7775 = vmatprep.mubr.msk.bf16.mxu1 %vm8173_vm0, %v8172_v0  ;;  %v8095_v30 = vld [vmem:[#allocation2 + $0x270] sm:$0xff]  }
0x2e0b   :  { %7769 = vmatprep.subr.bf16.mxu1 %v8172_v0 }
0x2e0e   :  { %7770 = vmatpush3.bf16.msra.mxu1 %v8079_v24  ;;  %v5843_v24 = vpop.permute.xlu1 %5842 }
0x2e0f   :  { %7771 = vmatprep.subr.bf16.mxu1 %v8172_v0 }
0x2e12   :  { %7772 = vmatpush3.bf16.msra.mxu1 %v8081_v32  ;;  %v5847_v37 = vpop.permute.xlu1 %5846 }
0x2e13   :  { %7773 = vmatprep.subr.bf16.mxu1 %v8172_v0 }
0x2e16   :  { %7774 = vmatpush3.bf16.msra.mxu1 %v8083_v33 }
0x2e17   :  { %7785 = vmatprep.subr.bf16.mxu1 %v8172_v0 }
0x2ec9   :  { %v7753_v3 = vpop.f32.mrf.mxu1 }
0x2eca   :  { %v5785_v63 = vpack.c.bf16 %v7753_v3, %v7753_v3  ;;  %v8098_v3 = vld [vmem:[#allocation2 + $0xb8] sm:$0xff]  }
0x2ecb   :  { %v5726_v4 = vpop.f32.mrf.mxu1 }
0x2ecc   :  { %v5740_v5 = vpack.c.bf16 %v5726_v4, %v5726_v4  ;;  %7776 = vmatmul.mubr.msk.bf16.vlgmr.msra.gmra.mxu1 %vm83_vm1, %v5785_v63  ;;  %v8100_v63 = vld [vmem:[#allocation2 + $0xb0] sm:$0xff]   ;;  %v8102_v4 = vld [vmem:[#allocation2 + $0xa8] sm:$0xff]  }
0x2ecd   :  { %v7754_v2 = vpop.f32.mrf.mxu1  ;;  %7793 = vmatprep.mubr.msk.bf16.mxu1 %vm8173_vm0, %v8172_v0  ;;  %7786 = vmatpush3.bf16.msra.mxu1 %v8089_v8  ;;  %v8110_v8 = vld [vmem:[#allocation2 + $0x88] sm:$0xff]  }
0x2ece   :  { %7764 = vmatmul.mubr.msk.bf16.vlgmr.msra.gmra.mxu0 %vm83_vm1, %v5740_v5  ;;  %7787 = vmatprep.subr.bf16.mxu1 %v8172_v0  ;;  %v8104_v5 = vld [vmem:[#allocation2 + $0xa0] sm:$0xff]   ;;  %v8106_v2 = vld [vmem:[#allocation2 + $0x98] sm:$0xff]  }
0x2ecf   :  { %7781 = vmatprep.mubr.msk.bf16.mxu0 %vm8173_vm0, %v8172_v0  ;;  %v5729_v9 = vpop.f32.mrf.mxu1 }
0x2ed1   :  { %7788 = vmatpush3.bf16.msra.mxu1 %v8091_v61  ;;  %v8112_v61 = vld [vmem:[#allocation2 + $0x80] sm:$0xff]  }
0x2ed2   :  { %7789 = vmatprep.subr.bf16.mxu1 %v8172_v0 }
0x2ed5   :  { %7790 = vmatpush3.bf16.msra.mxu1 %v8093_v28 }
0x2ed6   :  { %7791 = vmatprep.subr.bf16.mxu1 %v8172_v0 }
0x2ed9   :  { %7792 = vmatpush3.bf16.msra.mxu1 %v8095_v30 }
0x2f8c   :  { %v5823_v10 = vpop.f32.mrf.mxu1 }
0x2f8e   :  { %v5778_v12 = vpop.f32.mrf.mxu0  ;;  %v7777_v13 = vpop.f32.mrf.mxu1 }
0x2f8f   :  { %v5784_v14 = vadd.f32 %v5778_v12, %v5729_v9  ;;  %v8113_v9 = vld [vmem:[#allocation2 + $0x40] sm:$0xff]   ;;  %v8202_v12 = vmov 28  }
0x2f90   :  { %v7765_v16 = vpop.f32.mrf.mxu0  ;;  %v5826_v17 = vpop.f32.mrf.mxu1  ;;  %7947 = vset.pattern.permute.xlu0 %v8202_v12 }
0x2f91   :  { %v5829_v55 = vadd.f32 %v5823_v10, %v5784_v14  ;;  %v6334_v10 = vld [vmem:[%s9182_s3] sm:$0xf]  ;;  %s8203_s3 = smov [#allocation5]  }
0x2f92   :  { %v5781_v36 = vpop.f32.mrf.mxu0  ;;  %v7778_v18 = vpop.f32.mrf.mxu1  ;;  %6337 = vperm.xlu0 %7947, %v6334_v10   ;;  %s6364_s17 = sshll.u32 %s8203_s3, 4  ;;  %s6365_s17 = int_to_ptr.vmem [resolvable:$true] %s6364_s17 }
0x2f93   :  { %v5834_v19 = vadd.f32 %v5832_v15, %v5829_v55  ;;  %s8145_s18 = scalar_lea.vmem %s6365_s17, 128  ;;  %p8150_p6 = scmp.lt.s32.totalorder %s6365_s17, %s6365_s17 }
0x2f94   :  { %v7766_v6 = vpop.f32.mrf.mxu0  ;;  %p8146_p5 = scmp.ne.s32.totalorder %s6365_s17, %s8145_s18  ;;  %p8151_p7 = scmp.lt.s32.totalorder %s8145_s18, %s8145_s18 }
0x2f95   :  { %v5835_v20 = vadd.f32 %v5834_v19, %v9070_v22  ;;  %v8092_v22 = vld [vmem:[#allocation2 + $0x258] sm:$0xff]  }
0x2f96   :  { %p8152_p8 = por %p8151_p7, %p8150_p6 }
0x2f97   :  { %v5836_v41 = vmul.f32 0.01, %v5835_v20 }
0x2f98   :  { %p8153_p9 = pnand %p8152_p8, %p8146_p5 }
0x2f99   :  { %v5837_v21 = vmax.f32 %v5835_v20, %v5836_v41 }
0x2f9b   :  { %v5840_v23 = vpack.c.bf16 %v5837_v21, %v5837_v21 }
0x2f9d   :  { %v5858_v25 = vsel %vm503_vm5, %v5840_v23, 0 }
0x2f9e   :  { %7780 = vmatpush3.bf16.msra.mxu0 %v5858_v25 }
0x2f9f   :  { %7797 = vmatprep.subr.bf16.mxu0 %v8172_v0 }
0x2fa1   :  { %7782 = vmatmul.mubr.msk.bf16.vlgmr.msra.gmra.mxu0 %vm496_vm4, %v8087_v26 }
0x2fa2   :  { %7798 = vmatpush3.bf16.msra.mxu0 %v8088_v11  ;;  %7805 = vmatprep.mubr.msk.bf16.mxu0 %vm8173_vm0, %v8172_v0 }
0x2fa3   :  { %7799 = vmatprep.subr.bf16.mxu0 %v8172_v0 }
0x2fa6   :  { %7800 = vmatpush3.bf16.msra.mxu0 %v8090_v27 }
0x2fa7   :  { %7801 = vmatprep.subr.bf16.mxu0 %v8172_v0 }
0x2faa   :  { %7802 = vmatpush3.bf16.msra.mxu0 %v8092_v22 }
0x2fab   :  { %7803 = vmatprep.subr.bf16.mxu0 %v8172_v0 }
0x2fae   :  { %7804 = vmatpush3.bf16.msra.mxu0 %v8094_v29 }
0x2faf   :  { %7815 = vmatprep.subr.bf16.mxu0 %v8172_v0 }
0x300d   :  { %v6338_v6 = vpop.permute.xlu0 %6337 }
0x3061   :  { %v5894_v32 = vpop.f32.mrf.mxu0 }
0x3062   :  { %v5895_v33 = vadd.f32 %v5894_v32, %v5843_v24 }
0x3063   :  { %v7783_v31 = vpop.f32.mrf.mxu0 }
0x3064   :  { %v5901_v35 = vpack.c.bf16 %v5895_v33, %v5895_v33 }
0x3065   :  { %v5897_v38 = vpop.f32.mrf.mxu0 }
0x3066   :  { %v5898_v39 = vadd.f32 %v5897_v38, %v5847_v37  ;;  %7806 = vmatmul.mubr.msk.bf16.vlgmr.msra.gmra.mxu0 %vm83_vm1, %v5901_v35 }
0x3067   :  { %v7784_v40 = vpop.f32.mrf.mxu0  ;;  %7831 = vmatprep.mubr.msk.bf16.mxu0 %vm8173_vm0, %v8172_v0  ;;  %7816 = vmatpush3.bf16.msra.mxu0 %v8099_v43 }
0x3068   :  { %v5910_v34 = vpack.c.bf16 %v5898_v39, %v5898_v39  ;;  %7817 = vmatprep.subr.bf16.mxu0 %v8172_v0 }
0x306a   :  { %7794 = vmatmul.mubr.msk.bf16.vlgmr.msra.gmra.mxu1 %vm83_vm1, %v5910_v34 }
0x306b   :  { %7811 = vmatprep.mubr.msk.bf16.mxu1 %vm496_vm4, %v8096_v56  ;;  %7818 = vmatpush3.bf16.msra.mxu0 %v8101_v44 }
0x306c   :  { %7819 = vmatprep.subr.bf16.mxu0 %v8172_v0 }
0x306f   :  { %7820 = vmatpush3.bf16.msra.mxu0 %v8103_v45 }
0x3070   :  { %7821 = vmatprep.subr.bf16.mxu0 %v8172_v0 }
0x3073   :  { %7822 = vmatpush3.bf16.msra.mxu0 %v8105_v46 }
0x3074   :  { %7823 = vmatprep.subr.bf16.mxu0 %v8172_v0 }
0x3077   :  { %7824 = vmatpush3.bf16.msra.mxu0 %v8107_v47 }
0x3078   :  { %7825 = vmatprep.subr.bf16.mxu0 %v8172_v0 }
0x307b   :  { %7826 = vmatpush3.bf16.msra.mxu0 %v8109_v48 }
0x307c   :  { %7827 = vmatprep.subr.bf16.mxu0 %v8172_v0 }
0x307f   :  { %7828 = vmatpush3.bf16.msra.mxu0 %v8111_v42 }
0x3080   :  { %7829 = vmatprep.subr.bf16.mxu0 %v8172_v0 }
0x3083   :  { %7830 = vmatpush3.bf16.msra.mxu0 %v8113_v9 }
0x3126   :  { %v6047_v49 = vpop.f32.mrf.mxu0 }
0x3128   :  { %v7807_v50 = vpop.f32.mrf.mxu0 }
0x312a   :  { %v5980_v51 = vpop.f32.mrf.mxu1  ;;  %v6050_v52 = vpop.f32.mrf.mxu0 }
0x312b   :  { %v6048_v53 = vadd.f32 %v6047_v49, %v5980_v51 }
0x312c   :  { %v7795_v54 = vpop.f32.mrf.mxu1  ;;  %v7808_v57 = vpop.f32.mrf.mxu0 }
0x312d   :  { %v6056_v58 = vpack.c.bf16 %v6048_v53, %v6048_v53 }
0x312e   :  { %v5983_v59 = vpop.f32.mrf.mxu1 }
0x312f   :  { %v6072_v60 = vsel %vm503_vm5, %v6056_v58, 0  ;;  %7878 = vmatprep.subr.msk.bf16.mxu1 %vm503_vm5, %v6056_v58 }
0x3130   :  { %v7796_v1 = vpop.f32.mrf.mxu1  ;;  %7810 = vmatpush3.bf16.msra.mxu1 %v6072_v60 }
0x3131   :  { %7835 = vmatprep.subr.bf16.mxu1 %v8172_v0 }
0x3133   :  { %7812 = vmatmul.mubr.msk.bf16.vlgmr.msra.gmra.mxu1 %vm496_vm4, %v8097_v62 }
0x3134   :  { %7836 = vmatpush3.bf16.msra.mxu1 %v8098_v3  ;;  %7851 = vmatprep.mubr.msk.bf16.mxu1 %vm8173_vm0, %v8172_v0 }
0x3135   :  { %7837 = vmatprep.subr.bf16.mxu1 %v8172_v0 }
0x3138   :  { %7838 = vmatpush3.bf16.msra.mxu1 %v8100_v63 }
0x3139   :  { %7839 = vmatprep.subr.bf16.mxu1 %v8172_v0 }
0x313c   :  { %7840 = vmatpush3.bf16.msra.mxu1 %v8102_v4 }
0x313d   :  { %7841 = vmatprep.subr.bf16.mxu1 %v8172_v0 }
0x3140   :  { %7842 = vmatpush3.bf16.msra.mxu1 %v8104_v5 }
0x3141   :  { %7843 = vmatprep.subr.bf16.mxu1 %v8172_v0 }
0x3144   :  { %7844 = vmatpush3.bf16.msra.mxu1 %v8106_v2 }
0x3145   :  { %7845 = vmatprep.subr.bf16.mxu1 %v8172_v0 }
0x3148   :  { %7846 = vmatpush3.bf16.msra.mxu1 %v8108_v7 }
0x3149   :  { %7847 = vmatprep.subr.bf16.mxu1 %v8172_v0 }
0x314c   :  { %7848 = vmatpush3.bf16.msra.mxu1 %v8110_v8 }
0x314d   :  { %7849 = vmatprep.subr.bf16.mxu1 %v8172_v0 }
0x3150   :  { %7850 = vmatpush3.bf16.msra.mxu1 %v8112_v61 }
0x31f3   :  { %v7813_v13 = vpop.f32.mrf.mxu1 }
0x31f4   :  { %v6228_v14 = vpack.c.bf16 %v7813_v13, %v7813_v13 }
0x31f5   :  { %v6108_v15 = vpop.f32.mrf.mxu1 }
0x31f6   :  { %v6122_v16 = vpack.c.bf16 %v6108_v15, %v6108_v15  ;;  %7852 = vmatmul.mubr.bf16.vlgmr.msra.gmra.mxu1 %v6228_v14 }
0x31f7   :  { %v7814_v17 = vpop.f32.mrf.mxu1 }
0x31f8   :  { %7832 = vmatmul.mubr.bf16.vlgmr.msra.gmra.mxu0 %v6122_v16 }
0x31f9   :  { %v6111_v55 = vpop.f32.mrf.mxu1 }
0x32b6   :  { %v6327_v0 = vpop.f32.mrf.mxu1 }
0x32b8   :  { %v6221_v36 = vpop.f32.mrf.mxu0  ;;  %v7853_v18 = vpop.f32.mrf.mxu1 }
0x32b9   :  { %v6227_v19 = vadd.f32 %v6221_v36, %v6111_v55 }
0x32ba   :  { %v7833_v20 = vpop.f32.mrf.mxu0  ;;  %v6330_v41 = vpop.f32.mrf.mxu1 }
0x32bb   :  { %v6333_v21 = vadd.f32 %v6327_v0, %v6227_v19 }
0x32bc   :  { %v6224_v23 = vpop.f32.mrf.mxu0  ;;  %v7854_v25 = vpop.f32.mrf.mxu1 }
0x32bd   :  { %v6340_v26 = vadd.f32 %v6338_v6, %v6333_v21 }
0x32be   :  { %v7834_v11 = vpop.f32.mrf.mxu0 }
0x32bf   :  { %v6341_v27 = vsub.f32 0.0, %v6340_v26 }
0x32c1   :  { %v6342_v22 = vmul.f32 1.442695, %v6341_v27 }
0x32c3   :  { %8118 = vpow2.f32 %v6342_v22 }
0x32d0   :  { %v8119_v28 = vpop.eup %8118 }
0x32d1   :  { %v6344_v29 = vadd.f32 1.0, %v8119_v28 }
0x32d3   :  { %8120 = vrcp.f32 %v6344_v29 }
0x32e0   :  { %v8121_v30 = vpop.eup %8120 }
0x32e1   :  { %v6347_v24 = vmax.f32 %v8121_v30, 0.0 }
0x32e3   :  { %v6348_v32 = vmin.f32 %v6347_v24, 1.0 }
0x32e5   :  { %6352 = vrot.lane.b32.xlu1 %v6348_v32, %s8170_s24  ;;  %6350 = vst.msk [vmem:[#allocation5] sm:$0xf] %vm6349_vm10, %v6348_v32 }
0x3357   :  { %v6353_v33 = vpop.permute.xlu1 %6352 }
0x3358   :  { %6356 = vst.msk [vmem:[#allocation5 + $0x4] sm:$0xf] %vm6349_vm10, %v6353_v33 }
0x3359   :  { %8156 = shalt.err (!%p8153_p9)
}
0x335a   :  { %6370 = dma.vmem_to_hbm [thread:$0]  %s6365_s17, 128, %s9185_s6, [#allocation4], %s8170_s24, %s8170_s24, %s8171_s25  }
0x335b   :  { %8167 = dma.done.wait [#allocation4], 128  }
0x335c   :  { %8168 = vsyncadd [#allocation4], 4294967168 }
0x335d   :  { %6376 = vsyncpa [#allocation3], 1 }
0x335e   :  { %6377 = vsyncpa [#allocation4], 1 }

</bundles_post_ra>
